<compile_context>
chip_gen: v7x
topology: tpu7x:2x2x1
jax: 0.10.0
libtpu: 0.0.40
codegen_flags: <defaults>
</compile_context>

<pallas_src>
import jax
import jax.numpy as jnp
from jax.experimental import pallas as pl
from jax.experimental.pallas import tpu as pltpu


def _round_up(x, m):
    return ((x + m - 1) // m) * m


def _gtc_link_kernel(src_ref, dst_ref, t_ref,
                     table_ref, ts_ref,
                     freq_ref, phase_ref,
                     w1a_ref, w1b_ref, b1_ref,
                     wfu_ref, wfv_ref, bf_ref,
                     out_ref):
    # Shapes inside the kernel (transposed layout, edges on lanes):
    #   src_ref / dst_ref     : (1, block_e) int32   edge endpoint ids
    #   t_ref                 : (1, block_e) f32     query times
    #   table_ref             : (D, n_pad)  f32      node_embeds.T, resident in VMEM
    #   ts_ref                : (n_pad, 1)  f32      node timestamps, resident
    #   freq/phase/b1/wfu/wfv : (D, 1)
    #   w1a/w1b               : (D, D)   (W1.T split: [feat-rows ; phi-rows])
    #   bf_ref                : (1, 1) scalar in SMEM
    #   out_ref               : (1, block_e) lane-dense logits row
    n_pad = ts_ref.shape[0]
    block_e = out_ref.shape[1]

    table = table_ref[...]                                   # (D, n_pad)
    ts_col = ts_ref[...]                                     # (n_pad, 1)
    t_now = t_ref[...]                                       # (1, block_e)
    freq = freq_ref[...]                                     # (D, 1)
    phase = phase_ref[...]                                   # (D, 1)
    w1a = w1a_ref[...]
    w1b = w1b_ref[...]
    b1 = b1_ref[...]                                         # (D, 1)

    node_iota = jax.lax.broadcasted_iota(jnp.int32, (n_pad, block_e), 0)

    def encode_side(idx_row):
        # One-hot gather on the MXU (exactly one nonzero per edge column).
        onehot = (node_iota == idx_row).astype(jnp.float32)  # (n_pad, block_e)
        feat = jnp.dot(table, onehot,
                       preferred_element_type=jnp.float32)   # (D, block_e)
        tnode = jnp.sum(ts_col * onehot, axis=0,
                        keepdims=True)                       # (1, block_e)  VPU+XLU
        # TimeEncodingLayer ("cosine")
        phi = jnp.cos((t_now - tnode) * freq + phase)        # (D, block_e)  EUP
        h = (jnp.dot(w1a, feat, preferred_element_type=jnp.float32)
             + jnp.dot(w1b, phi, preferred_element_type=jnp.float32)
             + b1)
        return jnp.maximum(h, 0.0)                           # ReLU

    hu = encode_side(src_ref[...])                           # (D, block_e)
    hv = encode_side(dst_ref[...])                           # (D, block_e)

    # concat([hu, hv]) @ W_fc + b_fc, as VPU mul + sublane reduction.
    # (dropout is identity in eval mode)
    contrib = hu * wfu_ref[...] + hv * wfv_ref[...]          # (D, block_e)
    logits = jnp.sum(contrib, axis=0, keepdims=True) + bf_ref[0, 0]
    out_ref[...] = logits.astype(out_ref.dtype)


def gtc_link_forward(params, node_embeds, node_ts, src_idx, dst_idx, t,
                     *, block_e=8192):
    """Pallas-backed forward of GTCLinkLayer (concat=True, n_classes=1)."""
    freq, phase, w1a, w1b, b1, wfu, wfv, bf = params
    N, D = node_embeds.shape
    E = src_idx.shape[0]

    # ---- node table, resident in VMEM (transposed: nodes on lanes) ----------
    n_pad = _round_up(max(N, 8), 8)
    table = jnp.zeros((D, n_pad), jnp.float32).at[:, :N].set(
        node_embeds.astype(jnp.float32).T)
    ts_col = jnp.zeros((n_pad, 1), jnp.float32).at[:N, 0].set(
        node_ts.astype(jnp.float32))
    assert D * n_pad * 4 <= 16 * 1024 * 1024, \
        "node table too large for the resident-VMEM gather path"

    # ---- pick the edge tile --------------------------------------------------
    # Big tiles amortize the ~0.35 us/step pipeline overhead; shrink so the
    # per-step working set (two one-hots + feat/phi/h intermediates) stays
    # ~24 MiB (v7x-safe), and guarantee >= 2 grid steps when E allows it so the
    # parallel edge axis can shard across both v7x TensorCores.
    be = max(128, min(_round_up(block_e, 128), _round_up(max(E, 1), 128)))
    if E > 128 and pl.cdiv(E, be) < 2:
        be = max(128, _round_up(pl.cdiv(E, 2), 128))

    def _working_set_bytes(b):
        return (2 * n_pad * b + 8 * D * b + 8 * b) * 4 + D * n_pad * 4

    vmem_budget = 24 * 1024 * 1024
    while be > 128 and _working_set_bytes(be) > vmem_budget:
        be -= 128

    e_pad = _round_up(E, be)
    grid = (e_pad // be,)
    pad = e_pad - E

    # ---- edge streams, lane-dense, padded to the tile ------------------------
    src_p = jnp.pad(src_idx.astype(jnp.int32), (0, pad)).reshape(1, e_pad)
    dst_p = jnp.pad(dst_idx.astype(jnp.int32), (0, pad)).reshape(1, e_pad)
    t_p = jnp.pad(t.astype(jnp.float32), (0, pad)).reshape(1, e_pad)

    # ---- params re-oriented for the transposed (edges-on-lanes) layout -------
    freq_c = freq.reshape(D, 1)
    phase_c = phase.reshape(D, 1)
    w1a_t = w1a.T                                            # (D, D)
    w1b_t = w1b.T                                            # (D, D)
    b1_c = b1.reshape(D, 1)
    wfu_c = wfu.reshape(D, 1)
    wfv_c = wfv.reshape(D, 1)
    bf_s = bf.reshape(1, 1)                                  # scalar -> SMEM

    idx_spec = pl.BlockSpec((1, be), lambda i: (0, i))
    table_spec = pl.BlockSpec((D, n_pad), lambda i: (0, 0))
    ts_spec = pl.BlockSpec((n_pad, 1), lambda i: (0, 0))
    col_spec = pl.BlockSpec((D, 1), lambda i: (0, 0))
    w_spec = pl.BlockSpec((D, D), lambda i: (0, 0))
    smem_spec = pl.BlockSpec(memory_space=pltpu.MemorySpace.SMEM)
    out_spec = pl.BlockSpec((1, be), lambda i: (0, i))

    # Advisory cost estimate (per full call).
    flops = int(e_pad) * (4 * D * n_pad + 8 * D * D + 12 * D)
    cost = pl.CostEstimate(
        flops=flops,
        transcendentals=int(e_pad) * 2 * D,
        bytes_accessed=int(e_pad) * 16 + D * n_pad * 4 + n_pad * 4)

    out = pl.pallas_call(
        _gtc_link_kernel,
        out_shape=jax.ShapeDtypeStruct((1, e_pad), jnp.float32),
        grid=grid,
        in_specs=[idx_spec, idx_spec, idx_spec,
                  table_spec, ts_spec,
                  col_spec, col_spec,
                  w_spec, w_spec, col_spec,
                  col_spec, col_spec, smem_spec],
        out_specs=out_spec,
        cost_estimate=cost,
        compiler_params=pltpu.CompilerParams(
            dimension_semantics=("parallel",),
            vmem_limit_bytes=48 * 1024 * 1024),
    )(src_p, dst_p, t_p, table, ts_col,
      freq_c, phase_c, w1a_t, w1b_t, b1_c, wfu_c, wfv_c, bf_s)

    return out[0, :E]                                        # .squeeze()


def init_params(key, in_feats):
    """Deterministic synthetic parameters matching the module's shapes.

    TimeEncodingLayer("cosine", in_feats -> in_feats):
      basis_freq: (D,) = linspace(0, 9, D), phase: (D,) = 0
      fc1: Linear(2*D, D)   (xavier-normal weight)
    fc: Linear(2*D, 1)
    """
    D = in_feats
    k1, k2, k3, k4 = jax.random.split(key, 4)
    freq = jnp.linspace(0.0, 9.0, D, dtype=jnp.float32)[None, :]     # (1, D)
    phase = jnp.zeros((1, D), jnp.float32)

    xav = (2.0 / (2 * D + D)) ** 0.5
    w1 = xav * jax.random.normal(k1, (2 * D, D), jnp.float32)        # [feat; phi] -> D
    b1 = 0.01 * jax.random.normal(k2, (1, D), jnp.float32)
    w1a, w1b = w1[:D], w1[D:]

    wfc = (1.0 / (2 * D) ** 0.5) * jax.random.normal(k3, (2 * D, 1), jnp.float32)
    bf = 0.01 * jax.random.normal(k4, (1, 1), jnp.float32)
    wfu, wfv = wfc[:D], wfc[D:]
    return (freq, phase, w1a, w1b, b1, wfu, wfv, bf)


def reference_forward(params, node_embeds, node_ts, src_idx, dst_idx, t):
    """Pure-JAX reference mirroring the PyTorch forward."""
    freq, phase, w1a, w1b, b1, wfu, wfv, bf = params
    w1 = jnp.concatenate([w1a, w1b], axis=0)
    wfc = jnp.concatenate([wfu, wfv], axis=0)

    def encode_time(feat, dt):
        phi = jnp.cos(dt[:, None] * freq + phase)
        x = jnp.concatenate([feat, phi], axis=1)
        return jax.nn.relu(x @ w1 + b1)

    eu = encode_time(node_embeds[src_idx], t - node_ts[src_idx])
    ev = encode_time(node_embeds[dst_idx], t - node_ts[dst_idx])
    x = jnp.concatenate([eu, ev], axis=1)
    return (x @ wfc + bf)[:, 0]


if __name__ == "__main__":
    N, D, E = 64, 32, 300   # nodes, in_feats, edges (E not a tile multiple on purpose)
    key = jax.random.PRNGKey(0)
    ks = jax.random.split(key, 6)

    node_embeds = jax.random.normal(ks[0], (N, D), jnp.float32)
    node_ts = jax.random.uniform(ks[1], (N,), jnp.float32, 0.0, 10.0)
    src_idx = jax.random.randint(ks[2], (E,), 0, N)
    dst_idx = jax.random.randint(ks[3], (E,), 0, N)
    t = jax.random.uniform(ks[4], (E,), jnp.float32, 5.0, 20.0)

    params = init_params(ks[5], D)

    out = gtc_link_forward(params, node_embeds, node_ts, src_idx, dst_idx, t)
    out = jax.block_until_ready(out)

    ref = reference_forward(params, node_embeds, node_ts, src_idx, dst_idx, t)
    assert out.shape == (E,)
    # Tolerance allows for MXU f32 multi-pass rounding in the fused one-hot
    # gather + W1 matmuls vs the XLA reference; any semantic bug is >> 2e-3.
    assert jnp.allclose(out, ref, atol=2e-3, rtol=2e-3), "mismatch vs reference"

    print("KERNEL_OK")
</pallas_src>

<mosaic_0001>
module attributes {stable_mosaic.version = 11 : i64} {
  func.func @_gtc_link_kernel(%arg0: i32, %arg1: memref<1x256xi32, #tpu.memory_space<vmem>>, %arg2: memref<1x256xi32, #tpu.memory_space<vmem>>, %arg3: memref<1x256xf32, #tpu.memory_space<vmem>>, %arg4: memref<32x64xf32, #tpu.memory_space<vmem>>, %arg5: memref<64x1xf32, #tpu.memory_space<vmem>>, %arg6: memref<32x1xf32, #tpu.memory_space<vmem>>, %arg7: memref<32x1xf32, #tpu.memory_space<vmem>>, %arg8: memref<32x32xf32, #tpu.memory_space<vmem>>, %arg9: memref<32x32xf32, #tpu.memory_space<vmem>>, %arg10: memref<32x1xf32, #tpu.memory_space<vmem>>, %arg11: memref<32x1xf32, #tpu.memory_space<vmem>>, %arg12: memref<32x1xf32, #tpu.memory_space<vmem>>, %arg13: memref<1x1xf32, #tpu.memory_space<smem>>, %arg14: memref<1x256xf32, #tpu.memory_space<vmem>>) attributes {dimension_semantics = [#tpu.dimension_semantics<parallel>], iteration_bounds = array<i64: 2>, scalar_prefetch = 0 : i64, scratch_operands = 0 : i64, tpu.core_type = #tpu.core_type<tc>, window_params = [{transform_indices = @transform_0, window_bounds = array<i64: 1, 256>}, {transform_indices = @transform_1, window_bounds = array<i64: 1, 256>}, {transform_indices = @transform_2, window_bounds = array<i64: 1, 256>}, {pipeline_mode = #tpu.pipeline_mode<synchronous>, transform_indices = @transform_3, window_bounds = array<i64: 32, 64>}, {pipeline_mode = #tpu.pipeline_mode<synchronous>, transform_indices = @transform_4, window_bounds = array<i64: 64, 1>}, {pipeline_mode = #tpu.pipeline_mode<synchronous>, transform_indices = @transform_5, window_bounds = array<i64: 32, 1>}, {pipeline_mode = #tpu.pipeline_mode<synchronous>, transform_indices = @transform_6, window_bounds = array<i64: 32, 1>}, {pipeline_mode = #tpu.pipeline_mode<synchronous>, transform_indices = @transform_7, window_bounds = array<i64: 32, 32>}, {pipeline_mode = #tpu.pipeline_mode<synchronous>, transform_indices = @transform_8, window_bounds = array<i64: 32, 32>}, {pipeline_mode = #tpu.pipeline_mode<synchronous>, transform_indices = @transform_9, window_bounds = array<i64: 32, 1>}, {pipeline_mode = #tpu.pipeline_mode<synchronous>, transform_indices = @transform_10, window_bounds = array<i64: 32, 1>}, {pipeline_mode = #tpu.pipeline_mode<synchronous>, transform_indices = @transform_11, window_bounds = array<i64: 32, 1>}, {transform_indices = @transform_12, window_bounds = array<i64: 1, 1>}, {transform_indices = @transform_13, window_bounds = array<i64: 1, 256>}]} {
    %c0 = arith.constant 0 : index
    %c0_0 = arith.constant 0 : index
    %0 = vector.load %arg4[%c0, %c0_0] : memref<32x64xf32, #tpu.memory_space<vmem>>, vector<32x64xf32>
    %c0_1 = arith.constant 0 : index
    %c0_2 = arith.constant 0 : index
    %1 = vector.load %arg5[%c0_1, %c0_2] : memref<64x1xf32, #tpu.memory_space<vmem>>, vector<64x1xf32>
    %c0_3 = arith.constant 0 : index
    %c0_4 = arith.constant 0 : index
    %2 = vector.load %arg3[%c0_3, %c0_4] : memref<1x256xf32, #tpu.memory_space<vmem>>, vector<1x256xf32>
    %c0_5 = arith.constant 0 : index
    %c0_6 = arith.constant 0 : index
    %3 = vector.load %arg6[%c0_5, %c0_6] : memref<32x1xf32, #tpu.memory_space<vmem>>, vector<32x1xf32>
    %c0_7 = arith.constant 0 : index
    %c0_8 = arith.constant 0 : index
    %4 = vector.load %arg7[%c0_7, %c0_8] : memref<32x1xf32, #tpu.memory_space<vmem>>, vector<32x1xf32>
    %c0_9 = arith.constant 0 : index
    %c0_10 = arith.constant 0 : index
    %5 = vector.load %arg8[%c0_9, %c0_10] : memref<32x32xf32, #tpu.memory_space<vmem>>, vector<32x32xf32>
    %c0_11 = arith.constant 0 : index
    %c0_12 = arith.constant 0 : index
    %6 = vector.load %arg9[%c0_11, %c0_12] : memref<32x32xf32, #tpu.memory_space<vmem>>, vector<32x32xf32>
    %c0_13 = arith.constant 0 : index
    %c0_14 = arith.constant 0 : index
    %7 = vector.load %arg10[%c0_13, %c0_14] : memref<32x1xf32, #tpu.memory_space<vmem>>, vector<32x1xf32>
    %8 = tpu.iota {dimensions = array<i32: 0>} : vector<64x256xi32>
    %c0_15 = arith.constant 0 : index
    %c0_16 = arith.constant 0 : index
    %9 = vector.load %arg1[%c0_15, %c0_16] : memref<1x256xi32, #tpu.memory_space<vmem>>, vector<1x256xi32>
    %10 = vector.broadcast %9 : vector<1x256xi32> to vector<64x256xi32>
    %11 = arith.cmpi eq, %8, %10 : vector<64x256xi32>
    %12 = arith.extui %11 : vector<64x256xi1> to vector<64x256xi32>
    %13 = arith.sitofp %12 : vector<64x256xi32> to vector<64x256xf32>
    %cst = arith.constant dense<0.000000e+00> : vector<32x256xf32>
    %14 = tpu.matmul %0, %13, %cst {dimension_numbers = #tpu.dot_dimension_numbers<[1], [0], [0], [1], [0, 0, 1, 1], [], []>} : vector<32x64xf32>, vector<64x256xf32>, vector<32x256xf32> -> vector<32x256xf32>
    %15 = vector.broadcast %1 : vector<64x1xf32> to vector<64x256xf32>
    %16 = arith.mulf %15, %13 : vector<64x256xf32>
    %cst_17 = arith.constant dense<0.000000e+00> : vector<256xf32>
    %17 = vector.multi_reduction <add>, %16, %cst_17 [0] : vector<64x256xf32> to vector<256xf32>
    %18 = vector.shape_cast %17 : vector<256xf32> to vector<1x256xf32>
    %19 = arith.subf %2, %18 : vector<1x256xf32>
    %20 = vector.broadcast %19 : vector<1x256xf32> to vector<32x256xf32>
    %21 = vector.broadcast %3 : vector<32x1xf32> to vector<32x256xf32>
    %22 = arith.mulf %20, %21 : vector<32x256xf32>
    %23 = vector.broadcast %4 : vector<32x1xf32> to vector<32x256xf32>
    %24 = arith.addf %22, %23 : vector<32x256xf32>
    %25 = math.cos %24 : vector<32x256xf32>
    %cst_18 = arith.constant dense<0.000000e+00> : vector<32x256xf32>
    %26 = tpu.matmul %5, %14, %cst_18 {dimension_numbers = #tpu.dot_dimension_numbers<[1], [0], [0], [1], [0, 0, 1, 1], [], []>} : vector<32x32xf32>, vector<32x256xf32>, vector<32x256xf32> -> vector<32x256xf32>
    %cst_19 = arith.constant dense<0.000000e+00> : vector<32x256xf32>
    %27 = tpu.matmul %6, %25, %cst_19 {dimension_numbers = #tpu.dot_dimension_numbers<[1], [0], [0], [1], [0, 0, 1, 1], [], []>} : vector<32x32xf32>, vector<32x256xf32>, vector<32x256xf32> -> vector<32x256xf32>
    %28 = arith.addf %26, %27 : vector<32x256xf32>
    %29 = vector.broadcast %7 : vector<32x1xf32> to vector<32x256xf32>
    %30 = arith.addf %28, %29 : vector<32x256xf32>
    %cst_20 = arith.constant 0.000000e+00 : f32
    %31 = vector.broadcast %cst_20 : f32 to vector<32x256xf32>
    %32 = arith.maximumf %30, %31 : vector<32x256xf32>
    %c0_21 = arith.constant 0 : index
    %c0_22 = arith.constant 0 : index
    %33 = vector.load %arg2[%c0_21, %c0_22] : memref<1x256xi32, #tpu.memory_space<vmem>>, vector<1x256xi32>
    %34 = vector.broadcast %33 : vector<1x256xi32> to vector<64x256xi32>
    %35 = arith.cmpi eq, %8, %34 : vector<64x256xi32>
    %36 = arith.extui %35 : vector<64x256xi1> to vector<64x256xi32>
    %37 = arith.sitofp %36 : vector<64x256xi32> to vector<64x256xf32>
    %cst_23 = arith.constant dense<0.000000e+00> : vector<32x256xf32>
    %38 = tpu.matmul %0, %37, %cst_23 {dimension_numbers = #tpu.dot_dimension_numbers<[1], [0], [0], [1], [0, 0, 1, 1], [], []>} : vector<32x64xf32>, vector<64x256xf32>, vector<32x256xf32> -> vector<32x256xf32>
    %39 = vector.broadcast %1 : vector<64x1xf32> to vector<64x256xf32>
    %40 = arith.mulf %39, %37 : vector<64x256xf32>
    %cst_24 = arith.constant dense<0.000000e+00> : vector<256xf32>
    %41 = vector.multi_reduction <add>, %40, %cst_24 [0] : vector<64x256xf32> to vector<256xf32>
    %42 = vector.shape_cast %41 : vector<256xf32> to vector<1x256xf32>
    %43 = arith.subf %2, %42 : vector<1x256xf32>
    %44 = vector.broadcast %43 : vector<1x256xf32> to vector<32x256xf32>
    %45 = vector.broadcast %3 : vector<32x1xf32> to vector<32x256xf32>
    %46 = arith.mulf %44, %45 : vector<32x256xf32>
    %47 = vector.broadcast %4 : vector<32x1xf32> to vector<32x256xf32>
    %48 = arith.addf %46, %47 : vector<32x256xf32>
    %49 = math.cos %48 : vector<32x256xf32>
    %cst_25 = arith.constant dense<0.000000e+00> : vector<32x256xf32>
    %50 = tpu.matmul %5, %38, %cst_25 {dimension_numbers = #tpu.dot_dimension_numbers<[1], [0], [0], [1], [0, 0, 1, 1], [], []>} : vector<32x32xf32>, vector<32x256xf32>, vector<32x256xf32> -> vector<32x256xf32>
    %cst_26 = arith.constant dense<0.000000e+00> : vector<32x256xf32>
    %51 = tpu.matmul %6, %49, %cst_26 {dimension_numbers = #tpu.dot_dimension_numbers<[1], [0], [0], [1], [0, 0, 1, 1], [], []>} : vector<32x32xf32>, vector<32x256xf32>, vector<32x256xf32> -> vector<32x256xf32>
    %52 = arith.addf %50, %51 : vector<32x256xf32>
    %53 = vector.broadcast %7 : vector<32x1xf32> to vector<32x256xf32>
    %54 = arith.addf %52, %53 : vector<32x256xf32>
    %cst_27 = arith.constant 0.000000e+00 : f32
    %55 = vector.broadcast %cst_27 : f32 to vector<32x256xf32>
    %56 = arith.maximumf %54, %55 : vector<32x256xf32>
    %c0_28 = arith.constant 0 : index
    %c0_29 = arith.constant 0 : index
    %57 = vector.load %arg11[%c0_28, %c0_29] : memref<32x1xf32, #tpu.memory_space<vmem>>, vector<32x1xf32>
    %58 = vector.broadcast %57 : vector<32x1xf32> to vector<32x256xf32>
    %59 = arith.mulf %32, %58 : vector<32x256xf32>
    %c0_30 = arith.constant 0 : index
    %c0_31 = arith.constant 0 : index
    %60 = vector.load %arg12[%c0_30, %c0_31] : memref<32x1xf32, #tpu.memory_space<vmem>>, vector<32x1xf32>
    %61 = vector.broadcast %60 : vector<32x1xf32> to vector<32x256xf32>
    %62 = arith.mulf %56, %61 : vector<32x256xf32>
    %63 = arith.addf %59, %62 : vector<32x256xf32>
    %cst_32 = arith.constant dense<0.000000e+00> : vector<256xf32>
    %64 = vector.multi_reduction <add>, %63, %cst_32 [0] : vector<32x256xf32> to vector<256xf32>
    %65 = vector.shape_cast %64 : vector<256xf32> to vector<1x256xf32>
    %c0_33 = arith.constant 0 : index
    %c0_34 = arith.constant 0 : index
    %66 = memref.load %arg13[%c0_33, %c0_34] : memref<1x1xf32, #tpu.memory_space<smem>>
    %67 = vector.broadcast %66 : f32 to vector<1x256xf32>
    %68 = arith.addf %65, %67 : vector<1x256xf32>
    %c0_35 = arith.constant 0 : index
    %c0_36 = arith.constant 0 : index
    %69 = vector.load %arg14[%c0_35, %c0_36] : memref<1x256xf32, #tpu.memory_space<vmem>>, vector<1x256xf32>
    tpu.vector_store %arg14[%c0_35, %c0_36], %68 {strides = array<i32>} : memref<1x256xf32, #tpu.memory_space<vmem>>, vector<1x256xf32>,
    return
  }
  func.func @transform_0(%arg0: i32) -> (i32, i32) {
    %c0_i32 = arith.constant 0 : i32
    %c0_i32_0 = arith.constant 0 : i32
    return %c0_i32, %arg0 : i32, i32
  }
  func.func @transform_1(%arg0: i32) -> (i32, i32) {
    %c0_i32 = arith.constant 0 : i32
    %c0_i32_0 = arith.constant 0 : i32
    return %c0_i32, %arg0 : i32, i32
  }
  func.func @transform_2(%arg0: i32) -> (i32, i32) {
    %c0_i32 = arith.constant 0 : i32
    %c0_i32_0 = arith.constant 0 : i32
    return %c0_i32, %arg0 : i32, i32
  }
  func.func @transform_3(%arg0: i32) -> (i32, i32) {
    %c0_i32 = arith.constant 0 : i32
    %c0_i32_0 = arith.constant 0 : i32
    %c0_i32_1 = arith.constant 0 : i32
    return %c0_i32, %c0_i32_0 : i32, i32
  }
  func.func @transform_4(%arg0: i32) -> (i32, i32) {
    %c0_i32 = arith.constant 0 : i32
    %c0_i32_0 = arith.constant 0 : i32
    %c0_i32_1 = arith.constant 0 : i32
    return %c0_i32, %c0_i32_0 : i32, i32
  }
  func.func @transform_5(%arg0: i32) -> (i32, i32) {
    %c0_i32 = arith.constant 0 : i32
    %c0_i32_0 = arith.constant 0 : i32
    %c0_i32_1 = arith.constant 0 : i32
    return %c0_i32, %c0_i32_0 : i32, i32
  }
  func.func @transform_6(%arg0: i32) -> (i32, i32) {
    %c0_i32 = arith.constant 0 : i32
    %c0_i32_0 = arith.constant 0 : i32
    %c0_i32_1 = arith.constant 0 : i32
    return %c0_i32, %c0_i32_0 : i32, i32
  }
  func.func @transform_7(%arg0: i32) -> (i32, i32) {
    %c0_i32 = arith.constant 0 : i32
    %c0_i32_0 = arith.constant 0 : i32
    %c0_i32_1 = arith.constant 0 : i32
    return %c0_i32, %c0_i32_0 : i32, i32
  }
  func.func @transform_8(%arg0: i32) -> (i32, i32) {
    %c0_i32 = arith.constant 0 : i32
    %c0_i32_0 = arith.constant 0 : i32
    %c0_i32_1 = arith.constant 0 : i32
    return %c0_i32, %c0_i32_0 : i32, i32
  }
  func.func @transform_9(%arg0: i32) -> (i32, i32) {
    %c0_i32 = arith.constant 0 : i32
    %c0_i32_0 = arith.constant 0 : i32
    %c0_i32_1 = arith.constant 0 : i32
    return %c0_i32, %c0_i32_0 : i32, i32
  }
  func.func @transform_10(%arg0: i32) -> (i32, i32) {
    %c0_i32 = arith.constant 0 : i32
    %c0_i32_0 = arith.constant 0 : i32
    %c0_i32_1 = arith.constant 0 : i32
    return %c0_i32, %c0_i32_0 : i32, i32
  }
  func.func @transform_11(%arg0: i32) -> (i32, i32) {
    %c0_i32 = arith.constant 0 : i32
    %c0_i32_0 = arith.constant 0 : i32
    %c0_i32_1 = arith.constant 0 : i32
    return %c0_i32, %c0_i32_0 : i32, i32
  }
  func.func @transform_12(%arg0: i32) -> (i32, i32) {
    %c0_i32 = arith.constant 0 : i32
    %c0_i32_0 = arith.constant 0 : i32
    %c0_i32_1 = arith.constant 0 : i32
    return %c0_i32, %c0_i32_0 : i32, i32
  }
  func.func @transform_13(%arg0: i32) -> (i32, i32) {
    %c0_i32 = arith.constant 0 : i32
    %c0_i32_0 = arith.constant 0 : i32
    return %c0_i32, %arg0 : i32, i32
  }
}

</mosaic_0001>

<bundles_post_ra>
// kernel: tpu_custom_call.1
= control target key start
LH: loop header
LB: loop body
LE: loop exit
PB: predicated region body
PF: predicated region fallthrough
CT: control target
= control target key end

     0   :  { %s6590_s0 = inlined_call_operand.vmem [shape: s32[1,512], index: 0, kind: input, shape index: {}]   ;;  %s6591_s1 = inlined_call_operand.vmem [shape: s32[1,512], index: 1, kind: input, shape index: {}]   ;;  %s6592_s2 = inlined_call_operand.vmem [shape: f32[1,512], index: 2, kind: input, shape index: {}]   ;;  %s6593_s3 = inlined_call_operand.vmem [shape: f32[32,64], index: 3, kind: input, shape index: {}]   ;;  %s6594_s4 = inlined_call_operand.vmem [shape: f32[64,1], index: 4, kind: input, shape index: {}]   ;;  %s6595_s5 = inlined_call_operand.vmem [shape: f32[32,1], index: 5, kind: input, shape index: {}]   ;;  %s6596_s6 = inlined_call_operand.vmem [shape: f32[32,1], index: 6, kind: input, shape index: {}]   ;;  %s6597_s7 = inlined_call_operand.vmem [shape: f32[32,32], index: 7, kind: input, shape index: {}]   ;;  %s6598_s8 = inlined_call_operand.vmem [shape: f32[32,32], index: 8, kind: input, shape index: {}]   ;;  %s6599_s9 = inlined_call_operand.vmem [shape: f32[32,1], index: 9, kind: input, shape index: {}]   ;;  %s6600_s10 = inlined_call_operand.vmem [shape: f32[32,1], index: 10, kind: input, shape index: {}]   ;;  %s6601_s11 = inlined_call_operand.vmem [shape: f32[32,1], index: 11, kind: input, shape index: {}]   ;;  %s6602_s12 = inlined_call_operand.<no memory space> [shape: f32[1,1], index: 12, kind: input, shape index: {}]   ;;  %s6603_s13 = inlined_call_operand.hbm [shape: f32[1,512], index: 13, kind: output, shape index: {}]  }
   0x1   :  { %6706 = sst [smem:[#allocation43_spill]] %s6590_s0 }
   0x2   :  { %6707 = sst [smem:[#allocation44_spill]] %s6591_s1 }
   0x3   :  { %18 = sst [smem:[#allocation2]] %s6602_s12 }
   0x4   :  { %19 = vsyncpa [#allocation4], 0 }
   0x5   :  { %21 = vsyncpa [#allocation4 + $0x1], 0  ;;  %s3945_s27 = smov 0   ;;  %s3947_s28 = smov 0  }
   0x6   :  { %s3949_s29 = smov 0   ;;  %s3951_s30 = smov 0  }
   0x7 LB: > { %s3966_s12 = sadd.s32 4294967295, %s3859_s30   ;;  %s3368_s14 = sadd.s32 4294967294, %s3859_s30   ;;  %s3859_s30 = sphi %s3951_s30, %s6887_s30   ;;  %s3855_s29 = sphi %s3949_s29, %s6886_s29   ;;  %s3851_s28 = sphi %s3947_s28, %s6885_s28   ;;  %s3847_s27 = sphi %s3945_s27, %s6884_s27  }
   0x8   : > { %s3970_s15 = sadd.s32 1, %s3859_s30   ;;  %s322_s16 = sadd.s32 1, %s3855_s29 }
   0x9   : > { %s319_s17 = ssub.s32 %s3859_s30, %s3970_s15  ;;  %p332_p0 = scmp.ne.s32.totalorder %s3855_s29, %s3851_s28 }
   0xa   : > { %p320_p1 = scmp.eq.s32.totalorder %s319_s17, 0  ;;  %p333_p2 = scmp.eq.s32.totalorder %s3966_s12, 1 }
   0xb   : > { %p338_p3 = scmp.ne.s32.totalorder %s3851_s28, %s3847_s27  ;;  %p339_p4 = scmp.eq.s32.totalorder %s3368_s14, 1 }
   0xc   : > { %s3981_s18 = scalar_select %p320_p1, %s3855_s29, %s322_s16  }
   0xd   : > { %p3983_p5 = por %p333_p2, %p332_p0  ;;  %p3987_p6 = por %p339_p4, %p338_p3 }
   0xe   : > { %p3371_p7 = scmp.ge.s32.totalorder %s3859_s30, 1  ;;  %p411_p8 = scmp.lt.s32.totalorder %s3859_s30, 3 }
  0x10   : > { %p412_p9 = pnand %p3371_p7, %p411_p8 }
  0x12   : > { %415 = sbr.rel (%p412_p9) target bundleno = 911 (0x38f), region = 72 }
  0x19   : > { %v484_v0 = vld [vmem:[%s6594_s4 + $0x10] sm:$0xff]  ;;  %v482_v1 = vld [vmem:[%s6594_s4] sm:$0xff]  ;;  %s3373_s25 = sshll.u32 %s3966_s12, 1  ;;  %v6624_v2 = vlaneseq  ;;  %v3861_v3 = vmov 0   ;;  %v485_v5 = vld [vmem:[%s6594_s4 + $0x18] sm:$0xff]  ;;  %v6625_v7 = vmov 0.0  }
  0x1a   : > { %3732 = vset.pattern.permute.xlu1 %v3861_v3  ;;  %3731 = vset.pattern.permute.xlu0 %v3861_v3  ;;  %p463_p10 = scmp.lt.s32.totalorder %s3373_s25, 3  ;;  %v483_v6 = vld [vmem:[%s6594_s4 + $0x8] sm:$0xff]  ;;  %s6710_s0 = sld [smem:[#allocation43_spill]]  ;;  %v486_v13 = vld [vmem:[%s6594_s4 + $0x20] sm:$0xff]  ;;  %v489_v22 = vld [vmem:[%s6594_s4 + $0x38] sm:$0xff] }
  0x1b   : > { %691 = vperm.xlu1 %3732, %v484_v0   ;;  %681 = vperm.xlu0 %3731, %v482_v1   ;;  %v4001_v4 = vshrl.u32 %v6624_v2, 7  ;;  %v487_v12 = vld [vmem:[%s6594_s4 + $0x28] sm:$0xff]  ;;  %v488_v23 = vld [vmem:[%s6594_s4 + $0x30] sm:$0xff]  ;;  %v3863_v24 = vmov 1.0|1.0   ;;  %s6711_s1 = sld [smem:[#allocation44_spill]] }
  0x1c   : > { %s6889_s25 = smov (!%p463_p10, %s3373_s25), 3  ;;  %654 = vmatprep.mubr.f32.mxu0 %v6625_v7  ;;  %1748 = vmatprep.mubr.f32.mxu1 %v6625_v7  ;;  %v492_v26 = vld [vmem:[%s6595_s5 + $0x8] sm:$0xff]  ;;  %v491_v27 = vld [vmem:[%s6595_s5] sm:$0xff]  ;;  %v494_v32 = vld [vmem:[%s6595_s5 + $0x18] sm:$0xff]  ;;  %s3252_s17 = sld [smem:[#allocation2]] }
  0x1d   : > { %v4014_v8 = vsub.s32 1, %v4001_v4  ;;  %v4017_v9 = vsub.s32 0, %v4001_v4  ;;  %v4024_v10 = vadd.s32 8, %v4001_v4  ;;  %v4039_v16 = vadd.s32 16, %v4001_v4  ;;  %v496_v30 = vld [vmem:[%s6596_s6 + $0x8] sm:$0xff]  ;;  %v495_v31 = vld [vmem:[%s6596_s6] sm:$0xff]  ;;  %s475_s21 = scalar_lea.vmem %s6592_s2, %s6889_s25 }
  0x1e   : > { %v4042_v17 = vadd.s32 24, %v4001_v4  ;;  %v4045_v18 = vadd.s32 32, %v4001_v4  ;;  %v4048_v19 = vadd.s32 40, %v4001_v4  ;;  %v4065_v20 = vadd.s32 48, %v4001_v4  ;;  %v493_v33 = vld [vmem:[%s6595_s5 + $0x10] sm:$0xff]  ;;  %v478_v34 = vld [vmem:[%s6593_s3] sm:$0xff] }
  0x1f   : > { %696 = vperm.xlu1 %3732, %v485_v5   ;;  %686 = vperm.xlu0 %3731, %v483_v6   ;;  %v4068_v21 = vadd.s32 56, %v4001_v4  ;;  %v498_v35 = vld [vmem:[%s6596_s6 + $0x18] sm:$0xff]  ;;  %v497_v36 = vld [vmem:[%s6596_s6 + $0x10] sm:$0xff]  ;;  %v479_v37 = vld [vmem:[%s6593_s3 + $0x8] sm:$0xff]  ;;  %s3533_s22 = sshll.u32 %s3966_s12, 5 }
  0x20   : > { %s465_s23 = scalar_lea.vmem %s6710_s0, %s6889_s25  ;;  %v508_v38 = vld [vmem:[%s6599_s9 + $0x8] sm:$0xff]  ;;  %v507_v39 = vld [vmem:[%s6599_s9] sm:$0xff]  ;;  %v480_v40 = vld [vmem:[%s6593_s3 + $0x10] sm:$0xff]  ;;  %s6548_s16 = scalar_lea.hbm %s6603_s13, %s3533_s22 }
  0x21   : > { %v520_v11 = vld [vmem:[%s465_s23] sm:$0x3]  ;;  %s470_s14 = scalar_lea.vmem %s6711_s1, %s6889_s25  ;;  %v510_v41 = vld [vmem:[%s6599_s9 + $0x18] sm:$0xff]  ;;  %v509_v42 = vld [vmem:[%s6599_s9 + $0x10] sm:$0xff] }
  0x22   : > { %v4033_v14 = vrot.slane %v520_v11, %v4014_v8  ;;  %v4036_v15 = vrot.slane %v520_v11, %v4017_v9  ;;  %v1910_v25 = vld [vmem:[%s470_s14] sm:$0x3]  ;;  %v481_v43 = vld [vmem:[%s6593_s3 + $0x18] sm:$0xff]  ;;  %v3163_v44 = vld [vmem:[%s6600_s10 + $0x8] sm:$0xff] }
  0x23   : > { %706 = vperm.xlu1 %3732, %v487_v12   ;;  %701 = vperm.xlu0 %3731, %v486_v13   ;;  %v4142_v28 = vrot.slane %v1910_v25, %v4014_v8  ;;  %v4155_v29 = vrot.slane %v1910_v25, %v4017_v9  ;;  %v3162_v45 = vld [vmem:[%s6600_s10] sm:$0xff]  ;;  %v3195_v46 = vld [vmem:[%s6601_s11 + $0x8] sm:$0xff]  ;;  %v3196_v48 = vld [vmem:[%s6601_s11 + $0x10] sm:$0xff] }
  0x24   : > { %vm530_vm0 = vcmp.eq.s32.totalorder %v4001_v4, %v4033_v14  ;;  %vm532_vm1 = vcmp.eq.s32.totalorder %v4024_v10, %v4033_v14  ;;  %vm529_vm2 = vcmp.eq.s32.totalorder %v4001_v4, %v4036_v15  ;;  %vm531_vm3 = vcmp.eq.s32.totalorder %v4024_v10, %v4036_v15  ;;  %v3194_v47 = vld [vmem:[%s6601_s11] sm:$0xff]  ;;  %v3164_v49 = vld [vmem:[%s6600_s10 + $0x10] sm:$0xff]  ;;  %v3197_v50 = vld [vmem:[%s6601_s11 + $0x18] sm:$0xff] }
  0x25   : > { %vm3534_vm4 = vmpackc.low %vm532_vm1, %vm530_vm0  ;;  %vm534_vm6 = vcmp.eq.s32.totalorder %v4039_v16, %v4033_v14  ;;  %vm536_vm7 = vcmp.eq.s32.totalorder %v4042_v17, %v4033_v14  ;;  %vm533_vm8 = vcmp.eq.s32.totalorder %v4039_v16, %v4036_v15  ;;  %vm6614_vm9 = vcmp.eq.s32.totalorder %v4042_v17, %v4036_v15  ;;  %v3165_v51 = vld [vmem:[%s6600_s10 + $0x18] sm:$0xff] }
  0x26   : > { %3535 = vmatprep.subr.msk.bf16.mxu0 %vm3534_vm4, %v3863_v24  ;;  %vm3536_vm5 = vmpackc.low %vm531_vm3, %vm529_vm2  ;;  %vm6605_vm12 = vcmp.eq.s32.totalorder %v4045_v18, %v4033_v14  ;;  %vm6604_vm13 = vcmp.eq.s32.totalorder %v4048_v19, %v4033_v14  ;;  %vm6609_vm15 = vcmp.eq.s32.totalorder %v4045_v18, %v4036_v15  ;;  %vm6608_vm4 = vcmp.eq.s32.totalorder %v4048_v19, %v4036_v15 }
  0x27   : > { %3537 = vmatpush1.bf16.msk.msra.mxu0 %vm3536_vm5, %v3863_v24  ;;  %vm3538_vm10 = vmpackc.low %vm536_vm7, %vm534_vm6  ;;  %716 = vperm.xlu1 %3732, %v489_v22   ;;  %vm6607_vm5 = vcmp.eq.s32.totalorder %v4065_v20, %v4033_v14  ;;  %v3377_v52 = vsel %vm530_vm0, 1.0, %v6625_v7  ;;  %v3379_v53 = vsel %vm532_vm1, 1.0, %v6625_v7  ;;  %v3376_v54 = vsel %vm529_vm2, 1.0, %v6625_v7 }
  0x28   : > { %3539 = vmatprep.subr.msk.bf16.mxu0 %vm3538_vm10, %v3863_v24  ;;  %vm3540_vm11 = vmpackc.low %vm6614_vm9, %vm533_vm8  ;;  %711 = vperm.xlu0 %3731, %v488_v23   ;;  %vm6606_vm10 = vcmp.eq.s32.totalorder %v4068_v21, %v4033_v14  ;;  %vm6622_vm9 = vcmp.eq.s32.totalorder %v4039_v16, %v4155_v29  ;;  %v3378_v55 = vsel %vm531_vm3, 1.0, %v6625_v7  ;;  %v3381_v56 = vsel %vm534_vm6, 1.0, %v6625_v7 }
  0x29   : > { %vm3542_vm14 = vmpackc.low %vm6604_vm13, %vm6605_vm12  ;;  %vm6610_vm12 = vcmp.eq.s32.totalorder %v4068_v21, %v4036_v15  ;;  %v3383_v57 = vsel %vm536_vm7, 1.0, %v6625_v7  ;;  %v3380_v58 = vsel %vm533_vm8, 1.0, %v6625_v7  ;;  %vm6712_vm0 = vcmp.eq.s32.totalorder %v4042_v17, %v4036_v15 }
  0x2a   : > { %vm3544_vm13 = vmpackc.low %vm6608_vm4, %vm6609_vm15  ;;  %v3382_v59 = vsel %vm6712_vm0, 1.0, %v6625_v7  ;;  %vm6713_vm1 = vcmp.eq.s32.totalorder %v4039_v16, %v4142_v28  ;;  %vm6714_vm2 = vcmp.eq.s32.totalorder %v4039_v16, %v4155_v29  ;;  %vm6715_vm3 = vcmp.eq.s32.totalorder %v4045_v18, %v4033_v14 }
  0x2b   : > { %3541 = vmatpush1.bf16.msk.msra.mxu0 %vm3540_vm11, %v3863_v24  ;;  %798 = vperm.xlu1 %3732, %v492_v26   ;;  %vm3546_vm11 = vmpackc.low %vm6606_vm10, %vm6607_vm5  ;;  %vm6613_vm10 = vcmp.eq.s32.totalorder %v4001_v4, %v4142_v28  ;;  %vm6611_vm5 = vcmp.eq.s32.totalorder %v4024_v10, %v4142_v28  ;;  %v3457_v60 = vsel %vm6713_vm1, 1.0, %v6625_v7  ;;  %v3456_v61 = vsel %vm6714_vm2, 1.0, %v6625_v7 }
  0x2c   : > { %3543 = vmatprep.subr.msk.bf16.mxu0 %vm3542_vm14, %v3863_v24  ;;  %793 = vperm.xlu0 %3731, %v491_v27   ;;  %vm6612_vm14 = vcmp.eq.s32.totalorder %v4065_v20, %v4036_v15  ;;  %vm3566_vm15 = vmpackc.low %vm6611_vm5, %vm6613_vm10  ;;  %vm6616_vm5 = vcmp.eq.s32.totalorder %v4042_v17, %v4142_v28  ;;  %v3385_v62 = vsel %vm6715_vm3, 1.0, %v6625_v7  ;;  %vm6716_vm6 = vcmp.eq.s32.totalorder %v4048_v19, %v4033_v14 }
  0x2d   : > { %vm3548_vm4 = vmpackc.low %vm6610_vm12, %vm6612_vm14  ;;  %vm6618_vm12 = vcmp.eq.s32.totalorder %v4039_v16, %v4142_v28  ;;  %vm577_vm14 = vcmask 523264   ;;  %v4384_v63 = vsel %vm6716_vm6, 1.0, %v6625_v7  ;;  %vm6717_vm7 = vcmp.eq.s32.totalorder %v4001_v4, %v4142_v28 }
  0x2e   : > { %v3453_v0 = vsel %vm6717_vm7, 1.0, %v6625_v7  ;;  %vm6718_vm8 = vcmp.eq.s32.totalorder %v4001_v4, %v4155_v29  ;;  %vm6723_vm0 = vcmp.eq.s32.totalorder %v4065_v20, %v4036_v15  ;;  %vm6724_vm1 = vcmp.eq.s32.totalorder %v4068_v21, %v4036_v15 }
  0x2f   : > { %3545 = vmatpush1.bf16.msk.msra.mxu0 %vm3544_vm13, %v3863_v24  ;;  %826 = vperm.xlu1 %3732, %v496_v30   ;;  %vm6617_vm13 = vcmp.eq.s32.totalorder %v4001_v4, %v4155_v29  ;;  %v3452_v1 = vsel %vm6718_vm8, 1.0, %v6625_v7  ;;  %v3388_v16 = vsel %vm6723_vm0, 1.0, %v6625_v7  ;;  %v4422_v22 = vsel %vm6724_vm1, 1.0, %v6625_v7 }
  0x30   : > { %3547 = vmatprep.subr.msk.bf16.mxu0 %vm3546_vm11, %v3863_v24  ;;  %821 = vperm.xlu0 %3731, %v495_v31   ;;  %vm6615_vm11 = vcmp.eq.s32.totalorder %v4024_v10, %v4155_v29  ;;  %vm6725_vm2 = vcmp.eq.s32.totalorder %v4042_v17, %v4142_v28  ;;  %vm6726_vm3 = vcmp.eq.s32.totalorder %v4042_v17, %v4155_v29 }
  0x31   : > { %vm3568_vm10 = vmpackc.low %vm6615_vm11, %vm6617_vm13  ;;  %vm6621_vm11 = vcmp.eq.s32.totalorder %v4045_v18, %v4142_v28  ;;  %v3458_v27 = vsel %vm6726_vm3, 1.0, %v6625_v7  ;;  %vm6727_vm6 = vcmp.eq.s32.totalorder %v4024_v10, %v4142_v28  ;;  %vm6728_vm7 = vcmp.eq.s32.totalorder %v4045_v18, %v4142_v28 }
  0x32   : > { %v3461_v30 = vsel %vm6728_vm7, 1.0, %v6625_v7  ;;  %vm6729_vm8 = vcmp.eq.s32.totalorder %v4048_v19, %v4142_v28 }
  0x33   : > { %3549 = vmatpush1.bf16.msk.msra.mxu0 %vm3548_vm4, %v3863_v24  ;;  %808 = vperm.xlu1 %3732, %v494_v32   ;;  %vm3570_vm4 = vmpackc.low %vm6616_vm5, %vm6618_vm12  ;;  %vm6620_vm5 = vcmp.eq.s32.totalorder %v4048_v19, %v4142_v28  ;;  %v3463_v31 = vsel %vm6729_vm8, 1.0, %v6625_v7 }
  0x34   : > { %3567 = vmatprep.subr.msk.bf16.mxu0 %vm3566_vm15, %v3863_v24  ;;  %803 = vperm.xlu0 %3731, %v493_v33   ;;  %vm6619_vm15 = vcmp.eq.s32.totalorder %v4042_v17, %v4155_v29  ;;  %vm3574_vm12 = vmpackc.low %vm6620_vm5, %vm6621_vm11  ;;  %vm1934_vm5 = vcmp.eq.s32.totalorder %v4068_v21, %v4142_v28 }
  0x35   : > { %vm3572_vm13 = vmpackc.low %vm6619_vm15, %vm6622_vm9  ;;  %vm1932_vm15 = vcmp.eq.s32.totalorder %v4065_v20, %v4142_v28  ;;  %v3467_v33 = vsel %vm1934_vm5, 1.0, %v6625_v7 }
  0x36   : > { %3408 = vmatmul.mubr.msk.f32.vlgmr.msra.gmra.mrb[0].mxu0 %vm577_vm14, %v478_v34  ;;  %vm3578_vm9 = vmpackc.low %vm1934_vm5, %vm1932_vm15  ;;  %v3465_v32 = vsel %vm1932_vm15, 1.0, %v6625_v7 }
  0x37   : > { %660 = vmatprep.mubr.f32.mxu0 %v6625_v7  ;;  %3569 = vmatpush1.bf16.msk.msra.mxu0 %vm3568_vm10, %v3863_v24  ;;  %vm6623_vm10 = vcmp.eq.s32.totalorder %v4045_v18, %v4155_v29 }
  0x38   : > { %3571 = vmatprep.subr.msk.bf16.mxu0 %vm3570_vm4, %v3863_v24  ;;  %836 = vperm.xlu1 %3732, %v498_v35   ;;  %vm1929_vm4 = vcmp.eq.s32.totalorder %v4048_v19, %v4155_v29 }
  0x39   : > { %831 = vperm.xlu0 %3731, %v497_v36   ;;  %vm3576_vm11 = vmpackc.low %vm1929_vm4, %vm6623_vm10  ;;  %v3462_v36 = vsel %vm1929_vm4, 1.0, %v6625_v7 }
  0x3a   : > { %3409 = vmatmul.mubr.msk.f32.gmra.mrb[2].mxu0 %vm577_vm14, %v479_v37 }
  0x3b   : > { %666 = vmatprep.mubr.f32.mxu0 %v6625_v7  ;;  %3573 = vmatpush1.bf16.msk.msra.mxu0 %vm3572_vm13, %v3863_v24  ;;  %vm1931_vm13 = vcmp.eq.s32.totalorder %v4065_v20, %v4155_v29 }
  0x3c   : > { %3575 = vmatprep.subr.msk.bf16.mxu0 %vm3574_vm12, %v3863_v24  ;;  %1881 = vperm.xlu1 %3732, %v508_v38   ;;  %vm1933_vm12 = vcmp.eq.s32.totalorder %v4068_v21, %v4155_v29 }
  0x3d   : > { %1876 = vperm.xlu0 %3731, %v507_v39   ;;  %vm3580_vm10 = vmpackc.low %vm1933_vm12, %vm1931_vm13 }
  0x3e   : > { %3410 = vmatmul.mubr.msk.f32.gmra.mrb[4].mxu0 %vm577_vm14, %v480_v40 }
  0x3f   : > { %672 = vmatprep.mubr.f32.mxu0 %v6625_v7  ;;  %3577 = vmatpush1.bf16.msk.msra.mxu0 %vm3576_vm11, %v3863_v24  ;;  %vm6721_vm11 = vcmp.eq.s32.totalorder %v4065_v20, %v4033_v14 }
  0x40   : > { %3579 = vmatprep.subr.msk.bf16.mxu0 %vm3578_vm9, %v3863_v24  ;;  %1891 = vperm.xlu1 %3732, %v510_v41   ;;  %vm6719_vm9 = vcmp.eq.s32.totalorder %v4045_v18, %v4036_v15  ;;  %v4406_v6 = vsel %vm6721_vm11, 1.0, %v6625_v7 }
  0x41   : > { %1886 = vperm.xlu0 %3731, %v509_v42   ;;  %v3384_v3 = vsel %vm6719_vm9, 1.0, %v6625_v7  ;;  %vm6730_vm9 = vcmp.eq.s32.totalorder %v4024_v10, %v4155_v29 }
  0x42   : > { %3411 = vmatmul.mubr.msk.f32.gmra.mrb[6].mxu0 %vm577_vm14, %v481_v43  ;;  %v3454_v17 = vsel %vm6730_vm9, 1.0, %v6625_v7 }
  0x43   : > { %3581 = vmatpush1.bf16.msk.msra.mxu0 %vm3580_vm10, %v3863_v24  ;;  %2031 = vmatprep.mubr.f32.mxu0 %v6625_v7  ;;  %vm6722_vm10 = vcmp.eq.s32.totalorder %v4068_v21, %v4033_v14  ;;  %v3459_v14 = vsel %vm6725_vm2, 1.0, %v6625_v7 }
  0x44   : > { %3173 = vperm.xlu1 %3732, %v3163_v44   ;;  %v4412_v11 = vsel %vm6722_vm10, 1.0, %v6625_v7 }
  0x45   : > { %3168 = vperm.xlu0 %3731, %v3162_v45  }
  0x46   : > { %3484 = vmatmul.mubr.msk.f32.vlgmr.msra.gmra.mrb[8].mxu0 %vm577_vm14, %v478_v34 }
  0x47   : > { %2037 = vmatprep.mubr.f32.mxu0 %v6625_v7 }
  0x48   : > { %3205 = vperm.xlu1 %3732, %v3195_v46  }
  0x49   : > { %3200 = vperm.xlu0 %3731, %v3194_v47  }
  0x4a   : > { %3485 = vmatmul.mubr.msk.f32.gmra.mrb[10].mxu0 %vm577_vm14, %v479_v37 }
  0x4b   : > { %2043 = vmatprep.mubr.f32.mxu0 %v6625_v7 }
  0x4c   : > { %3210 = vperm.xlu1 %3732, %v3196_v48  }
  0x4d   : > { %3178 = vperm.xlu0 %3731, %v3164_v49  }
  0x4e   : > { %3486 = vmatmul.mubr.msk.f32.gmra.mrb[12].mxu0 %vm577_vm14, %v480_v40 }
  0x4f   : > { %2049 = vmatprep.mubr.f32.mxu0 %v6625_v7 }
  0x50   : > { %3215 = vperm.xlu1 %3732, %v3197_v50  }
  0x51   : > { %3183 = vperm.xlu0 %3731, %v3165_v51  }
  0x52   : > { %3487 = vmatmul.mubr.msk.f32.gmra.mrb[14].mxu0 %vm577_vm14, %v481_v43  ;;  %vm6720_vm14 = vcmp.eq.s32.totalorder %v4048_v19, %v4036_v15  ;;  %v3455_v15 = vsel %vm6727_vm6, 1.0, %v6625_v7  ;;  %v3466_v19 = vsel %vm1933_vm12, 1.0, %v6625_v7 }
  0x53   : > { %3121 = vmatprep.mubr.f32.mxu0 %v6625_v7  ;;  %v3386_v5 = vsel %vm6720_vm14, 1.0, %v6625_v7  ;;  %vm6731_vm14 = vcmp.eq.s32.totalorder %v4045_v18, %v4155_v29  ;;  %v3464_v18 = vsel %vm1931_vm13, 1.0, %v6625_v7 }
  0x54   : > { %v3460_v10 = vsel %vm6731_vm14, 1.0, %v6625_v7 }
  0x9a   : > { %v692_v12 = vpop.permute.xlu1 %691  ;;  %v682_v13 = vpop.permute.xlu0 %681 }
  0x9b   : > { %v2060_v23 = vmul.f32 %v3456_v61, %v692_v12  ;;  %v2061_v24 = vmul.f32 %v3457_v60, %v692_v12  ;;  %v2056_v25 = vmul.f32 %v3452_v1, %v682_v13  ;;  %v2057_v26 = vmul.f32 %v3453_v0, %v682_v13 }
  0x9c   : > { %v719_v37 = vmul.f32 %v3376_v54, %v682_v13  ;;  %v720_v38 = vmul.f32 %v3377_v52, %v682_v13  ;;  %v723_v44 = vmul.f32 %v3380_v58, %v692_v12  ;;  %v724_v45 = vmul.f32 %v3381_v56, %v692_v12 }
  0x9e   : > { %v697_v34 = vpop.permute.xlu1 %696  ;;  %v687_v35 = vpop.permute.xlu0 %686 }
  0x9f   : > { %v2062_v39 = vmul.f32 %v3458_v27, %v697_v34  ;;  %v2063_v40 = vmul.f32 %v3459_v14, %v697_v34  ;;  %v721_v41 = vmul.f32 %v3378_v55, %v687_v35  ;;  %v722_v42 = vmul.f32 %v3379_v53, %v687_v35 }
  0xa0   : > { %v2058_v28 = vmul.f32 %v3454_v17, %v687_v35  ;;  %v2059_v43 = vmul.f32 %v3455_v15, %v687_v35  ;;  %v725_v52 = vmul.f32 %v3382_v59, %v697_v34  ;;  %v726_v53 = vmul.f32 %v3383_v57, %v697_v34 }
  0xa1   : > { %v735_v46 = vadd.f32 %v721_v41, %v719_v37  ;;  %v748_v47 = vadd.f32 %v722_v42, %v720_v38 }
  0xa2   : > { %v2072_v48 = vadd.f32 %v2058_v28, %v2056_v25  ;;  %v2085_v49 = vadd.f32 %v2059_v43, %v2057_v26  ;;  %v707_v50 = vpop.permute.xlu1 %706  ;;  %v702_v51 = vpop.permute.xlu0 %701 }
  0xa3   : > { %v2066_v54 = vmul.f32 %v3462_v36, %v707_v50  ;;  %v2067_v55 = vmul.f32 %v3463_v31, %v707_v50  ;;  %v736_v56 = vadd.f32 %v735_v46, %v723_v44  ;;  %v749_v58 = vadd.f32 %v748_v47, %v724_v45 }
  0xa4   : > { %v2073_v60 = vadd.f32 %v2072_v48, %v2060_v23  ;;  %v2086_v21 = vadd.f32 %v2085_v49, %v2061_v24  ;;  %v727_v61 = vmul.f32 %v3384_v3, %v702_v51  ;;  %v728_v0 = vmul.f32 %v3385_v62, %v702_v51 }
  0xa5   : > { %v2064_v1 = vmul.f32 %v3460_v10, %v702_v51  ;;  %v2065_v12 = vmul.f32 %v3461_v30, %v702_v51  ;;  %v737_v20 = vadd.f32 %v736_v56, %v725_v52  ;;  %v750_v29 = vadd.f32 %v749_v58, %v726_v53 }
  0xa6   : > { %v2074_v13 = vadd.f32 %v2073_v60, %v2062_v39  ;;  %v2087_v14 = vadd.f32 %v2086_v21, %v2063_v40  ;;  %v717_v25 = vpop.permute.xlu1 %716  ;;  %v729_v27 = vmul.f32 %v3386_v5, %v707_v50  ;;  %v730_v59 = vmul.f32 %v4384_v63, %v707_v50 }
  0xa7   : > { %v712_v26 = vpop.permute.xlu0 %711  ;;  %v2070_v57 = vmul.f32 %v3466_v19, %v717_v25  ;;  %v2071_v15 = vmul.f32 %v3467_v33, %v717_v25  ;;  %v738_v31 = vadd.f32 %v737_v20, %v727_v61  ;;  %v751_v17 = vadd.f32 %v750_v29, %v728_v0 }
  0xa8   : > { %v2075_v34 = vadd.f32 %v2074_v13, %v2064_v1  ;;  %v2088_v23 = vadd.f32 %v2087_v14, %v2065_v12  ;;  %v731_v24 = vmul.f32 %v3388_v16, %v712_v26  ;;  %v732_v62 = vmul.f32 %v4406_v6, %v712_v26 }
  0xa9   : > { %v2068_v3 = vmul.f32 %v3464_v18, %v712_v26  ;;  %v2069_v30 = vmul.f32 %v3465_v32, %v712_v26  ;;  %v739_v35 = vadd.f32 %v738_v31, %v729_v27  ;;  %v752_v36 = vadd.f32 %v751_v17, %v730_v59  ;;  %v490_v26 = vld [vmem:[%s475_s21] sm:$0x3]  ;;  %s459_s21 = sand.u32 1, %s3851_s28  }
  0xaa   : > { %v2076_v10 = vadd.f32 %v2075_v34, %v2066_v54  ;;  %v2089_v37 = vadd.f32 %v2088_v23, %v2067_v55  ;;  %v733_v38 = vmul.f32 %v4422_v22, %v717_v25  ;;  %v734_v5 = vmul.f32 %v4412_v11, %v717_v25  ;;  %v799_v59 = vpop.permute.xlu1 %798  ;;  %s3372_s25 = sshll.u32 %s459_s21, 1  ;;  %s3280_s12 = scalar_lea.sflag [#allocation4], %s459_s21 }
  0xab   : > { %v740_v63 = vadd.f32 %v739_v35, %v731_v24  ;;  %v753_v39 = vadd.f32 %v752_v36, %v732_v62  ;;  %v3864_v45 = vmov 1966171168   ;;  %v4487_v31 = vpop.permute.xlu0 %793  ;;  %s461_s23 = scalar_lea.vmem [#allocation3], %s3372_s25  ;;  %s3871_s25 = smov [#allocation3]  }
  0xac   : > { %v2077_v33 = vadd.f32 %v2076_v10, %v2068_v3  ;;  %v2090_v40 = vadd.f32 %v2089_v37, %v2069_v30  ;;  %v765_v19 = vunpack.c.l.s4 %v3864_v45  ;;  %s3294_s24 = sshll.u32 %s461_s23, 4  ;;  %s3801_s0 = sshll.u32 %s3871_s25, 4  ;;  %s6550_s24 = int_to_ptr.vmem [resolvable:$true] %s3294_s24  ;;  %s3802_s0 = int_to_ptr.vmem [resolvable:$false] %s3801_s0 }
  0xad   : > { %v741_v41 = vadd.f32 %v740_v63, %v733_v38  ;;  %v754_v42 = vadd.f32 %v753_v39, %v734_v5  ;;  %s3803_s1 = scalar_lea.vmem %s3802_s0, 64  ;;  %p3804_p0 = scmp.lt.s32.totalorder %s6550_s24, %s3802_s0 }
  0xae   : > { %v2078_v28 = vadd.f32 %v2077_v33, %v2070_v57  ;;  %v2091_v16 = vadd.f32 %v2090_v40, %v2071_v15  ;;  %v766_v51 = vunpack.c.0.s8 %v765_v19  ;;  %v4501_v30 = vpop.permute.xlu1 %826  ;;  %v6629_v19 = vmov 683565275  }
  0xaf   : > { %v742_v43 = vrot.slane %v741_v41, 4  ;;  %v755_v6 = vrot.slane %v754_v42, 4  ;;  %v4509_v10 = vpop.permute.xlu0 %821 }
  0xb0   : > { %v2079_v44 = vrot.slane %v2078_v28, 4  ;;  %v2092_v32 = vrot.slane %v2091_v16, 4  ;;  %v4477_v61 = vsub.s32 %v766_v51, %v4001_v4  ;;  %v6635_v51 = vmov 2102212464  }
  0xb1   : > { %v743_v18 = vadd.f32 %v742_v43, %v741_v41  ;;  %v756_v46 = vadd.f32 %v755_v6, %v754_v42 }
  0xb2   : > { %v2080_v47 = vadd.f32 %v2079_v44, %v2078_v28  ;;  %v2093_v22 = vadd.f32 %v2092_v32, %v2091_v16  ;;  %6732 = vst [vmem:[#allocation6_spill] sm:$0xff] %v4477_v61 }
  0xb3   : > { %v744_v48 = vrot.slane %v743_v18, 2  ;;  %v757_v11 = vrot.slane %v756_v46, 2 }
  0xb4   : > { %v2081_v49 = vrot.slane %v2080_v47, 2  ;;  %v2094_v50 = vrot.slane %v2093_v22, 2 }
  0xb5   : > { %v745_v52 = vadd.f32 %v744_v48, %v743_v18  ;;  %v758_v53 = vadd.f32 %v757_v11, %v756_v46  ;;  %v6633_v46 = vmov 2475754826   ;;  %v6631_v11 = vmov 2131351028  }
  0xb6   : > { %v2082_v54 = vadd.f32 %v2081_v49, %v2080_v47  ;;  %v2095_v55 = vadd.f32 %v2094_v50, %v2093_v22 }
  0xb7   : > { %v746_v56 = vrot.slane %v745_v52, 1  ;;  %v759_v58 = vrot.slane %v758_v53, 1 }
  0xb8   : > { %v2083_v60 = vrot.slane %v2082_v54, 1  ;;  %v2096_v21 = vrot.slane %v2095_v55, 1 }
  0xb9   : > { %v747_v0 = vadd.f32 %v746_v56, %v745_v52  ;;  %v760_v1 = vadd.f32 %v759_v58, %v758_v53  ;;  %v6637_v58 = vmov 1326507024  }
  0xba   : > { %v2084_v12 = vadd.f32 %v2083_v60, %v2082_v54  ;;  %v2097_v20 = vadd.f32 %v2096_v21, %v2095_v55  ;;  %v6639_v54 = vmov 920167782  }
  0xbb   : > { %v763_v29 = vcombine.low %v747_v0, %v760_v1 }
  0xbc   : > { %v2100_v13 = vcombine.low %v2084_v12, %v2097_v20 }
  0xbd   : > { %v770_v14 = vrot.slane %v763_v29, %v4477_v61 }
  0xbe   : > { %v2107_v25 = vrot.slane %v2100_v13, %v4477_v61 }
  0xbf   : > { %v777_v27 = vrot.slane %v770_v14, %v4477_v61 }
  0xc0   : > { %v2114_v4 = vrot.slane %v2107_v25, %v4477_v61 }
  0xc1   : > { %v779_v57 = vsub.f32 %v490_v26, %v777_v27 }
  0xc2   : > { %v2116_v15 = vsub.f32 %v490_v26, %v2114_v4 }
  0xc3   : > { %v4519_v40 = vrot.slane %v779_v57, %v4017_v9  ;;  %v4522_v41 = vrot.slane %v779_v57, %v4014_v8 }
  0xc4   : > { %v4490_v17 = vrot.slane %v2116_v15, %v4017_v9  ;;  %v4493_v34 = vrot.slane %v2116_v15, %v4014_v8 }
  0xc5   : > { %v813_v43 = vmul.f32 %v799_v59, %v4519_v40  ;;  %v814_v6 = vmul.f32 %v799_v59, %v4522_v41  ;;  %v811_v44 = vmul.f32 %v4487_v31, %v4519_v40 }
  0xc6   : > { %v2130_v23 = vmul.f32 %v4490_v17, %v799_v59  ;;  %v2131_v24 = vmul.f32 %v4493_v34, %v799_v59  ;;  %v2128_v62 = vmul.f32 %v4490_v17, %v4487_v31  ;;  %v2129_v3 = vmul.f32 %v4493_v34, %v4487_v31 }
  0xc8   : > { %v4504_v35 = vadd.f32 %v2130_v23, %v4501_v30  ;;  %v4507_v36 = vadd.f32 %v2131_v24, %v4501_v30  ;;  %v4512_v37 = vadd.f32 %v2128_v62, %v4509_v10  ;;  %v4515_v38 = vadd.f32 %v2129_v3, %v4509_v10 }
  0xca   : > { %6733 = vst [vmem:[#allocation7_spill] sm:$0xff] %v4504_v35  ;;  %6734 = vst [vmem:[#allocation8_spill] sm:$0xff] %v4507_v36  ;;  %v2353_v5 = vand.u32 2139095040, %v4504_v35  ;;  %v6627_v42 = vand.u32 2147483647, %v4504_v35  ;;  %v2147_v22 = vand.u32 2139095040, %v4512_v37 }
  0xcb   : > { %6735 = vst [vmem:[#allocation9_spill] sm:$0xff] %v4512_v37  ;;  %6736 = vst [vmem:[#allocation10_spill] sm:$0xff] %v4515_v38  ;;  %v6628_v45 = vand.u32 2147483647, %v4512_v37 }
  0xcc   : > { %v2354_v63 = vshrl.u32 %v2353_v5, 23  ;;  %v2357_v32 = vand.u32 8388607, %v6627_v42  ;;  %v2148_v26 = vshrl.u32 %v2147_v22, 23  ;;  %v4560_v22 = vadd.f32 %v4501_v30, %v813_v43 }
  0xce   : > { %v3496_v39 = vadd.s32 4294967169, %v2354_v63  ;;  %v2358_v21 = vor.u32 8388608, %v2357_v32  ;;  %v4551_v32 = vpop.permute.xlu1 %808 }
  0xd0   : > { %v2360_v33 = vadd.s32 1, %v3496_v39  ;;  %v2398_v23 = vshll.u32 %v2358_v21, 8 }
  0xd2   : > { %vm2361_vm5 = vcmp.gt.s32.totalorder %v2360_v33, 0 }
  0xd3   : > { %v2362_v28 = vsel %vm2361_vm5, %v2360_v33, 0 }
  0xd4   : > { %v2364_v16 = vand.u32 31, %v2362_v28  ;;  %v2363_v8 = vshrl.u32 %v2362_v28, 5 }
  0xd6   : > { %v2365_v9 = vsub.s32 32, %v2364_v16  ;;  %v2367_v18 = vshll.u32 %v6629_v19, %v2364_v16  ;;  %v2370_v47 = vshll.u32 %v6633_v46, %v2364_v16  ;;  %v2373_v50 = vshll.u32 %v6631_v11, %v2364_v16 }
  0xd7   : > { %v2376_v53 = vshll.u32 %v6635_v51, %v2364_v16  ;;  %v2379_v56 = vshll.u32 %v6639_v54, %v2364_v16  ;;  %vm2382_vm15 = vcmp.lt.s32.totalorder %v2363_v8, 1  ;;  %vm2385_vm4 = vcmp.lt.s32.totalorder %v2363_v8, 4 }
  0xd8   : > { %v2368_v48 = vshrl.u32 %v6633_v46, %v2365_v9  ;;  %v2371_v49 = vshrl.u32 %v6631_v11, %v2365_v9  ;;  %v2374_v52 = vshrl.u32 %v6635_v51, %v2365_v9  ;;  %v2377_v55 = vshrl.u32 %v6639_v54, %v2365_v9 }
  0xd9   : > { %v2380_v60 = vshrl.u32 %v6637_v58, %v2365_v9  ;;  %v2366_v27 = vshrl.u32 %v6629_v19, %v2365_v9  ;;  %vm2384_vm13 = vcmp.lt.s32.totalorder %v2363_v8, 3  ;;  %vm2383_vm12 = vcmp.lt.s32.totalorder %v2363_v8, 2 }
  0xda   : > { %v2369_v0 = vor.u32 %v2368_v48, %v2367_v18  ;;  %v2372_v1 = vor.u32 %v2371_v49, %v2370_v47  ;;  %v2375_v12 = vor.u32 %v2374_v52, %v2373_v50  ;;  %v2378_v20 = vor.u32 %v2377_v55, %v2376_v53  ;;  %v4573_v55 = vpop.permute.xlu0 %803 }
  0xdb   : > { %v2381_v29 = vor.u32 %v2380_v60, %v2379_v56  ;;  %v3488_v16 = vadd.s32 4294967169, %v2148_v26  ;;  %v2134_v8 = vmul.f32 %v4490_v17, %v4551_v32  ;;  %v2135_v18 = vmul.f32 %v4493_v34, %v4551_v32 }
  0xdc   : > { %v2387_v13 = vsel %vm2385_vm4, %v2375_v12, 2102212464  ;;  %v2390_v14 = vsel %vm2382_vm15, %v2369_v0, %v2372_v1  ;;  %v2394_v25 = vsel %vm2382_vm15, %v2372_v1, %v2375_v12  ;;  %v2391_v4 = vsel %vm2385_vm4, %v2378_v20, 920167782 }
  0xdd   : > { %v2395_v59 = vsel %vm2385_vm4, %v2381_v29, 1326507024  ;;  %v2392_v57 = vsel %vm2384_vm13, %v2375_v12, %v2391_v4  ;;  %v2386_v24 = vsel %vm2382_vm15, %v2366_v27, %v2369_v0  ;;  %v2388_v62 = vsel %vm2384_vm13, %v2372_v1, %v2387_v13  ;;  %v4588_v1 = vpop.permute.xlu1 %836 }
  0xde   : > { %v2396_v15 = vsel %vm2384_vm13, %v2378_v20, %v2395_v59  ;;  %v2393_v3 = vsel %vm2383_vm12, %v2390_v14, %v2392_v57  ;;  %v2389_v9 = vsel %vm2383_vm12, %v2386_v24, %v2388_v62  ;;  %v812_v47 = vmul.f32 %v4487_v31, %v4522_v41 }
  0xdf   : > { %v2397_v5 = vsel %vm2383_vm12, %v2394_v25, %v2396_v15  ;;  %v4547_v33 = vmul.u32.u64.low %v2398_v23, %v2393_v3  ;;  %v4548_v28 = vmul.u32.u64.high %v2398_v23, %v2393_v3, %v4547_v33  ;;  %v4563_v48 = vadd.f32 %v4501_v30, %v814_v6 }
  0xe0   : > { %v4544_v63 = vmul.u32.u64.low %v2398_v23, %v2397_v5  ;;  %v4545_v39 = vmul.u32.u64.high %v2398_v23, %v2397_v5, %v4544_v63  ;;  %v2154_v49 = vadd.s32 1, %v3488_v16  ;;  %v4569_v52 = vadd.f32 %v4509_v10, %v811_v44 }
  0xe1   : > { %v2408_v50 = vadd.s32 1, %v4548_v28  ;;  %v2151_v53 = vand.u32 8388607, %v6628_v45  ;;  %v2405_v31 = vmul.u32 %v2398_v23, %v2389_v9  ;;  %v4577_v30 = vmul.f32 %v4490_v17, %v4573_v55 }
  0xe2   : > { %vm2407_vm11 = vc.u32 %v4545_v39, %v4547_v33  ;;  %vm2155_vm10 = vcmp.gt.s32.totalorder %v2154_v49, 0  ;;  %v4581_v43 = vmul.f32 %v4493_v34, %v4573_v55  ;;  %v1056_v44 = vand.u32 2139095040, %v4560_v22 }
  0xe3   : > { %v2409_v6 = vsel %vm2407_vm11, %v2408_v50, %v4548_v28  ;;  %v2156_v56 = vsel %vm2155_vm10, %v2154_v49, 0  ;;  %v4586_v21 = vadd.f32 %v4509_v10, %v812_v47  ;;  %v1159_v12 = vand.u32 2139095040, %v4563_v48 }
  0xe4   : > { %v2410_v60 = vadd.s32 %v2409_v6, %v2405_v31  ;;  %v2158_v0 = vand.u32 31, %v2156_v56  ;;  %v2456_v17 = vand.u32 2139095040, %v4507_v36  ;;  %v4593_v20 = vadd.f32 %v2134_v8, %v4588_v1 }
  0xe5   : > { %v4596_v34 = vadd.f32 %v2135_v18, %v4588_v1  ;;  %v850_v13 = vand.u32 2139095040, %v4569_v52  ;;  %v2152_v14 = vor.u32 8388608, %v2151_v53  ;;  %v2157_v10 = vshrl.u32 %v2156_v56, 5 }
  0xe6   : > { %6737 = vst [vmem:[#allocation11_spill] sm:$0xff] %v4593_v20  ;;  %v2411_v29 = vadd.s32 536870912, %v2410_v60  ;;  %v2159_v25 = vsub.s32 32, %v2158_v0  ;;  %v2161_v26 = vshll.u32 %v6629_v19, %v2158_v0  ;;  %v2164_v27 = vshll.u32 %v6633_v46, %v2158_v0 }
  0xe7   : > { %6738 = vst [vmem:[#allocation12_spill] sm:$0xff] %v4596_v34  ;;  %v2167_v4 = vshll.u32 %v6631_v11, %v2158_v0  ;;  %v2170_v23 = vshll.u32 %v6635_v51, %v2158_v0  ;;  %v2173_v3 = vshll.u32 %v6639_v54, %v2158_v0  ;;  %v2192_v9 = vshll.u32 %v2152_v14, 8 }
  0xe8   : > { %v4602_v59 = vshrl.u32 %v2411_v29, 30  ;;  %v2162_v57 = vshrl.u32 %v6633_v46, %v2159_v25  ;;  %v2165_v15 = vshrl.u32 %v6631_v11, %v2159_v25  ;;  %v2168_v24 = vshrl.u32 %v6635_v51, %v2159_v25 }
  0xe9   : > { %v2171_v62 = vshrl.u32 %v6639_v54, %v2159_v25  ;;  %v2174_v5 = vshrl.u32 %v6637_v58, %v2159_v25  ;;  %vm2176_vm0 = vcmp.lt.s32.totalorder %v2157_v10, 1  ;;  %vm2178_vm1 = vcmp.lt.s32.totalorder %v2157_v10, 3 }
  0xea   : > { %6739 = vst [vmem:[#allocation13_spill] sm:$0xff] %v4602_v59  ;;  %v2413_v63 = vshll.u32 %v4602_v59, 30  ;;  %v2163_v28 = vor.u32 %v2162_v57, %v2161_v26  ;;  %v2166_v16 = vor.u32 %v2165_v15, %v2164_v27  ;;  %v2169_v8 = vor.u32 %v2168_v24, %v2167_v4 }
  0xeb   : > { %v2172_v18 = vor.u32 %v2171_v62, %v2170_v23  ;;  %v2175_v47 = vor.u32 %v2174_v5, %v2173_v3  ;;  %vm2179_vm2 = vcmp.lt.s32.totalorder %v2157_v10, 4  ;;  %v2160_v0 = vshrl.u32 %v6629_v19, %v2159_v25 }
  0xec   : > { %v4612_v49 = vsub.s32 %v2410_v60, %v2413_v63  ;;  %v2184_v50 = vsel %vm2176_vm0, %v2163_v28, %v2166_v16  ;;  %v2181_v53 = vsel %vm2179_vm2, %v2169_v8, 2102212464  ;;  %v2188_v6 = vsel %vm2176_vm0, %v2166_v16, %v2169_v8 }
  0xed   : > { %v2185_v31 = vsel %vm2179_vm2, %v2172_v18, 920167782  ;;  %v2189_v56 = vsel %vm2179_vm2, %v2175_v47, 1326507024  ;;  %vm2177_vm3 = vcmp.lt.s32.totalorder %v2157_v10, 2  ;;  %v1057_v26 = vshrl.u32 %v1056_v44, 23 }
  0xee   : > { %v2186_v29 = vsel %vm2178_vm1, %v2169_v8, %v2185_v31  ;;  %v2190_v14 = vsel %vm2178_vm1, %v2172_v18, %v2189_v56  ;;  %v953_v60 = vand.u32 2139095040, %v4586_v21  ;;  %v2180_v57 = vsel %vm2176_vm0, %v2160_v0, %v2163_v28 }
  0xef   : > { %v2187_v27 = vsel %vm2177_vm3, %v2184_v50, %v2186_v29  ;;  %v2191_v4 = vsel %vm2177_vm3, %v2188_v6, %v2190_v14  ;;  %v2182_v15 = vsel %vm2178_vm1, %v2166_v16, %v2181_v53  ;;  %v1160_v62 = vshrl.u32 %v1159_v12, 23 }
  0xf0   : > { %v4622_v23 = vmul.u32.u64.low %v2192_v9, %v2191_v4  ;;  %v4623_v24 = vmul.u32.u64.high %v2192_v9, %v2191_v4, %v4622_v23  ;;  %v2416_v25 = vsub.s32 0, %v4612_v49  ;;  %v2457_v63 = vshrl.u32 %v2456_v17, 23 }
  0xf1   : > { %v4626_v3 = vmul.u32.u64.low %v2192_v9, %v2187_v27  ;;  %v4627_v5 = vmul.u32.u64.high %v2192_v9, %v2187_v27, %v4626_v3  ;;  %v2183_v44 = vsel %vm2177_vm3, %v2180_v57, %v2182_v15  ;;  %v2765_v8 = vand.u32 2139095040, %v4593_v20 }
  0xf2   : > { %v3420_v18 = vadd.s32 4294967169, %v1057_v26  ;;  %v851_v47 = vshrl.u32 %v850_v13, 23  ;;  %v954_v50 = vshrl.u32 %v953_v60, 23  ;;  %v3424_v10 = vadd.s32 4294967169, %v1160_v62 }
  0xf3   : > { %vm2201_vm6 = vc.u32 %v4623_v24, %v4626_v3  ;;  %v3497_v28 = vmin.u32 %v2416_v25, %v4612_v49  ;;  %v2202_v12 = vadd.s32 1, %v4627_v5  ;;  %v2766_v16 = vshrl.u32 %v2765_v8, 23 }
  0xf4   : > { %v3500_v53 = vadd.s32 4294967169, %v2457_v63  ;;  %v2199_v31 = vmul.u32 %v2192_v9, %v2183_v44  ;;  %v2250_v6 = vand.u32 2139095040, %v4515_v38  ;;  %v817_v56 = vmul.f32 %v4551_v32, %v4519_v40 }
  0xf5   : > { %v2203_v17 = vsel %vm2201_vm6, %v2202_v12, %v4627_v5  ;;  %v3512_v13 = vadd.s32 4294967169, %v2766_v16  ;;  %v3412_v0 = vadd.s32 4294967169, %v851_v47  ;;  %v1063_v14 = vadd.s32 1, %v3420_v18 }
  0xf6   : > { %v2204_v29 = vadd.s32 %v2203_v17, %v2199_v31  ;;  %v1166_v26 = vadd.s32 1, %v3424_v10  ;;  %v2418_v60 = vclz %v3497_v28  ;;  %v3416_v27 = vadd.s32 4294967169, %v954_v50 }
  0xf7   : > { %v2463_v4 = vadd.s32 1, %v3500_v53  ;;  %v2251_v15 = vshrl.u32 %v2250_v6, 23  ;;  %v818_v9 = vmul.f32 %v4551_v32, %v4522_v41  ;;  %v4642_v23 = vadd.f32 %v4588_v1, %v817_v56 }
  0xf8   : > { %v2205_v57 = vadd.s32 536870912, %v2204_v29  ;;  %v2772_v62 = vadd.s32 1, %v3512_v13  ;;  %v857_v25 = vadd.s32 1, %v3412_v0  ;;  %vm1064_vm7 = vcmp.gt.s32.totalorder %v1063_v14, 0 }
  0xf9   : > { %6740 = vst [vmem:[#allocation14_spill] sm:$0xff] %v4642_v23  ;;  %vm1167_vm8 = vcmp.gt.s32.totalorder %v1166_v26, 0  ;;  %v3498_v63 = vadd.s32 4294967294, %v2418_v60  ;;  %v960_v44 = vadd.s32 1, %v3416_v27  ;;  %vm2464_vm9 = vcmp.gt.s32.totalorder %v2463_v4, 0 }
  0xfa   : > { %v4644_v5 = vshrl.u32 %v2205_v57, 30  ;;  %v3492_v18 = vadd.s32 4294967169, %v2251_v15  ;;  %v4648_v47 = vadd.f32 %v4588_v1, %v818_v9  ;;  %v1468_v32 = vand.u32 2139095040, %v4642_v23 }
  0xfb   : > { %vm2773_vm14 = vcmp.gt.s32.totalorder %v2772_v62, 0  ;;  %v1065_v50 = vsel %vm1064_vm7, %v1063_v14, 0  ;;  %vm858_vm5 = vcmp.gt.s32.totalorder %v857_v25, 0  ;;  %v1168_v10 = vsel %vm1167_vm8, %v1166_v26, 0 }
  0xfc   : > { %6741 = vst [vmem:[#allocation15_spill] sm:$0xff] %v4644_v5  ;;  %v2207_v8 = vshll.u32 %v4644_v5, 30  ;;  %6742 = vst [vmem:[#allocation16_spill] sm:$0xff] %v4648_v47  ;;  %vm3499_vm15 = vcmp.lt.s32.totalorder %v3498_v63, 0  ;;  %v2465_v28 = vsel %vm2464_vm9, %v2463_v4, 0  ;;  %vm961_vm4 = vcmp.gt.s32.totalorder %v960_v44, 0 }
  0xfd   : > { %v2257_v16 = vadd.s32 1, %v3492_v18  ;;  %v1571_v53 = vand.u32 2139095040, %v4648_v47  ;;  %v2774_v31 = vsel %vm2773_vm14, %v2772_v62, 0  ;;  %v4656_v17 = vand.u32 31, %v1065_v50 }
  0xfe   : > { %v4651_v12 = vsub.s32 %v2204_v29, %v2207_v8  ;;  %v859_v1 = vsel %vm858_vm5, %v857_v25, 0  ;;  %v1469_v56 = vshrl.u32 %v1468_v32, 23  ;;  %v4660_v0 = vand.u32 31, %v1168_v10 }
  0xff   : > { %6744 = vst [vmem:[#allocation18_spill] sm:$0xff] %v4656_v17  ;;  %v4662_v14 = vsel %vm3499_vm15, 0, %v3498_v63  ;;  %v4664_v26 = vand.u32 31, %v2465_v28  ;;  %v962_v29 = vsel %vm961_vm4, %v960_v44, 0  ;;  %v4666_v60 = vshrl.u32 %v1065_v50, 5 }
 0x100   : > { %v2776_v27 = vand.u32 31, %v2774_v31  ;;  %v4668_v4 = vand.u32 31, %v859_v1  ;;  %v2210_v57 = vsub.s32 0, %v4651_v12  ;;  %vm2258_vm13 = vcmp.gt.s32.totalorder %v2257_v16, 0 }
 0x101   : > { %6746 = vst [vmem:[#allocation20_spill] sm:$0xff] %v4664_v26  ;;  %6747 = vst [vmem:[#allocation21_spill] sm:$0xff] %v4666_v60  ;;  %v1572_v15 = vshrl.u32 %v1571_v53, 23  ;;  %v4673_v62 = vshrl.u32 %v1168_v10, 5  ;;  %v2426_v25 = vsub.s32 4294967266, %v4662_v14  ;;  %v4676_v63 = vand.u32 31, %v962_v29 }
 0x102   : > { %v3436_v8 = vadd.s32 4294967169, %v1469_v56  ;;  %v4681_v44 = vsub.s32 32, %v4656_v17  ;;  %v4684_v32 = vsub.s32 32, %v4660_v0  ;;  %v4686_v50 = vshrl.u32 %v2465_v28, 5 }
 0x103   : > { %v4689_v53 = vsub.s32 32, %v4664_v26  ;;  %v4691_v10 = vshrl.u32 %v859_v1, 5  ;;  %v4693_v2 = vsel %vm2258_vm13, %v2257_v16, 0  ;;  %v6650_v7 = vand.u32 2147483647, %v4593_v20  ;;  %v4738_v26 = vpop.permute.xlu0 %831 }
 0x104   : > { %6750 = vst [vmem:[#allocation24_spill] sm:$0xff] %v4686_v50  ;;  %v4696_v56 = vsub.s32 32, %v2776_v27  ;;  %v4699_v42 = vsub.s32 32, %v4668_v4  ;;  %v3489_v45 = vmin.u32 %v2210_v57, %v4651_v12  ;;  %v3440_v19 = vadd.s32 4294967169, %v1572_v15 }
 0x105   : > { %6751 = vst [vmem:[#allocation25_spill] sm:$0xff] %v4689_v53  ;;  %v2868_v28 = vand.u32 2139095040, %v4596_v34  ;;  %v2427_v11 = vadd.s32 127, %v2426_v25  ;;  %v4703_v46 = vshrl.u32 %v962_v29, 5  ;;  %v4706_v1 = vsub.s32 32, %v4676_v63 }
 0x106   : > { %v1475_v16 = vadd.s32 1, %v3436_v8  ;;  %v2406_v51 = vadd.s32 %v4547_v33, %v4545_v39  ;;  %v4711_v58 = vand.u32 31, %v4693_v2  ;;  %v815_v54 = vmul.f32 %v4573_v55, %v4519_v40 }
 0x107   : > { %v816_v57 = vmul.f32 %v4573_v55, %v4522_v41  ;;  %v2422_v15 = vsub.s32 32, %v4662_v14  ;;  %v4720_v29 = vadd.s32 %v4626_v3, %v4623_v24  ;;  %v2769_v25 = vand.u32 8388607, %v6650_v7 }
 0x108   : > { %6752 = vst [vmem:[#allocation26_spill] sm:$0xff] %v4711_v58  ;;  %v6753_v39 = vmov 920167782   ;;  %v2212_v8 = vclz %v3489_v45  ;;  %v1578_v61 = vadd.s32 1, %v3440_v19  ;;  %v6754_v34 = vmov 1326507024  }
 0x109   : > { %v4654_v6 = vpop.f32.mrb[0].mxu0  ;;  %v2789_v33 = vshrl.u32 %v6753_v39, %v4696_v56  ;;  %v2792_v40 = vshrl.u32 %v6754_v34, %v4696_v56  ;;  %v2869_v59 = vshrl.u32 %v2868_v28, 23  ;;  %v2428_v5 = vshll.u32 %v2427_v11, 23 }
 0x10a   : > { %6743 = vst [vmem:[#allocation17_spill] sm:$0xff] %v4654_v6  ;;  %v4658_v13 = vpop.f32.mrb[1].mxu0  ;;  %vm1476_vm12 = vcmp.gt.s32.totalorder %v1475_v16, 0  ;;  %v4728_v41 = vshrl.u32 %v2774_v31, 5  ;;  %v6755_v55 = vmov 2102212464   ;;  %v2791_v19 = vshll.u32 %v6753_v39, %v2776_v27 }
 0x10b   : > { %6745 = vst [vmem:[#allocation19_spill] sm:$0xff] %v4658_v13  ;;  %v2788_v50 = vshll.u32 %v6755_v55, %v2776_v27  ;;  %v6756_v24 = vmov 2475754826   ;;  %v6757_v7 = vmov 2131351028   ;;  %v2786_v45 = vshrl.u32 %v6755_v55, %v4696_v56 }
 0x10c   : > { %v2780_v3 = vshrl.u32 %v6756_v24, %v4696_v56  ;;  %v2783_v20 = vshrl.u32 %v6757_v7, %v4696_v56  ;;  %v2424_v28 = vshrl.u32 %v2406_v51, %v2422_v15  ;;  %v6758_v11 = vmov 683565275  }
 0x10d   : > { %v4671_v9 = vpop.f32.mrb[2].mxu0  ;;  %v2779_v53 = vshll.u32 %v6758_v11, %v2776_v27  ;;  %v2790_v31 = vor.u32 %v2789_v33, %v2788_v50  ;;  %v4743_v36 = vadd.f32 %v4577_v30, %v4738_v26  ;;  %v3490_v38 = vadd.s32 4294967294, %v2212_v8 }
 0x10e   : > { %6748 = vst [vmem:[#allocation22_spill] sm:$0xff] %v4671_v9  ;;  %v4678_v18 = vpop.f32.mrb[3].mxu0  ;;  %v2782_v37 = vshll.u32 %v6756_v24, %v2776_v27  ;;  %v2785_v23 = vshll.u32 %v6757_v7, %v2776_v27  ;;  %v2793_v47 = vor.u32 %v2792_v40, %v2791_v19  ;;  %v2423_v60 = vshll.u32 %v4612_v49, %v4662_v14 }
 0x10f   : > { %6749 = vst [vmem:[#allocation23_spill] sm:$0xff] %v4678_v18  ;;  %6759 = vst [vmem:[#allocation27_spill] sm:$0xff] %v4743_v36  ;;  %v2429_v17 = vor.u32 4788187, %v2428_v5  ;;  %vm1579_vm11 = vcmp.gt.s32.totalorder %v1578_v61, 0  ;;  %v4750_v51 = vadd.f32 %v4738_v26, %v815_v54  ;;  %v2781_v15 = vor.u32 %v2780_v3, %v2779_v53 }
 0x110   : > { %v2784_v50 = vor.u32 %v2783_v20, %v2782_v37  ;;  %v2787_v33 = vor.u32 %v2786_v45, %v2785_v23  ;;  %vm2797_vm10 = vcmp.lt.s32.totalorder %v4728_v41, 4  ;;  %v1477_v30 = vsel %vm1476_vm12, %v1475_v16, 0 }
 0x111   : > { %6760 = vst [vmem:[#allocation28_spill] sm:$0xff] %v4750_v51  ;;  %v2770_v8 = vor.u32 8388608, %v2769_v25  ;;  %v2803_v27 = vsel %vm2797_vm10, %v2790_v31, 920167782  ;;  %v2559_v40 = vand.u32 2139095040, %v4743_v36  ;;  %v2425_v19 = vor.u32 %v2424_v28, %v2423_v60 }
 0x112   : > { %vm3491_vm0 = vcmp.lt.s32.totalorder %v3490_v38, 0  ;;  %v2807_v49 = vsel %vm2797_vm10, %v2793_v47, 1326507024  ;;  %v3516_v54 = vadd.s32 4294967169, %v2869_v59  ;;  %v1580_v5 = vsel %vm1579_vm11, %v1578_v61, 0 }
 0x113   : > { %vm2794_vm1 = vcmp.lt.s32.totalorder %v4728_v41, 1  ;;  %vm2796_vm2 = vcmp.lt.s32.totalorder %v4728_v41, 3  ;;  %v2560_v37 = vshrl.u32 %v2559_v40, 23  ;;  %v2430_v20 = vand.u32 2147483647, %v2429_v17 }
 0x114   : > { %v2802_v23 = vsel %vm2794_vm1, %v2781_v15, %v2784_v50  ;;  %v2804_v14 = vsel %vm2796_vm2, %v2787_v33, %v2803_v27  ;;  %v2806_v60 = vsel %vm2794_vm1, %v2784_v50, %v2787_v33  ;;  %v2215_v53 = vsel %vm3491_vm0, 0, %v3490_v38 }
 0x115   : > { %v2808_v59 = vsel %vm2796_vm2, %v2790_v31, %v2807_v49  ;;  %v3504_v61 = vadd.s32 4294967169, %v2560_v37  ;;  %v2432_v16 = vcvt.s32.f32 %v2425_v19  ;;  %vm2795_vm3 = vcmp.lt.s32.totalorder %v4728_v41, 2 }
 0x116   : > { %v2875_v17 = vadd.s32 1, %v3516_v54  ;;  %v2805_v3 = vsel %vm2795_vm3, %v2802_v23, %v2804_v14  ;;  %v4776_v45 = vshll.u32 %v2770_v8, 8  ;;  %v4779_v38 = vadd.f32 %v4738_v26, %v816_v57 }
 0x117   : > { %v2566_v28 = vadd.s32 1, %v3504_v61  ;;  %v2433_v31 = vmul.f32 %v2432_v16, %v2430_v20  ;;  %v2220_v27 = vsub.s32 4294967266, %v2215_v53  ;;  %v2809_v40 = vsel %vm2795_vm3, %v2806_v60, %v2808_v59 }
 0x118   : > { %v1262_v19 = vand.u32 2139095040, %v4750_v51  ;;  %vm2352_vm6 = vcmp.lt.s32.totalorder %v4504_v35, 0  ;;  %v2778_v49 = vshrl.u32 %v6758_v11, %v4696_v56  ;;  %v2799_v8 = vsel %vm2797_vm10, %v2787_v33, 2102212464 }
 0x119   : > { %v6670_v54 = vand.u32 2147483647, %v4743_v36  ;;  %vm2567_vm7 = vcmp.gt.s32.totalorder %v2566_v28, 0  ;;  %v4791_v57 = vmul.u32.u64.low %v4776_v45, %v2805_v3  ;;  %v4792_v37 = vmul.u32.u64.high %v4776_v45, %v2805_v3, %v4791_v57 }
 0x11a   : > { %vm2876_vm8 = vcmp.gt.s32.totalorder %v2875_v17, 0  ;;  %v2568_v20 = vsel %vm2567_vm7, %v2566_v28, 0  ;;  %v2216_v23 = vsub.s32 32, %v2215_v53  ;;  %v2798_v14 = vsel %vm2794_vm1, %v2778_v49, %v2781_v15 }
 0x11b   : > { %v4798_v60 = vmul.u32.u64.low %v4776_v45, %v2809_v40  ;;  %v4799_v56 = vmul.u32.u64.high %v4776_v45, %v2809_v40, %v4798_v60  ;;  %v2221_v59 = vadd.s32 127, %v2220_v27  ;;  %v2800_v33 = vsel %vm2796_vm2, %v2784_v50, %v2799_v8 }
 0x11c   : > { %v1263_v61 = vshrl.u32 %v1262_v19, 23  ;;  %v2570_v16 = vand.u32 31, %v2568_v20  ;;  %v4803_v47 = vand.u32 31, %v1477_v30  ;;  %v4805_v3 = vand.u32 31, %v1580_v5 }
 0x11d   : > { %v2877_v25 = vsel %vm2876_vm8, %v2875_v17, 0  ;;  %v2563_v28 = vand.u32 8388607, %v6670_v54  ;;  %v2434_v6 = vxor.u32 2147483648, %v2433_v31  ;;  %v4810_v15 = vshrl.u32 %v4693_v2, 5 }
 0x11e   : > { %6761 = vst [vmem:[#allocation29_spill] sm:$0xff] %v4803_v47  ;;  %v4813_v40 = vsub.s32 32, %v4711_v58  ;;  %v4815_v27 = vshrl.u32 %v1477_v30, 5  ;;  %v2218_v50 = vshrl.u32 %v4720_v29, %v2216_v23  ;;  %v4818_v19 = vshrl.u32 %v1580_v5, 5 }
 0x11f   : > { %6762 = vst [vmem:[#allocation30_spill] sm:$0xff] %v4810_v15  ;;  %v4822_v49 = vsel %vm2795_vm3, %v2798_v14, %v2800_v33  ;;  %v1365_v17 = vand.u32 2139095040, %v4779_v38  ;;  %v2222_v8 = vshll.u32 %v2221_v59, 23  ;;  %v4825_v60 = vand.u32 31, %v2877_v25 }
 0x120   : > { %6763 = vst [vmem:[#allocation31_spill] sm:$0xff] %v4813_v40  ;;  %6764 = vst [vmem:[#allocation32_spill] sm:$0xff] %v4815_v27  ;;  %v3428_v2 = vadd.s32 4294967169, %v1263_v61  ;;  %v4827_v54 = vsub.s32 32, %v2570_v16  ;;  %v2217_v36 = vshll.u32 %v4651_v12, %v2215_v53  ;;  %v4831_v30 = vsub.s32 32, %v4803_v47 }
 0x121   : > { %6765 = vst [vmem:[#allocation33_spill] sm:$0xff] %v4818_v19  ;;  %6766 = vst [vmem:[#allocation34_spill] sm:$0xff] %v4825_v60  ;;  %v4834_v29 = vsub.s32 32, %v4805_v3  ;;  %v2564_v5 = vor.u32 8388608, %v2563_v28  ;;  %v4838_v41 = vsel %vm2352_vm6, %v2434_v6, %v2433_v31  ;;  %v4843_v14 = vadd.s32 1, %v4792_v37 }
 0x122   : > { %6767 = vst [vmem:[#allocation35_spill] sm:$0xff] %v4831_v30  ;;  %6768 = vst [vmem:[#allocation36_spill] sm:$0xff] %v4838_v41  ;;  %v4845_v59 = vshrl.u32 %v2877_v25, 5  ;;  %v4847_v12 = vor.u32 %v2218_v50, %v2217_v36  ;;  %v4851_v53 = vadd.s32 %v4791_v57, %v4799_v56  ;;  %v4853_v33 = vshrl.u32 %v1365_v17, 23 }
 0x123   : > { %v4856_v6 = vor.u32 4788187, %v2222_v8  ;;  %v4859_v31 = vsub.s32 32, %v4825_v60  ;;  %v4861_v28 = vadd.s32 1, %v3428_v2  ;;  %v2583_v25 = vshrl.u32 %v6753_v39, %v4827_v54 }
 0x124   : > { %6769 = vst [vmem:[#allocation37_spill] sm:$0xff] %v4845_v59  ;;  %6770 = vst [vmem:[#allocation38_spill] sm:$0xff] %v4851_v53  ;;  %v2574_v36 = vshrl.u32 %v6756_v24, %v4827_v54  ;;  %v4867_v50 = vshll.u32 %v2564_v5, 8  ;;  %v967_v17 = vshll.u32 %v6758_v11, %v4676_v63  ;;  %v968_v8 = vshrl.u32 %v6756_v24, %v4706_v1 }
 0x125   : > { %6771 = vst [vmem:[#allocation39_spill] sm:$0xff] %v4859_v31  ;;  %v2577_v23 = vshrl.u32 %v6757_v7, %v4827_v54  ;;  %v2580_v2 = vshrl.u32 %v6755_v55, %v4827_v54  ;;  %v2582_v61 = vshll.u32 %v6755_v55, %v2570_v16  ;;  %v2586_v59 = vshrl.u32 %v6754_v34, %v4827_v54 }
 0x126   : > { %v4880_v31 = vshrl.u32 %v2568_v20, 5  ;;  %v2573_v5 = vshll.u32 %v6758_v11, %v2570_v16  ;;  %v6772_v60 = vand.u32 2147483647, %v4586_v21  ;;  %v971_v41 = vshrl.u32 %v6757_v7, %v4706_v1 }
 0x127   : > { %v2576_v35 = vshll.u32 %v6756_v24, %v2570_v16  ;;  %v2579_v13 = vshll.u32 %v6757_v7, %v2570_v16  ;;  %v2584_v18 = vor.u32 %v2583_v25, %v2582_v61  ;;  %v2585_v53 = vshll.u32 %v6753_v39, %v2570_v16 }
 0x128   : > { %v957_v9 = vand.u32 8388607, %v6772_v60  ;;  %v4890_v15 = vor.u32 %v2574_v36, %v2573_v5  ;;  %v969_v58 = vor.u32 %v968_v8, %v967_v17  ;;  %v970_v20 = vshll.u32 %v6756_v24, %v4676_v63 }
 0x129   : > { %v973_v40 = vshll.u32 %v6757_v7, %v4676_v63  ;;  %vm2819_vm9 = vc.u32 %v4799_v56, %v4791_v57  ;;  %v4898_v60 = vor.u32 %v2577_v23, %v2576_v35  ;;  %v4900_v27 = vor.u32 %v2580_v2, %v2579_v13 }
 0x12a   : > { %v2587_v47 = vor.u32 %v2586_v59, %v2585_v53  ;;  %v974_v16 = vshrl.u32 %v6755_v55, %v4706_v1  ;;  %vm2591_vm14 = vcmp.lt.s32.totalorder %v4880_v31, 4  ;;  %v976_v61 = vshll.u32 %v6755_v55, %v4676_v63 }
 0x12b   : > { %v977_v25 = vshrl.u32 %v6753_v39, %v4706_v1  ;;  %v980_v36 = vshrl.u32 %v6754_v34, %v4706_v1  ;;  %v2597_v35 = vsel %vm2591_vm14, %v2584_v18, 920167782  ;;  %v972_v13 = vor.u32 %v971_v41, %v970_v20 }
 0x12c   : > { %v975_v23 = vor.u32 %v974_v16, %v973_v40  ;;  %v979_v59 = vshll.u32 %v6753_v39, %v4676_v63  ;;  %vm2588_vm5 = vcmp.lt.s32.totalorder %v4880_v31, 1  ;;  %v958_v53 = vor.u32 8388608, %v957_v9 }
 0x12d   : > { %v966_v17 = vshrl.u32 %v6758_v11, %v4706_v1  ;;  %v978_v8 = vor.u32 %v977_v25, %v976_v61  ;;  %vm2590_vm15 = vcmp.lt.s32.totalorder %v4880_v31, 3  ;;  %v2596_v2 = vsel %vm2588_vm5, %v4890_v15, %v4898_v60 }
 0x12e   : > { %v2601_v40 = vsel %vm2591_vm14, %v2587_v47, 1326507024  ;;  %v981_v41 = vor.u32 %v980_v36, %v979_v59  ;;  %v2598_v63 = vsel %vm2590_vm15, %v4900_v27, %v2597_v35  ;;  %v2600_v9 = vsel %vm2588_vm5, %v4898_v60, %v4900_v27 }
 0x12f   : > { %vm982_vm4 = vcmp.lt.s32.totalorder %v4703_v46, 1  ;;  %vm985_vm13 = vcmp.lt.s32.totalorder %v4703_v46, 4  ;;  %vm984_vm12 = vcmp.lt.s32.totalorder %v4703_v46, 3  ;;  %v2602_v47 = vsel %vm2590_vm15, %v2584_v18, %v2601_v40 }
 0x130   : > { %v987_v1 = vsel %vm985_vm13, %v975_v23, 2102212464  ;;  %v990_v5 = vsel %vm982_vm4, %v969_v58, %v972_v13  ;;  %v991_v20 = vsel %vm985_vm13, %v978_v8, 920167782  ;;  %vm983_vm11 = vcmp.lt.s32.totalorder %v4703_v46, 2 }
 0x131   : > { %v992_v16 = vsel %vm984_vm12, %v975_v23, %v991_v20  ;;  %v994_v61 = vsel %vm982_vm4, %v972_v13, %v975_v23  ;;  %vm2589_vm10 = vcmp.lt.s32.totalorder %v4880_v31, 2  ;;  %v995_v36 = vsel %vm985_vm13, %v981_v41, 1326507024 }
 0x132   : > { %v993_v25 = vsel %vm983_vm11, %v990_v5, %v992_v16  ;;  %v998_v35 = vshll.u32 %v958_v53, 8  ;;  %v2599_v59 = vsel %vm2589_vm10, %v2596_v2, %v2598_v63  ;;  %v986_v30 = vsel %vm982_vm4, %v966_v17, %v969_v58 }
 0x133   : > { %v988_v51 = vsel %vm984_vm12, %v972_v13, %v987_v1  ;;  %v996_v19 = vsel %vm984_vm12, %v978_v8, %v995_v36  ;;  %v2603_v18 = vsel %vm2589_vm10, %v2600_v9, %v2602_v47  ;;  %v2821_v53 = vsel %vm2819_vm9, %v4843_v14, %v4792_v37 }
 0x134   : > { %v997_v40 = vsel %vm983_vm11, %v994_v61, %v996_v19  ;;  %v4947_v23 = vmul.u32.u64.low %v998_v35, %v993_v25  ;;  %v4948_v20 = vmul.u32.u64.high %v998_v35, %v993_v25, %v4947_v23  ;;  %v1156_v13 = vand.u32 2147483647, %v4563_v48 }
 0x135   : > { %v4956_v2 = vmul.u32.u64.low %v998_v35, %v997_v40  ;;  %v4957_v58 = vmul.u32.u64.high %v998_v35, %v997_v40, %v4956_v2  ;;  %v3432_v17 = vadd.s32 4294967169, %v4853_v33  ;;  %v989_v41 = vsel %vm983_vm11, %v986_v30, %v988_v51 }
 0x136   : > { %v4962_v8 = vmul.u32.u64.low %v4867_v50, %v2599_v59  ;;  %v4963_v19 = vmul.u32.u64.high %v4867_v50, %v2599_v59, %v4962_v8  ;;  %v4969_v63 = vmul.u32.u64.low %v4867_v50, %v2603_v18  ;;  %v4970_v9 = vmul.u32.u64.high %v4867_v50, %v2603_v18, %v4969_v63 }
 0x137   : > { %v1174_v57 = vshrl.u32 %v6756_v24, %v4684_v32  ;;  %v1177_v37 = vshrl.u32 %v6757_v7, %v4684_v32  ;;  %v1008_v56 = vadd.s32 1, %v4948_v20  ;;  %v1173_v14 = vshll.u32 %v6758_v11, %v4660_v0 }
 0x138   : > { %v1176_v33 = vshll.u32 %v6756_v24, %v4660_v0  ;;  %v1180_v46 = vshrl.u32 %v6755_v55, %v4684_v32  ;;  %v6773_v51 = vmul.u32 %v4776_v45, %v4822_v49  ;;  %v1005_v1 = vmul.u32 %v998_v35, %v989_v41 }
 0x139   : > { %vm1007_vm0 = vc.u32 %v4957_v58, %v4947_v23  ;;  %v1163_v5 = vand.u32 8388607, %v1156_v13  ;;  %v1175_v16 = vor.u32 %v1174_v57, %v1173_v14  ;;  %v1179_v25 = vshll.u32 %v6757_v7, %v4660_v0 }
 0x13a   : > { %v4986_v30 = vadd.s32 %v2821_v53, %v6773_v51  ;;  %v1009_v47 = vsel %vm1007_vm0, %v1008_v56, %v4948_v20  ;;  %v1178_v61 = vor.u32 %v1177_v37, %v1176_v33  ;;  %vm1270_vm1 = vcmp.gt.s32.totalorder %v4861_v28, 0 }
 0x13b   : > { %v1010_v36 = vadd.s32 %v1009_v47, %v1005_v1  ;;  %v1182_v45 = vshll.u32 %v6755_v55, %v4660_v0  ;;  %v1183_v49 = vshrl.u32 %v6753_v39, %v4684_v32  ;;  %v5002_v35 = vadd.f32 %v4581_v43, %v4738_v26 }
 0x13c   : > { %v1181_v59 = vor.u32 %v1180_v46, %v1179_v25  ;;  %v1185_v18 = vshll.u32 %v6753_v39, %v4660_v0  ;;  %v1186_v40 = vshrl.u32 %v6754_v34, %v4684_v32  ;;  %v1372_v20 = vadd.s32 1, %v3432_v17 }
 0x13d   : > { %v1011_v53 = vadd.s32 536870912, %v1010_v36  ;;  %v1184_v2 = vor.u32 %v1183_v49, %v1182_v45  ;;  %vm1188_vm2 = vcmp.lt.s32.totalorder %v4673_v62, 1  ;;  %v1164_v41 = vor.u32 8388608, %v1163_v5 }
 0x13e   : > { %v1187_v63 = vor.u32 %v1186_v40, %v1185_v18  ;;  %vm1191_vm3 = vcmp.lt.s32.totalorder %v4673_v62, 4  ;;  %v1196_v43 = vsel %vm1188_vm2, %v1175_v16, %v1178_v61  ;;  %v2224_v26 = vand.u32 2147483647, %v4856_v6 }
 0x13f   : > { %v5013_v57 = vshrl.u32 %v1011_v53, 30  ;;  %vm1190_vm7 = vcmp.lt.s32.totalorder %v4673_v62, 3  ;;  %v1197_v0 = vsel %vm1191_vm3, %v1184_v2, 920167782  ;;  %v1172_v17 = vshrl.u32 %v6758_v11, %v4684_v32 }
 0x140   : > { %vm1189_vm8 = vcmp.lt.s32.totalorder %v4673_v62, 2  ;;  %v1198_v37 = vsel %vm1190_vm7, %v1181_v59, %v1197_v0  ;;  %v1201_v56 = vsel %vm1191_vm3, %v1187_v63, 1326507024  ;;  %v1193_v33 = vsel %vm1191_vm3, %v1181_v59, 2102212464 }
 0x141   : > { %v1013_v14 = vshll.u32 %v5013_v57, 30  ;;  %v1199_v6 = vsel %vm1189_vm8, %v1196_v43, %v1198_v37  ;;  %v1200_v46 = vsel %vm1188_vm2, %v1178_v61, %v1181_v59  ;;  %v2823_v51 = vadd.s32 536870912, %v4986_v30 }
 0x142   : > { %vm1373_vm9 = vcmp.gt.s32.totalorder %v1372_v20, 0  ;;  %v1202_v32 = vsel %vm1190_vm7, %v1184_v2, %v1201_v56  ;;  %v1204_v1 = vshll.u32 %v1164_v41, 8  ;;  %v2572_v5 = vshrl.u32 %v6758_v11, %v4827_v54 }
 0x143   : > { %v2593_v47 = vsel %vm2591_vm14, %v4900_v27, 2102212464  ;;  %v5034_v25 = vsub.s32 %v1010_v36, %v1013_v14  ;;  %v1192_v45 = vsel %vm1188_vm2, %v1172_v17, %v1175_v16  ;;  %v1194_v49 = vsel %vm1190_vm7, %v1178_v61, %v1193_v33 }
 0x144   : > { %v1203_v59 = vsel %vm1189_vm8, %v1200_v46, %v1202_v32  ;;  %v5042_v18 = vmul.u32.u64.low %v1204_v1, %v1199_v6  ;;  %v5043_v40 = vmul.u32.u64.high %v1204_v1, %v1199_v6, %v5042_v18  ;;  %v1271_v54 = vsel %vm1270_vm1, %v4861_v28, 0 }
 0x145   : > { %v1374_v27 = vsel %vm1373_vm9, %v1372_v20, 0  ;;  %v2592_v36 = vsel %vm2588_vm5, %v2572_v5, %v4890_v15  ;;  %v1016_v16 = vsub.s32 0, %v5034_v25  ;;  %v2594_v61 = vsel %vm2590_vm15, %v4898_v60, %v2593_v47 }
 0x146   : > { %v2614_v53 = vadd.s32 1, %v4963_v19  ;;  %v5057_v2 = vmul.u32.u64.low %v1204_v1, %v1203_v59  ;;  %v5058_v41 = vmul.u32.u64.high %v1204_v1, %v1203_v59, %v5057_v2  ;;  %v2226_v63 = vcvt.s32.f32 %v4847_v12 }
 0x147   : > { %vm2613_vm14 = vc.u32 %v4970_v9, %v4962_v8  ;;  %v3417_v28 = vmin.u32 %v1016_v16, %v5034_v25  ;;  %v1195_v15 = vsel %vm1189_vm8, %v1192_v45, %v1194_v49  ;;  %v5066_v20 = vshrl.u32 %v2823_v51, 30 }
 0x148   : > { %v5068_v43 = vshrl.u32 %v1271_v54, 5  ;;  %v5070_v60 = vand.u32 31, %v1271_v54  ;;  %v1214_v0 = vadd.s32 1, %v5043_v40  ;;  %v5073_v17 = vmul.f32 %v2226_v63, %v2224_v26 }
 0x149   : > { %6774 = vst [vmem:[#allocation40_spill] sm:$0xff] %v5066_v20  ;;  %v5075_v37 = vand.u32 31, %v1374_v27  ;;  %v2595_v12 = vsel %vm2589_vm10, %v2592_v36, %v2594_v61  ;;  %v1018_v56 = vclz %v3417_v28  ;;  %v2615_v14 = vsel %vm2613_vm14, %v2614_v53, %v4963_v19 }
 0x14a   : > { %v2662_v62 = vand.u32 2139095040, %v5002_v35  ;;  %v1211_v33 = vmul.u32 %v1204_v1, %v1195_v15  ;;  %vm1213_vm5 = vc.u32 %v5058_v41, %v5042_v18  ;;  %v1036_v46 = vsub.s32 4, %v5013_v57 }
 0x14b   : > { %v3418_v6 = vadd.s32 4294967294, %v1018_v56  ;;  %v1215_v26 = vsel %vm1213_vm5, %v1214_v0, %v5043_v40  ;;  %v847_v51 = vand.u32 2147483647, %v4569_v52  ;;  %v2825_v32 = vshll.u32 %v5066_v20, 30 }
 0x14c   : > { %v5087_v31 = vshrl.u32 %v1374_v27, 5  ;;  %v2611_v5 = vmul.u32 %v4867_v50, %v2595_v12  ;;  %v1216_v19 = vadd.s32 %v1215_v26, %v1211_v33  ;;  %v5091_v47 = vsub.s32 32, %v5075_v37 }
 0x14d   : > { %v6775_v1 = vand.u32 2147483647, %v4586_v21  ;;  %vm952_vm4 = vcmp.lt.s32.totalorder %v4586_v21, 0  ;;  %vm3419_vm13 = vcmp.lt.s32.totalorder %v3418_v6, 0  ;;  %v1006_v59 = vadd.s32 %v4947_v23, %v4957_v58 }
 0x14e   : > { %v5100_v49 = vadd.s32 %v2615_v14, %v2611_v5  ;;  %v1021_v40 = vsel %vm3419_vm13, 0, %v3418_v6  ;;  %v1217_v50 = vadd.s32 536870912, %v1216_v19  ;;  %v5107_v36 = vsel %vm952_vm4, %v1036_v46, %v5013_v57 }
 0x14f   : > { %vm5095_vm15 = vcmp.le.f32.partialorder %v6775_v1, 0.7853982  ;;  %v1022_v54 = vsub.s32 32, %v1021_v40  ;;  %v1026_v27 = vsub.s32 4294967266, %v1021_v40  ;;  %v854_v16 = vand.u32 8388607, %v847_v51 }
 0x150   : > { %v1023_v61 = vshll.u32 %v5034_v25, %v1021_v40  ;;  %v5112_v53 = vshrl.u32 %v1217_v50, 30  ;;  %v865_v2 = vshrl.u32 %v6756_v24, %v4699_v42  ;;  %v868_v23 = vshrl.u32 %v6757_v7, %v4699_v42 }
 0x151   : > { %v1024_v58 = vshrl.u32 %v1006_v59, %v1022_v54  ;;  %v1027_v63 = vadd.s32 127, %v1026_v27  ;;  %v871_v28 = vshrl.u32 %v6755_v55, %v4699_v42  ;;  %v874_v57 = vshrl.u32 %v6753_v39, %v4699_v42 }
 0x152   : > { %v1219_v15 = vshll.u32 %v5112_v53, 30  ;;  %v864_v25 = vshll.u32 %v6758_v11, %v4668_v4  ;;  %v867_v0 = vshll.u32 %v6756_v24, %v4668_v4  ;;  %v870_v12 = vshll.u32 %v6757_v7, %v4668_v4 }
 0x153   : > { %v1025_v56 = vor.u32 %v1024_v58, %v1023_v61  ;;  %v1028_v14 = vshll.u32 %v1027_v63, 23  ;;  %v873_v33 = vshll.u32 %v6755_v55, %v4668_v4  ;;  %v877_v6 = vshrl.u32 %v6754_v34, %v4699_v42 }
 0x154   : > { %v5133_v46 = vsub.s32 %v1216_v19, %v1219_v15  ;;  %v866_v26 = vor.u32 %v865_v2, %v864_v25  ;;  %v869_v5 = vor.u32 %v868_v23, %v867_v0  ;;  %v876_v1 = vshll.u32 %v6753_v39, %v4668_v4 }
 0x155   : > { %v2617_v59 = vadd.s32 536870912, %v5100_v49  ;;  %v1029_v40 = vor.u32 4788187, %v1028_v14  ;;  %v872_v50 = vor.u32 %v871_v28, %v870_v12  ;;  %v875_v54 = vor.u32 %v874_v57, %v873_v33 }
 0x156   : > { %v1039_v27 = vsel %vm5095_vm15, 0, %v5107_v36  ;;  %v1222_v61 = vsub.s32 0, %v5133_v46  ;;  %v863_v19 = vshrl.u32 %v6758_v11, %v4699_v42  ;;  %v878_v58 = vor.u32 %v877_v6, %v876_v1 }
 0x157   : > { %v1030_v2 = vand.u32 2147483647, %v1029_v40  ;;  %v1032_v23 = vcvt.s32.f32 %v1025_v56  ;;  %v855_v63 = vor.u32 8388608, %v854_v16  ;;  %vm879_vm12 = vcmp.lt.s32.totalorder %v4691_v10, 1 }
 0x158   : > { %v3425_v4 = vmin.u32 %v1222_v61, %v5133_v46  ;;  %vm880_vm11 = vcmp.lt.s32.totalorder %v4691_v10, 2  ;;  %vm882_vm10 = vcmp.lt.s32.totalorder %v4691_v10, 4  ;;  %v887_v36 = vsel %vm879_vm12, %v866_v26, %v869_v5 }
 0x159   : > { %v1033_v28 = vmul.f32 %v1032_v23, %v1030_v2  ;;  %vm881_vm0 = vcmp.lt.s32.totalorder %v4691_v10, 3  ;;  %v888_v57 = vsel %vm882_vm10, %v875_v54, 920167782  ;;  %v891_v42 = vsel %vm879_vm12, %v869_v5, %v872_v50 }
 0x15a   : > { %v1224_v15 = vclz %v3425_v4  ;;  %v884_v16 = vsel %vm882_vm10, %v872_v50, 2102212464  ;;  %v889_v25 = vsel %vm881_vm0, %v872_v50, %v888_v57  ;;  %v892_v0 = vsel %vm882_vm10, %v878_v58, 1326507024 }
 0x15b   : > { %v1034_v12 = vxor.u32 2147483648, %v1033_v28  ;;  %v890_v56 = vsel %vm880_vm11, %v887_v36, %v889_v25  ;;  %v893_v14 = vsel %vm881_vm0, %v875_v54, %v892_v0  ;;  %v895_v33 = vshll.u32 %v855_v63, 8 }
 0x15c   : > { %v3426_v6 = vadd.s32 4294967294, %v1224_v15  ;;  %v1242_v1 = vsub.s32 4, %v5112_v53  ;;  %v883_v40 = vsel %vm879_vm12, %v863_v19, %v866_v26  ;;  %v894_v61 = vsel %vm880_vm11, %v891_v42, %v893_v14 }
 0x15d   : > { %v1035_v50 = vsel %vm952_vm4, %v1034_v12, %v1033_v28  ;;  %v885_v58 = vsel %vm881_vm0, %v869_v5, %v884_v16  ;;  %v5168_v2 = vmul.u32.u64.low %v895_v33, %v894_v61  ;;  %v5169_v23 = vmul.u32.u64.high %v895_v33, %v894_v61, %v5168_v2  ;;  %v5181_v5 = vpop.f32.mrb[4].mxu0 }
 0x15e   : > { %v1038_v54 = vsel %vm5095_vm15, %v4586_v21, %v1035_v50  ;;  %vm3427_vm1 = vcmp.lt.s32.totalorder %v3426_v6, 0  ;;  %v5174_v63 = vmul.u32.u64.low %v895_v33, %v890_v56  ;;  %v5175_v4 = vmul.u32.u64.high %v895_v33, %v890_v56, %v5174_v63 }
 0x15f   : > { %3733 = vcosq.f32 %v1038_v54  ;;  %vm1158_vm2 = vcmp.lt.s32.totalorder %v4563_v48, 0  ;;  %v1212_v26 = vadd.s32 %v5042_v18, %v5058_v41  ;;  %v1227_v19 = vsel %vm3427_vm1, 0, %v3426_v6 }
 0x160   : > { %3735 = vsinq.f32 %v1038_v54  ;;  %v1228_v36 = vsub.s32 32, %v1227_v19  ;;  %v1232_v28 = vsub.s32 4294967266, %v1227_v19  ;;  %v886_v45 = vsel %vm880_vm11, %v883_v40, %v885_v58 }
 0x161   : > { %v5185_v57 = vand.u32 3, %v1039_v27  ;;  %v5190_v42 = vsel %vm1158_vm2, %v1242_v1, %v5112_v53  ;;  %vm904_vm3 = vc.u32 %v5169_v23, %v5174_v63  ;;  %v6694_v18 = vand.u32 2147483647, %v4560_v22  ;;  %v6782_v1 = vld [vmem:[#allocation18_spill] sm:$0xff] }
 0x162   : > { %v1229_v41 = vshll.u32 %v5133_v46, %v1227_v19  ;;  %v1230_v15 = vshrl.u32 %v1212_v26, %v1228_v36  ;;  %v1233_v16 = vadd.s32 127, %v1232_v28  ;;  %v905_v25 = vadd.s32 1, %v5175_v4 }
 0x163   : > { %v5200_v10 = vsub.s32 %v4986_v30, %v2825_v32  ;;  %v5202_v27 = vshrl.u32 %v2617_v59, 30  ;;  %vm5206_vm7 = vcmp.le.f32.partialorder %v1156_v13, 0.7853982  ;;  %v902_v0 = vmul.u32 %v895_v33, %v886_v45 }
 0x164   : > { %v1231_v12 = vor.u32 %v1230_v15, %v1229_v41  ;;  %v1234_v46 = vshll.u32 %v1233_v16, 23  ;;  %v1245_v56 = vsel %vm5206_vm7, 0, %v5190_v42  ;;  %v906_v14 = vsel %vm904_vm3, %v905_v25, %v5175_v4 }
 0x165   : > { %6778 = vst [vmem:[#allocation41_spill] sm:$0xff] %v5200_v10  ;;  %6779 = vst [vmem:[#allocation42_spill] sm:$0xff] %v5202_v27  ;;  %v907_v6 = vadd.s32 %v906_v14, %v902_v0  ;;  %v1060_v30 = vand.u32 8388607, %v6694_v18  ;;  %v1071_v32 = vshrl.u32 %v6756_v24, %v4681_v44  ;;  %v1077_v13 = vshrl.u32 %v6755_v55, %v4681_v44 }
 0x166   : > { %vm1048_vm8 = vcmp.eq.s32.totalorder %v5185_v57, 2  ;;  %v1235_v59 = vor.u32 4788187, %v1234_v46  ;;  %v1074_v33 = vshrl.u32 %v6757_v7, %v4681_v44  ;;  %v1076_v40 = vshll.u32 %v6757_v7, %v6782_v1 }
 0x167   : > { %v1080_v61 = vshrl.u32 %v6753_v39, %v4681_v44  ;;  %vm1045_vm9 = vcmp.eq.s32.totalorder %v5185_v57, 0  ;;  %v908_v50 = vadd.s32 536870912, %v907_v6  ;;  %v1070_v58 = vshll.u32 %v6758_v11, %v6782_v1 }
 0x168   : > { %v1073_v2 = vshll.u32 %v6756_v24, %v6782_v1  ;;  %v1079_v54 = vshll.u32 %v6755_v55, %v6782_v1  ;;  %v1236_v4 = vand.u32 2147483647, %v1235_v59  ;;  %v1238_v26 = vcvt.s32.f32 %v1231_v12  ;;  %v6783_v59 = vld [vmem:[#allocation21_spill] sm:$0xff] }
 0x169   : > { %v1078_v19 = vor.u32 %v1077_v13, %v1076_v40  ;;  %v1083_v36 = vshrl.u32 %v6754_v34, %v4681_v44  ;;  %v3734_v28 = vpop.eup %3733  ;;  %v5236_v45 = vshrl.u32 %v908_v50, 30  ;;  %v1061_v42 = vor.u32 8388608, %v1060_v30 }
 0x16a   : > { %v1069_v41 = vshrl.u32 %v6758_v11, %v4681_v44  ;;  %v1081_v15 = vor.u32 %v1080_v61, %v1079_v54  ;;  %v3736_v16 = vpop.eup %3735  ;;  %v1239_v25 = vmul.f32 %v1238_v26, %v1236_v4  ;;  %v1072_v0 = vor.u32 %v1071_v32, %v1070_v58 }
 0x16b   : > { %v1075_v46 = vor.u32 %v1074_v33, %v1073_v2  ;;  %v1082_v14 = vshll.u32 %v6753_v39, %v6782_v1  ;;  %v1049_v12 = vxor.u32 2147483648, %v3734_v28  ;;  %v910_v13 = vshll.u32 %v5236_v45, 30 }
 0x16c   : > { %vm1085_vm14 = vcmp.lt.s32.totalorder %v6783_v59, 1  ;;  %vm1088_vm5 = vcmp.lt.s32.totalorder %v6783_v59, 4  ;;  %v1046_v40 = vxor.u32 2147483648, %v3736_v16  ;;  %v1240_v30 = vxor.u32 2147483648, %v1239_v25 }
 0x16d   : > { %v1084_v50 = vor.u32 %v1083_v36, %v1082_v14  ;;  %v1090_v44 = vsel %vm1088_vm5, %v1078_v19, 2102212464  ;;  %v5247_v61 = vsub.s32 %v907_v6, %v910_v13  ;;  %vm1086_vm15 = vcmp.lt.s32.totalorder %v6783_v59, 2 }
 0x16e   : > { %vm1087_vm4 = vcmp.lt.s32.totalorder %v6783_v59, 3  ;;  %v1094_v32 = vsel %vm1088_vm5, %v1081_v15, 920167782  ;;  %v1241_v33 = vsel %vm1158_vm2, %v1240_v30, %v1239_v25  ;;  %v1089_v1 = vsel %vm1085_vm14, %v1069_v41, %v1072_v0 }
 0x16f   : > { %v1093_v58 = vsel %vm1085_vm14, %v1072_v0, %v1075_v46  ;;  %v1095_v6 = vsel %vm1087_vm4, %v1078_v19, %v1094_v32  ;;  %v1050_v2 = vsel %vm1048_vm8, %v1049_v12, %v3736_v16  ;;  %v1244_v54 = vsel %vm5206_vm7, %v4563_v48, %v1241_v33 }
 0x170   : > { %v913_v4 = vsub.s32 0, %v5247_v61  ;;  %v1091_v26 = vsel %vm1087_vm4, %v1075_v46, %v1090_v44  ;;  %v1047_v36 = vsel %vm1045_vm9, %v3734_v28, %v1046_v40  ;;  %3737 = vcosq.f32 %v1244_v54 }
 0x171   : > { %v1097_v41 = vsel %vm1085_vm14, %v1075_v46, %v1078_v19  ;;  %v1098_v25 = vsel %vm1088_vm5, %v1084_v50, 1326507024  ;;  %vm1044_vm13 = vcmp.lt.s32.totalorder %v5185_v57, 2  ;;  %3739 = vsinq.f32 %v1244_v54 }
 0x172   : > { %v3413_v53 = vmin.u32 %v913_v4, %v5247_v61  ;;  %v1096_v16 = vsel %vm1086_vm15, %v1093_v58, %v1095_v6  ;;  %v1249_v0 = vand.u32 3, %v1245_v56  ;;  %v1092_v14 = vsel %vm1086_vm15, %v1089_v1, %v1091_v26 }
 0x173   : > { %v1099_v28 = vsel %vm1087_vm4, %v1081_v15, %v1098_v25  ;;  %v1101_v12 = vshll.u32 %v1061_v42, 8  ;;  %v1051_v19 = vsel %vm1044_vm13, %v1047_v36, %v1050_v2  ;;  %v6693_v57 = vand.u32 2147483647, %v4779_v38 }
 0x174   : > { %v915_v46 = vclz %v3413_v53  ;;  %v1100_v13 = vsel %vm1086_vm15, %v1097_v41, %v1099_v28  ;;  %v2828_v56 = vsub.s32 0, %v5200_v10  ;;  %v2619_v32 = vshll.u32 %v5202_v27, 30 }
 0x175   : > { %v5286_v40 = vmul.u32.u64.low %v1101_v12, %v1100_v13  ;;  %v5287_v30 = vmul.u32.u64.high %v1101_v12, %v1100_v13, %v5286_v40  ;;  %v5289_v50 = vmul.u32.u64.low %v1101_v12, %v1096_v16  ;;  %v5290_v44 = vmul.u32.u64.high %v1101_v12, %v1096_v16, %v5289_v50 }
 0x176   : > { %vm1042_vm12 = vweird.f32 %v4586_v21  ;;  %v3414_v42 = vadd.s32 4294967294, %v915_v46  ;;  %vm1250_vm11 = vcmp.lt.s32.totalorder %v1249_v0, 2  ;;  %vm1251_vm10 = vcmp.eq.s32.totalorder %v1249_v0, 0 }
 0x177   : > { %vm1254_vm0 = vcmp.eq.s32.totalorder %v1249_v0, 2  ;;  %v903_v15 = vadd.s32 %v5174_v63, %v5169_v23  ;;  %v933_v59 = vsub.s32 4, %v5236_v45  ;;  %v1052_v33 = vsel %vm1042_vm12, nan, %v1051_v19 }
 0x178   : > { %vm1248_vm1 = vweird.f32 %v4563_v48  ;;  %vm3415_vm2 = vcmp.lt.s32.totalorder %v3414_v42, 0  ;;  %v1108_v1 = vmul.u32 %v1101_v12, %v1092_v14  ;;  %v5302_v58 = vand.u32 8388607, %v6693_v57 }
 0x179   : > { %v918_v6 = vsel %vm3415_vm2, 0, %v3414_v42  ;;  %vm1110_vm3 = vc.u32 %v5287_v30, %v5289_v50  ;;  %v1111_v21 = vadd.s32 1, %v5290_v44  ;;  %v1380_v23 = vshrl.u32 %v6756_v24, %v5091_v47 }
 0x17a   : > { %vm849_vm7 = vcmp.lt.s32.totalorder %v4569_v52, 0  ;;  %v919_v63 = vsub.s32 32, %v918_v6  ;;  %v923_v2 = vsub.s32 4294967266, %v918_v6  ;;  %v1379_v54 = vshll.u32 %v6758_v11, %v5075_v37  ;;  %v3738_v26 = vpop.eup %3737 }
 0x17b   : > { %v1382_v4 = vshll.u32 %v6756_v24, %v5075_v37  ;;  %v920_v36 = vshll.u32 %v5247_v61, %v918_v6  ;;  %v1112_v41 = vsel %vm1110_vm3, %v1111_v21, %v5290_v44  ;;  %v1383_v25 = vshrl.u32 %v6757_v7, %v5091_v47  ;;  %v3740_v16 = vpop.eup %3739 }
 0x17c   : > { %v1385_v53 = vshll.u32 %v6757_v7, %v5075_v37  ;;  %v1255_v14 = vxor.u32 2147483648, %v3738_v26  ;;  %v921_v28 = vshrl.u32 %v903_v15, %v919_v63  ;;  %v924_v12 = vadd.s32 127, %v923_v2 }
 0x17d   : > { %v1113_v19 = vadd.s32 %v1112_v41, %v1108_v1  ;;  %v1252_v46 = vxor.u32 2147483648, %v3740_v16  ;;  %v1381_v13 = vor.u32 %v1380_v23, %v1379_v54  ;;  %v1386_v40 = vshrl.u32 %v6755_v55, %v5091_v47 }
 0x17e   : > { %v1389_v61 = vshrl.u32 %v6753_v39, %v5091_v47  ;;  %v1256_v44 = vsel %vm1254_vm0, %v1255_v14, %v3740_v16  ;;  %v922_v42 = vor.u32 %v921_v28, %v920_v36  ;;  %v925_v6 = vshll.u32 %v924_v12, 23 }
 0x17f   : > { %v1114_v21 = vadd.s32 536870912, %v1113_v19  ;;  %v1253_v57 = vsel %vm1251_vm10, %v3738_v26, %v1252_v46  ;;  %v1388_v15 = vshll.u32 %v6755_v55, %v5075_v37  ;;  %v1391_v1 = vshll.u32 %v6753_v39, %v5075_v37 }
 0x180   : > { %v1392_v23 = vshrl.u32 %v6754_v34, %v5091_v47  ;;  %v1257_v63 = vsel %vm1250_vm11, %v1253_v57, %v1256_v44  ;;  %v926_v2 = vor.u32 4788187, %v925_v6  ;;  %v1384_v41 = vor.u32 %v1383_v25, %v1382_v4 }
 0x181   : > { %v5333_v54 = vshrl.u32 %v1114_v21, 30  ;;  %v1258_v36 = vsel %vm1248_vm1, nan, %v1257_v63  ;;  %v1387_v16 = vor.u32 %v1386_v40, %v1385_v53  ;;  %v1390_v26 = vor.u32 %v1389_v61, %v1388_v15 }
 0x182   : > { %v1393_v14 = vor.u32 %v1392_v23, %v1391_v1  ;;  %v3550_v28 = vpack.c.bf16 %v1258_v36, %v1052_v33  ;;  %v927_v12 = vand.u32 2147483647, %v926_v2  ;;  %v929_v46 = vcvt.s32.f32 %v922_v42  ;;  %v5388_v36 = vpop.f32.mrb[5].mxu0 }
 0x183   : > { %v1116_v37 = vshll.u32 %v5333_v54, 30  ;;  %v5339_v18 = vmin.u32 %v2828_v56, %v5200_v10  ;;  %v5342_v0 = vsub.s32 %v5100_v49, %v2619_v32  ;;  %vm5346_vm8 = vcmp.le.f32.partialorder %v847_v51, 0.7853982 }
 0x184   : > { %v934_v48 = vsel %vm849_vm7, %v933_v59, %v5236_v45  ;;  %3551 = vmatprep.subr.bf16.mxu1 %v3550_v28  ;;  %v930_v33 = vmul.f32 %v929_v46, %v927_v12  ;;  %v1370_v56 = vor.u32 8388608, %v5302_v58  ;;  %vm1397_vm9 = vcmp.lt.s32.totalorder %v5087_v31, 4  ;;  %v5398_v28 = vpop.f32.mrb[6].mxu0 }
 0x185   : > { %v5353_v4 = vsub.s32 %v1113_v19, %v1116_v37  ;;  %vm1394_vm14 = vcmp.lt.s32.totalorder %v5087_v31, 1  ;;  %vm1396_vm5 = vcmp.lt.s32.totalorder %v5087_v31, 3  ;;  %v1403_v51 = vsel %vm1397_vm9, %v1390_v26, 920167782  ;;  %v5406_v37 = vpop.f32.mrb[7].mxu0 }
 0x186   : > { %v1407_v49 = vsel %vm1397_vm9, %v1393_v14, 1326507024  ;;  %v931_v32 = vxor.u32 2147483648, %v930_v33  ;;  %v1402_v45 = vsel %vm1394_vm14, %v1381_v13, %v1384_v41  ;;  %v1406_v59 = vsel %vm1394_vm14, %v1384_v41, %v1387_v16 }
 0x187   : > { %v1119_v25 = vsub.s32 0, %v5353_v4  ;;  %v1378_v58 = vshrl.u32 %v6758_v11, %v5091_v47  ;;  %v1399_v53 = vsel %vm1397_vm9, %v1387_v16, 2102212464  ;;  %v1404_v19 = vsel %vm1396_vm5, %v1387_v16, %v1403_v51 }
 0x188   : > { %v1408_v40 = vsel %vm1396_vm5, %v1390_v26, %v1407_v49  ;;  %v932_v61 = vsel %vm849_vm7, %v931_v32, %v930_v33  ;;  %vm1395_vm15 = vcmp.lt.s32.totalorder %v5087_v31, 2  ;;  %v1410_v42 = vshll.u32 %v1370_v56, 8 }
 0x189   : > { %v3421_v44 = vmin.u32 %v1119_v25, %v5353_v4  ;;  %v935_v6 = vsel %vm5346_vm8, %v4569_v52, %v932_v61  ;;  %v1398_v47 = vsel %vm1394_vm14, %v1378_v58, %v1381_v13  ;;  %v1405_v21 = vsel %vm1395_vm15, %v1402_v45, %v1404_v19 }
 0x18a   : > { %v1409_v15 = vsel %vm1395_vm15, %v1406_v59, %v1408_v40  ;;  %v1400_v23 = vsel %vm1396_vm5, %v1384_v41, %v1399_v53  ;;  %v5392_v26 = vsub.s32 32, %v5070_v60  ;;  %v5402_v12 = vshrl.u32 %v2662_v62, 23  ;;  %v6789_v40 = vld [vmem:[#allocation16_spill] sm:$0xff] }
 0x18b   : > { %v1121_v1 = vclz %v3421_v44  ;;  %v5385_v63 = vmul.u32.u64.low %v1410_v42, %v1409_v15  ;;  %v5386_v2 = vmul.u32.u64.high %v1410_v42, %v1409_v15, %v5385_v63  ;;  %v936_v41 = vsel %vm5346_vm8, 0, %v934_v48 }
 0x18c   : > { %v5394_v13 = vmul.u32.u64.low %v1410_v42, %v1405_v21  ;;  %v5395_v14 = vmul.u32.u64.high %v1410_v42, %v1405_v21, %v5394_v13  ;;  %3741 = vcosq.f32 %v935_v6  ;;  %v2830_v33 = vclz %v5339_v18 }
 0x18d   : > { %v3422_v46 = vadd.s32 4294967294, %v1121_v1  ;;  %3743 = vsinq.f32 %v935_v6  ;;  %v1139_v56 = vsub.s32 4, %v5333_v54  ;;  %v1401_v51 = vsel %vm1395_vm15, %v1398_v47, %v1400_v23 }
 0x18e   : > { %v2622_v49 = vsub.s32 0, %v5342_v0  ;;  %v6786_v62 = vand.u32 2147483647, %v4560_v22  ;;  %vm1419_vm12 = vc.u32 %v5386_v2, %v5394_v13  ;;  %v5421_v57 = vand.u32 3, %v936_v41 }
 0x18f   : > { %vm3423_vm13 = vcmp.lt.s32.totalorder %v3422_v46, 0  ;;  %vm1055_vm11 = vcmp.lt.s32.totalorder %v4560_v22, 0  ;;  %v1420_v31 = vadd.s32 1, %v5395_v14  ;;  %v1109_v25 = vadd.s32 %v5289_v50, %v5287_v30 }
 0x190   : > { %vm5415_vm4 = vcmp.le.f32.partialorder %v6786_v62, 0.7853982  ;;  %v1124_v48 = vsel %vm3423_vm13, 0, %v3422_v46  ;;  %v1417_v58 = vmul.u32 %v1410_v42, %v1401_v51  ;;  %v1140_v53 = vsel %vm1055_vm11, %v1139_v56, %v5333_v54 }
 0x191   : > { %v1125_v45 = vsub.s32 32, %v1124_v48  ;;  %v1129_v59 = vsub.s32 4294967266, %v1124_v48  ;;  %v1421_v19 = vsel %vm1419_vm12, %v1420_v31, %v5395_v14  ;;  %v1568_v61 = vand.u32 2147483647, %v6789_v40 }
 0x192   : > { %v1586_v44 = vshrl.u32 %v6756_v24, %v4834_v29  ;;  %v1126_v6 = vshll.u32 %v5353_v4, %v1124_v48  ;;  %v1422_v15 = vadd.s32 %v1421_v19, %v1417_v58  ;;  %v1589_v30 = vshrl.u32 %v6757_v7, %v4834_v29 }
 0x193   : > { %v1127_v47 = vshrl.u32 %v1109_v25, %v1125_v45  ;;  %v1130_v21 = vadd.s32 127, %v1129_v59  ;;  %v1592_v50 = vshrl.u32 %v6755_v55, %v4834_v29  ;;  %v1594_v54 = vshll.u32 %v6755_v55, %v4805_v3 }
 0x194   : > { %v1595_v42 = vshrl.u32 %v6753_v39, %v4834_v29  ;;  %vm945_vm10 = vcmp.eq.s32.totalorder %v5421_v57, 2  ;;  %v1423_v4 = vadd.s32 536870912, %v1422_v15  ;;  %v1585_v63 = vshll.u32 %v6758_v11, %v4805_v3 }
 0x195   : > { %v1128_v1 = vor.u32 %v1127_v47, %v1126_v6  ;;  %v1131_v23 = vshll.u32 %v1130_v21, 23  ;;  %vm942_vm0 = vcmp.eq.s32.totalorder %v5421_v57, 0  ;;  %v1588_v14 = vshll.u32 %v6756_v24, %v4805_v3 }
 0x196   : > { %v1591_v41 = vshll.u32 %v6757_v7, %v4805_v3  ;;  %v1596_v46 = vor.u32 %v1595_v42, %v1594_v54  ;;  %v1598_v56 = vshrl.u32 %v6754_v34, %v4834_v29  ;;  %v3742_v51 = vpop.eup %3741  ;;  %v1142_v48 = vsel %vm5415_vm4, 0, %v1140_v53  ;;  %v6790_v42 = vld [vmem:[#allocation33_spill] sm:$0xff] }
 0x197   : > { %v1132_v62 = vor.u32 4788187, %v1131_v23  ;;  %v5455_v31 = vshrl.u32 %v1423_v4, 30  ;;  %v1575_v25 = vand.u32 8388607, %v1568_v61  ;;  %v3744_v45 = vpop.eup %3743  ;;  %v1587_v59 = vor.u32 %v1586_v44, %v1585_v63 }
 0x198   : > { %v1590_v58 = vor.u32 %v1589_v30, %v1588_v14  ;;  %v1593_v19 = vor.u32 %v1592_v50, %v1591_v41  ;;  %v1597_v6 = vshll.u32 %v6753_v39, %v4805_v3  ;;  %v1135_v21 = vcvt.s32.f32 %v1128_v1 }
 0x199   : > { %v1133_v47 = vand.u32 2147483647, %v1132_v62  ;;  %v1425_v54 = vshll.u32 %v5455_v31, 30  ;;  %vm1603_vm1 = vcmp.lt.s32.totalorder %v6790_v42, 4  ;;  %vm941_vm2 = vcmp.lt.s32.totalorder %v5421_v57, 2 }
 0x19a   : > { %v946_v53 = vxor.u32 2147483648, %v3742_v51  ;;  %v5464_v23 = vand.u32 3, %v1142_v48  ;;  %v1599_v4 = vor.u32 %v1598_v56, %v1597_v6  ;;  %v1609_v44 = vsel %vm1603_vm1, %v1596_v46, 920167782 }
 0x19b   : > { %v943_v30 = vxor.u32 2147483648, %v3744_v45  ;;  %v1136_v50 = vmul.f32 %v1135_v21, %v1133_v47  ;;  %v5468_v63 = vsub.s32 %v1422_v15, %v1425_v54  ;;  %v1584_v3 = vshrl.u32 %v6758_v11, %v4834_v29 }
 0x19c   : > { %v1576_v1 = vor.u32 8388608, %v1575_v25  ;;  %vm1600_vm3 = vcmp.lt.s32.totalorder %v6790_v42, 1  ;;  %vm1601_vm7 = vcmp.lt.s32.totalorder %v6790_v42, 2  ;;  %vm1602_vm8 = vcmp.lt.s32.totalorder %v6790_v42, 3 }
 0x19d   : > { %v1137_v14 = vxor.u32 2147483648, %v1136_v50  ;;  %v1428_v41 = vsub.s32 0, %v5468_v63  ;;  %v1608_v56 = vsel %vm1600_vm3, %v1587_v59, %v1590_v58  ;;  %v1610_v62 = vsel %vm1602_vm8, %v1593_v19, %v1609_v44 }
 0x19e   : > { %v947_v15 = vsel %vm945_vm10, %v946_v53, %v3744_v45  ;;  %v1604_v48 = vsel %vm1600_vm3, %v1584_v3, %v1587_v59  ;;  %v1612_v6 = vsel %vm1600_vm3, %v1590_v58, %v1593_v19  ;;  %v1613_v29 = vsel %vm1603_vm1, %v1599_v4, 1326507024 }
 0x19f   : > { %v944_v25 = vsel %vm942_vm0, %v3742_v51, %v943_v30  ;;  %v1138_v47 = vsel %vm1055_vm11, %v1137_v14, %v1136_v50  ;;  %v3433_v21 = vmin.u32 %v1428_v41, %v5468_v63  ;;  %v1605_v54 = vsel %vm1603_vm1, %v1593_v19, 2102212464 }
 0x1a0   : > { %v1141_v45 = vsel %vm5415_vm4, %v4560_v22, %v1138_v47  ;;  %v1611_v59 = vsel %vm1601_vm7, %v1608_v56, %v1610_v62  ;;  %v1614_v53 = vsel %vm1602_vm8, %v1596_v46, %v1613_v29  ;;  %v1616_v4 = vshll.u32 %v1576_v1, 8 }
 0x1a1   : > { %3745 = vcosq.f32 %v1141_v45  ;;  %v1430_v51 = vclz %v3433_v21  ;;  %v1448_v44 = vsub.s32 4, %v5455_v31  ;;  %v1615_v30 = vsel %vm1601_vm7, %v1612_v6, %v1614_v53 }
 0x1a2   : > { %3747 = vsinq.f32 %v1141_v45  ;;  %v1606_v19 = vsel %vm1602_vm8, %v1590_v58, %v1605_v54  ;;  %v5501_v32 = vmul.u32.u64.low %v1616_v4, %v1615_v30  ;;  %v5502_v50 = vmul.u32.u64.high %v1616_v4, %v1615_v30, %v5501_v32  ;;  %v6791_v58 = vld [vmem:[#allocation28_spill] sm:$0xff] }
 0x1a3   : > { %v948_v3 = vsel %vm941_vm2, %v944_v25, %v947_v15  ;;  %v3434_v14 = vadd.s32 4294967294, %v1430_v51  ;;  %v5506_v46 = vmul.u32.u64.low %v1616_v4, %v1611_v59  ;;  %v5507_v1 = vmul.u32.u64.high %v1616_v4, %v1611_v59, %v5506_v46 }
 0x1a4   : > { %v5512_v41 = vadd.s32 4294967294, %v2830_v33  ;;  %v5517_v56 = vmin.u32 %v2622_v49, %v5342_v0  ;;  %vm939_vm9 = vweird.f32 %v4569_v52  ;;  %v6695_v62 = vand.u32 2147483647, %v6791_v58 }
 0x1a5   : > { %vm1151_vm14 = vcmp.eq.s32.totalorder %v5464_v23, 2  ;;  %vm1364_vm5 = vcmp.lt.s32.totalorder %v4779_v38, 0  ;;  %vm3435_vm15 = vcmp.lt.s32.totalorder %v3434_v14, 0  ;;  %v1607_v57 = vsel %vm1601_vm7, %v1604_v48, %v1606_v19 }
 0x1a6   : > { %v5525_v18 = vsel %vm939_vm9, nan, %v948_v3  ;;  %vm1148_vm4 = vcmp.eq.s32.totalorder %v5464_v23, 0  ;;  %v1418_v33 = vadd.s32 %v5394_v13, %v5386_v2  ;;  %v1433_v49 = vsel %vm3435_vm15, 0, %v3434_v14 }
 0x1a7   : > { %vm1625_vm13 = vc.u32 %v5502_v50, %v5506_v46  ;;  %vm1147_vm12 = vcmp.lt.s32.totalorder %v5464_v23, 2  ;;  %v1434_v52 = vsub.s32 32, %v1433_v49  ;;  %v1438_v15 = vsub.s32 4294967266, %v1433_v49 }
 0x1a8   : > { %v5536_v42 = vsel %vm1364_vm5, %v1448_v44, %v5455_v31  ;;  %v1626_v48 = vadd.s32 1, %v5507_v1  ;;  %vm1145_vm11 = vweird.f32 %v4560_v22  ;;  %v1435_v6 = vshll.u32 %v5468_v63, %v1433_v49 }
 0x1a9   : > { %v1623_v2 = vmul.u32 %v1616_v4, %v1607_v57  ;;  %v5543_v13 = vand.u32 8388607, %v6695_v62  ;;  %v1277_v29 = vshrl.u32 %v6756_v24, %v5392_v26  ;;  %v1436_v25 = vshrl.u32 %v1418_v33, %v1434_v52 }
 0x1aa   : > { %v1439_v47 = vadd.s32 127, %v1438_v15  ;;  %v1627_v21 = vsel %vm1625_vm13, %v1626_v48, %v5507_v1  ;;  %v1286_v31 = vshrl.u32 %v6753_v39, %v5392_v26  ;;  %v1276_v45 = vshll.u32 %v6758_v11, %v5070_v60 }
 0x1ab   : > { %v1628_v54 = vadd.s32 %v1627_v21, %v1623_v2  ;;  %v1279_v63 = vshll.u32 %v6756_v24, %v5070_v60  ;;  %v1280_v59 = vshrl.u32 %v6757_v7, %v5392_v26  ;;  %v3746_v53 = vpop.eup %3745  ;;  %v1437_v4 = vor.u32 %v1436_v25, %v1435_v6 }
 0x1ac   : > { %v1440_v51 = vshll.u32 %v1439_v47, 23  ;;  %v1283_v44 = vshrl.u32 %v6755_v55, %v5392_v26  ;;  %v1285_v30 = vshll.u32 %v6755_v55, %v5070_v60  ;;  %v3748_v19 = vpop.eup %3747  ;;  %v1152_v32 = vxor.u32 2147483648, %v3746_v53 }
 0x1ad   : > { %v1629_v3 = vadd.s32 536870912, %v1628_v54  ;;  %v1282_v14 = vshll.u32 %v6757_v7, %v5070_v60  ;;  %v1289_v1 = vshrl.u32 %v6754_v34, %v5392_v26  ;;  %v1149_v57 = vxor.u32 2147483648, %v3748_v19 }
 0x1ae   : > { %v6792_v33 = vand.u32 2147483647, %v4779_v38  ;;  %v1441_v52 = vor.u32 4788187, %v1440_v51  ;;  %v1278_v15 = vor.u32 %v1277_v29, %v1276_v45  ;;  %v1287_v48 = vor.u32 %v1286_v31, %v1285_v30 }
 0x1af   : > { %v1153_v6 = vsel %vm1151_vm14, %v1152_v32, %v3748_v19  ;;  %v1630_v2 = vshrl.u32 %v1629_v3, 30  ;;  %v1281_v25 = vor.u32 %v1280_v59, %v1279_v63  ;;  %v1288_v47 = vshll.u32 %v6753_v39, %v5070_v60 }
 0x1b0   : > { %vm5566_vm10 = vcmp.le.f32.partialorder %v6792_v33, 0.7853982  ;;  %v1150_v21 = vsel %vm1148_vm4, %v3746_v53, %v1149_v57  ;;  %v1442_v62 = vand.u32 2147483647, %v1441_v52  ;;  %v1444_v16 = vcvt.s32.f32 %v1437_v4 }
 0x1b1   : > { %vm1570_vm0 = vcmp.lt.s32.totalorder %v6789_v40, 0  ;;  %v1284_v33 = vor.u32 %v1283_v44, %v1282_v14  ;;  %vm3515_vm1 = vcmp.lt.s32.totalorder %v5512_v41, 0  ;;  %v1154_v29 = vsel %vm1147_vm12, %v1150_v21, %v1153_v6 }
 0x1b2   : > { %v1631_v31 = vshll.u32 %v1630_v2, 30  ;;  %v1290_v45 = vor.u32 %v1289_v1, %v1288_v47  ;;  %vm1294_vm2 = vcmp.lt.s32.totalorder %v5068_v43, 4  ;;  %v1155_v60 = vsel %vm1145_vm11, nan, %v1154_v29 }
 0x1b3   : > { %v1445_v63 = vmul.f32 %v1444_v16, %v1442_v62  ;;  %v1267_v59 = vor.u32 8388608, %v5543_v13  ;;  %v1300_v53 = vsel %vm1294_vm2, %v1287_v48, 920167782  ;;  %v3552_v4 = vpack.c.bf16 %v1155_v60, %v5525_v18 }
 0x1b4   : > { %v5587_v51 = vsub.s32 %v1628_v54, %v1631_v31  ;;  %vm1291_vm3 = vcmp.lt.s32.totalorder %v5068_v43, 1  ;;  %vm1293_vm7 = vcmp.lt.s32.totalorder %v5068_v43, 3  ;;  %v1296_v44 = vsel %vm1294_vm2, %v1284_v33, 2102212464 }
 0x1b5   : > { %v1446_v23 = vxor.u32 2147483648, %v1445_v63  ;;  %v1299_v22 = vsel %vm1291_vm3, %v1278_v15, %v1281_v25  ;;  %v1301_v16 = vsel %vm1293_vm7, %v1284_v33, %v1300_v53  ;;  %3553 = vmatpush1.bf16.msra.mxu1 %v3552_v4  ;;  %v1654_v18 = vsub.s32 4, %v1630_v2 }
 0x1b6   : > { %v1634_v62 = vsub.s32 0, %v5587_v51  ;;  %v1303_v13 = vsel %vm1291_vm3, %v1281_v25, %v1284_v33  ;;  %v1304_v54 = vsel %vm1294_vm2, %v1290_v45, 1326507024  ;;  %v1275_v19 = vshrl.u32 %v6758_v11, %v5392_v26 }
 0x1b7   : > { %v1447_v30 = vsel %vm1364_vm5, %v1446_v23, %v1445_v63  ;;  %vm1292_vm8 = vcmp.lt.s32.totalorder %v5068_v43, 2  ;;  %v1305_v32 = vsel %vm1293_vm7, %v1287_v48, %v1304_v54  ;;  %v1307_v57 = vshll.u32 %v1267_v59, 8 }
 0x1b8   : > { %v1450_v3 = vsel %vm5566_vm10, %v4779_v38, %v1447_v30  ;;  %v3441_v14 = vmin.u32 %v1634_v62, %v5587_v51  ;;  %v1302_v1 = vsel %vm1292_vm8, %v1299_v22, %v1301_v16  ;;  %v1451_v52 = vsel %vm5566_vm10, 0, %v5536_v42  ;;  %v6798_v62 = vld [vmem:[#allocation35_spill] sm:$0xff] }
 0x1b9   : > { %v1295_v26 = vsel %vm1291_vm3, %v1275_v19, %v1278_v15  ;;  %v1297_v48 = vsel %vm1293_vm7, %v1281_v25, %v1296_v44  ;;  %v1306_v6 = vsel %vm1292_vm8, %v1303_v13, %v1305_v32  ;;  %v5626_v21 = vsel %vm1570_vm0, %v1654_v18, %v1630_v2  ;;  %v6795_v15 = vld [vmem:[#allocation14_spill] sm:$0xff]  ;;  %v6799_v32 = vld [vmem:[#allocation29_spill] sm:$0xff] }
 0x1ba   : > { %v1636_v47 = vclz %v3441_v14  ;;  %v5628_v33 = vmul.u32.u64.low %v1307_v57, %v1306_v6  ;;  %v5629_v29 = vmul.u32.u64.high %v1307_v57, %v1306_v6, %v5628_v33  ;;  %3749 = vcosq.f32 %v1450_v3 }
 0x1bb   : > { %v5631_v49 = vmul.u32.u64.low %v1307_v57, %v1302_v1  ;;  %v5632_v42 = vmul.u32.u64.high %v1307_v57, %v1302_v1, %v5631_v49  ;;  %v6696_v31 = vand.u32 2147483647, %v6795_v15  ;;  %v5637_v25 = vadd.s32 4294967169, %v5402_v12  ;;  %v5655_v12 = vpop.f32.mrb[8].mxu0 }
 0x1bc   : > { %3751 = vsinq.f32 %v1450_v3  ;;  %v3442_v45 = vadd.s32 4294967294, %v1636_v47  ;;  %v1298_v60 = vsel %vm1292_vm8, %v1295_v26, %v1297_v48  ;;  %v5644_v2 = vsel %vm3515_vm1, 0, %v5512_v41  ;;  %v5664_v4 = vpop.f32.mrb[9].mxu0 }
 0x1bd   : > { %v5647_v59 = vand.u32 3, %v1451_v52  ;;  %vm5651_vm9 = vcmp.le.f32.partialorder %v1568_v61, 0.7853982  ;;  %v1624_v43 = vadd.s32 %v5506_v46, %v5502_v50  ;;  %vm1316_vm5 = vc.u32 %v5629_v29, %v5631_v49  ;;  %v5669_v16 = vpop.f32.mrb[10].mxu0 }
 0x1be   : > { %vm3443_vm14 = vcmp.lt.s32.totalorder %v3442_v45, 0  ;;  %v1314_v61 = vmul.u32 %v1307_v57, %v1298_v60  ;;  %v1317_v44 = vadd.s32 1, %v5632_v42  ;;  %v1472_v22 = vand.u32 8388607, %v6696_v31  ;;  %v5675_v54 = vpop.f32.mrb[11].mxu0 }
 0x1bf   : > { %v1639_v23 = vsel %vm3443_vm14, 0, %v3442_v45  ;;  %v1483_v18 = vshrl.u32 %v6756_v24, %v6798_v62  ;;  %v1489_v13 = vshrl.u32 %v6755_v55, %v6798_v62  ;;  %v1486_v19 = vshrl.u32 %v6757_v7, %v6798_v62 }
 0x1c0   : > { %v1640_v50 = vsub.s32 32, %v1639_v23  ;;  %v1644_v46 = vsub.s32 4294967266, %v1639_v23  ;;  %v1318_v30 = vsel %vm1316_vm5, %v1317_v44, %v5632_v42  ;;  %v1488_v3 = vshll.u32 %v6757_v7, %v6799_v32 }
 0x1c1   : > { %v1492_v14 = vshrl.u32 %v6753_v39, %v6798_v62  ;;  %v1641_v1 = vshll.u32 %v5587_v51, %v1639_v23  ;;  %v1319_v26 = vadd.s32 %v1318_v30, %v1314_v61  ;;  %v1482_v48 = vshll.u32 %v6758_v11, %v6799_v32 }
 0x1c2   : > { %v1642_v57 = vshrl.u32 %v1624_v43, %v1640_v50  ;;  %v1645_v52 = vadd.s32 127, %v1644_v46  ;;  %v1485_v6 = vshll.u32 %v6756_v24, %v6799_v32  ;;  %v1491_v47 = vshll.u32 %v6755_v55, %v6799_v32 }
 0x1c3   : > { %v1495_v33 = vshrl.u32 %v6754_v34, %v6798_v62  ;;  %v1320_v60 = vadd.s32 536870912, %v1319_v26  ;;  %v1490_v44 = vor.u32 %v1489_v13, %v1488_v3  ;;  %v1484_v43 = vor.u32 %v1483_v18, %v1482_v48  ;;  %v6801_v3 = vld [vmem:[#allocation9_spill] sm:$0xff] }
 0x1c4   : > { %v1643_v42 = vor.u32 %v1642_v57, %v1641_v1  ;;  %v1646_v45 = vshll.u32 %v1645_v52, 23  ;;  %v3750_v51 = vpop.eup %3749  ;;  %v1487_v23 = vor.u32 %v1486_v19, %v1485_v6  ;;  %v1493_v61 = vor.u32 %v1492_v14, %v1491_v47  ;;  %v6800_v52 = vld [vmem:[#allocation32_spill] sm:$0xff] }
 0x1c5   : > { %v1494_v50 = vshll.u32 %v6753_v39, %v6799_v32  ;;  %vm1457_vm15 = vcmp.eq.s32.totalorder %v5647_v59, 0  ;;  %v5696_v31 = vshrl.u32 %v1320_v60, 30  ;;  %v1473_v63 = vor.u32 8388608, %v1472_v22 }
 0x1c6   : > { %v3752_v46 = vpop.eup %3751  ;;  %v1647_v30 = vor.u32 4788187, %v1646_v45  ;;  %v1481_v1 = vshrl.u32 %v6758_v11, %v6798_v62  ;;  %vm1497_vm4 = vcmp.lt.s32.totalorder %v6800_v52, 1  ;;  %vm1498_vm13 = vcmp.lt.s32.totalorder %v6800_v52, 2 }
 0x1c7   : > { %v1496_v57 = vor.u32 %v1495_v33, %v1494_v50  ;;  %vm1500_vm12 = vcmp.lt.s32.totalorder %v6800_v52, 4  ;;  %v1650_v13 = vcvt.s32.f32 %v1643_v42  ;;  %v1322_v19 = vshll.u32 %v5696_v31, 30 }
 0x1c8   : > { %v1648_v18 = vand.u32 2147483647, %v1647_v30  ;;  %v1502_v32 = vsel %vm1500_vm12, %v1490_v44, 2102212464  ;;  %vm2146_vm11 = vcmp.lt.s32.totalorder %v6801_v3, 0  ;;  %v1458_v22 = vxor.u32 2147483648, %v3752_v46 }
 0x1c9   : > { %v1461_v14 = vxor.u32 2147483648, %v3750_v51  ;;  %v1505_v62 = vsel %vm1497_vm4, %v1484_v43, %v1487_v23  ;;  %v1506_v48 = vsel %vm1500_vm12, %v1493_v61, 920167782  ;;  %v5711_v47 = vsub.s32 %v1319_v26, %v1322_v19 }
 0x1ca   : > { %v1651_v6 = vmul.f32 %v1650_v13, %v1648_v18  ;;  %vm1499_vm10 = vcmp.lt.s32.totalorder %v6800_v52, 3  ;;  %v1501_v33 = vsel %vm1497_vm4, %v1481_v1, %v1484_v43  ;;  %v1510_v60 = vsel %vm1500_vm12, %v1496_v57, 1326507024 }
 0x1cb   : > { %v1503_v42 = vsel %vm1499_vm10, %v1487_v23, %v1502_v32  ;;  %v1507_v45 = vsel %vm1499_vm10, %v1490_v44, %v1506_v48  ;;  %v1513_v50 = vshll.u32 %v1473_v63, 8  ;;  %v1325_v41 = vsub.s32 0, %v5711_v47 }
 0x1cc   : > { %v1652_v30 = vxor.u32 2147483648, %v1651_v6  ;;  %v1508_v20 = vsel %vm1498_vm13, %v1505_v62, %v1507_v45  ;;  %v1509_v26 = vsel %vm1497_vm4, %v1487_v23, %v1490_v44  ;;  %vm1460_vm1 = vcmp.eq.s32.totalorder %v5647_v59, 2 }
 0x1cd   : > { %v1511_v18 = vsel %vm1499_vm10, %v1493_v61, %v1510_v60  ;;  %v5724_v13 = vmul.u32.u64.low %v1513_v50, %v1508_v20  ;;  %v5725_v43 = vmul.u32.u64.high %v1513_v50, %v1508_v20, %v5724_v13  ;;  %v1462_v1 = vsel %vm1460_vm1, %v1461_v14, %v3752_v46 }
 0x1ce   : > { %v1653_v63 = vsel %vm1570_vm0, %v1652_v30, %v1651_v6  ;;  %v6802_v57 = vsel %vm5651_vm9, 0, %v5626_v21  ;;  %v3429_v32 = vmin.u32 %v1325_v41, %v5711_v47  ;;  %v1459_v44 = vsel %vm1457_vm15, %v3750_v51, %v1458_v22 }
 0x1cf   : > { %v5734_v19 = vand.u32 3, %v6802_v57  ;;  %v1656_v20 = vsel %vm5651_vm9, %v6789_v40, %v1653_v63  ;;  %v1504_v23 = vsel %vm1498_vm13, %v1501_v33, %v1503_v42  ;;  %v1512_v61 = vsel %vm1498_vm13, %v1509_v26, %v1511_v18 }
 0x1d0   : > { %3753 = vcosq.f32 %v1656_v20  ;;  %v1327_v46 = vclz %v3429_v32  ;;  %v5746_v21 = vmul.u32.u64.low %v1513_v50, %v1512_v61  ;;  %v5747_v14 = vmul.u32.u64.high %v1513_v50, %v1512_v61, %v5746_v21  ;;  %v6806_v32 = vld [vmem:[#allocation31_spill] sm:$0xff]  ;;  %v6807_v61 = vld [vmem:[#allocation26_spill] sm:$0xff] }
 0x1d1   : > { %3755 = vsinq.f32 %v1656_v20  ;;  %v1523_v41 = vadd.s32 1, %v5725_v43  ;;  %v6803_v22 = vxor.u32 2147483648, %v5073_v17  ;;  %v5763_v48 = vadd.s32 1, %v5637_v25 }
 0x1d2   : > { %v3430_v6 = vadd.s32 4294967294, %v1327_v46  ;;  %v6804_v42 = vclz %v5517_v56  ;;  %vm1454_vm0 = vweird.f32 %v4779_v38  ;;  %vm1456_vm2 = vcmp.lt.s32.totalorder %v5647_v59, 2 }
 0x1d3   : > { %v5759_v52 = vsel %vm2146_vm11, %v6803_v22, %v5073_v17  ;;  %v1463_v60 = vsel %vm1456_vm2, %v1459_v44, %v1462_v1  ;;  %v1520_v17 = vmul.u32 %v1513_v50, %v1504_v23  ;;  %vm1522_vm7 = vc.u32 %v5747_v14, %v5724_v13  ;;  %v6805_v1 = vld [vmem:[#allocation10_spill] sm:$0xff] }
 0x1d4   : > { %v5768_v45 = vadd.s32 4294967294, %v6804_v42  ;;  %vm3431_vm3 = vcmp.lt.s32.totalorder %v3430_v6, 0  ;;  %vm1663_vm8 = vcmp.eq.s32.totalorder %v5734_v19, 0  ;;  %vm1666_vm9 = vcmp.eq.s32.totalorder %v5734_v19, 2 }
 0x1d5   : > { %v1315_v25 = vadd.s32 %v5631_v49, %v5629_v29  ;;  %v1330_v56 = vsel %vm3431_vm3, 0, %v3430_v6  ;;  %v1524_v30 = vsel %vm1522_vm7, %v1523_v41, %v5725_v43  ;;  %vm1662_vm14 = vcmp.lt.s32.totalorder %v5734_v19, 2 }
 0x1d6   : > { %v1331_v26 = vsub.s32 32, %v1330_v56  ;;  %v1335_v59 = vsub.s32 4294967266, %v1330_v56  ;;  %v1525_v18 = vadd.s32 %v1524_v30, %v1520_v17  ;;  %v6699_v50 = vand.u32 2147483647, %v6805_v1 }
 0x1d7   : > { %v1464_v63 = vsel %vm1454_vm0, nan, %v1463_v60  ;;  %vm1660_vm5 = vweird.f32 %v6789_v40  ;;  %v1332_v57 = vshll.u32 %v5711_v47, %v1330_v56  ;;  %v2263_v29 = vshrl.u32 %v6758_v11, %v6806_v32 }
 0x1d8   : > { %v2265_v49 = vshrl.u32 %v6756_v24, %v6806_v32  ;;  %v1333_v43 = vshrl.u32 %v1315_v25, %v1331_v26  ;;  %v1336_v44 = vadd.s32 127, %v1335_v59  ;;  %v1526_v20 = vadd.s32 536870912, %v1525_v18 }
 0x1d9   : > { %v2268_v23 = vshrl.u32 %v6757_v7, %v6806_v32  ;;  %v2264_v38 = vshll.u32 %v6758_v11, %v6807_v61  ;;  %v2267_v46 = vshll.u32 %v6756_v24, %v6807_v61  ;;  %v2271_v47 = vshrl.u32 %v6755_v55, %v6806_v32 }
 0x1da   : > { %v2274_v21 = vshrl.u32 %v6753_v39, %v6806_v32  ;;  %v3754_v41 = vpop.eup %3753  ;;  %v1334_v22 = vor.u32 %v1333_v43, %v1332_v57  ;;  %v1337_v6 = vshll.u32 %v1336_v44, 23  ;;  %v5799_v42 = vshrl.u32 %v1526_v20, 30 }
 0x1db   : > { %v2254_v60 = vand.u32 8388607, %v6699_v50  ;;  %v3756_v17 = vpop.eup %3755  ;;  %v1667_v25 = vxor.u32 2147483648, %v3754_v41  ;;  %v2266_v56 = vor.u32 %v2265_v49, %v2264_v38  ;;  %v2270_v30 = vshll.u32 %v6757_v7, %v6807_v61 }
 0x1dc   : > { %v2273_v26 = vshll.u32 %v6755_v55, %v6807_v61  ;;  %v1664_v59 = vxor.u32 2147483648, %v3756_v17  ;;  %v1338_v51 = vor.u32 4788187, %v1337_v6  ;;  %v1528_v53 = vshll.u32 %v5799_v42, 30 }
 0x1dd   : > { %v2269_v57 = vor.u32 %v2268_v23, %v2267_v46  ;;  %v1668_v43 = vsel %vm1666_vm9, %v1667_v25, %v3756_v17  ;;  %v2272_v44 = vor.u32 %v2271_v47, %v2270_v30  ;;  %v2277_v50 = vshrl.u32 %v6754_v34, %v6806_v32 }
 0x1de   : > { %v2275_v20 = vor.u32 %v2274_v21, %v2273_v26  ;;  %vm2670_vm15 = vcmp.gt.s32.totalorder %v5763_v48, 0  ;;  %v1665_v49 = vsel %vm1663_vm8, %v3754_v41, %v1664_v59  ;;  %v1339_v38 = vand.u32 2147483647, %v1338_v51  ;;  %v6808_v21 = vld [vmem:[#allocation30_spill] sm:$0xff] }
 0x1df   : > { %v1341_v33 = vcvt.s32.f32 %v1334_v22  ;;  %v5815_v62 = vsub.s32 %v1525_v18, %v1528_v53  ;;  %v1669_v23 = vsel %vm1662_vm14, %v1665_v49, %v1668_v43  ;;  %v2255_v46 = vor.u32 8388608, %v2254_v60 }
 0x1e0   : > { %v2276_v47 = vshll.u32 %v6753_v39, %v6807_v61  ;;  %vm2279_vm4 = vcmp.lt.s32.totalorder %v6808_v21, 1  ;;  %v1670_v32 = vsel %vm1660_vm5, nan, %v1669_v23  ;;  %vm2282_vm13 = vcmp.lt.s32.totalorder %v6808_v21, 4 }
 0x1e1   : > { %v1342_v6 = vmul.f32 %v1341_v33, %v1339_v38  ;;  %v1531_v17 = vsub.s32 0, %v5815_v62  ;;  %v3554_v51 = vpack.c.bf16 %v1670_v32, %v1464_v63  ;;  %v2284_v19 = vsel %vm2282_vm13, %v2272_v44, 2102212464 }
 0x1e2   : > { %v2278_v53 = vor.u32 %v2277_v50, %v2276_v47  ;;  %v2287_v18 = vsel %vm2279_vm4, %v2266_v56, %v2269_v57  ;;  %vm2281_vm12 = vcmp.lt.s32.totalorder %v6808_v21, 3  ;;  %v2288_v40 = vsel %vm2282_vm13, %v2275_v20, 920167782 }
 0x1e3   : > { %v1343_v41 = vxor.u32 2147483648, %v1342_v6  ;;  %v3437_v61 = vmin.u32 %v1531_v17, %v5815_v62  ;;  %3555 = vmatprep.subr.bf16.mxu1 %v3554_v51  ;;  %vm1261_vm10 = vcmp.lt.s32.totalorder %v6791_v58, 0  ;;  %vm2280_vm1 = vcmp.lt.s32.totalorder %v6808_v21, 2  ;;  %v6813_v17 = vld [vmem:[#allocation38_spill] sm:$0xff] }
 0x1e4   : > { %v2283_v33 = vsel %vm2279_vm4, %v2263_v29, %v2266_v56  ;;  %v2289_v50 = vsel %vm2281_vm12, %v2272_v44, %v2288_v40  ;;  %v2285_v22 = vsel %vm2281_vm12, %v2269_v57, %v2284_v19  ;;  %v2291_v25 = vsel %vm2279_vm4, %v2269_v57, %v2272_v44 }
 0x1e5   : > { %v1533_v63 = vclz %v3437_v61  ;;  %v2290_v60 = vsel %vm2280_vm1, %v2287_v18, %v2289_v50  ;;  %vm3507_vm0 = vcmp.lt.s32.totalorder %v5768_v45, 0  ;;  %v1344_v30 = vsel %vm1261_vm10, %v1343_v41, %v1342_v6 }
 0x1e6   : > { %v2292_v29 = vsel %vm2282_vm13, %v2278_v53, 1326507024  ;;  %v2295_v56 = vshll.u32 %v2255_v46, 8  ;;  %v6809_v26 = vand.u32 2147483647, %v6791_v58  ;;  %v1345_v43 = vsub.s32 4, %v5696_v31 }
 0x1e7   : > { %v3438_v49 = vadd.s32 4294967294, %v1533_v63  ;;  %v2293_v57 = vsel %vm2281_vm12, %v2275_v20, %v2292_v29  ;;  %v2286_v44 = vsel %vm2280_vm1, %v2283_v33, %v2285_v22  ;;  %v6812_v20 = vsub.s32 32, %v5644_v2 }
 0x1e8   : > { %vm5853_vm2 = vcmp.le.f32.partialorder %v6809_v26, 0.7853982  ;;  %v2294_v38 = vsel %vm2280_vm1, %v2291_v25, %v2293_v57  ;;  %v5864_v23 = vmul.u32.u64.low %v2295_v56, %v2290_v60  ;;  %v5865_v46 = vmul.u32.u64.high %v2295_v56, %v2290_v60, %v5864_v23  ;;  %v6817_v57 = vld [vmem:[#allocation25_spill] sm:$0xff] }
 0x1e9   : > { %v1347_v47 = vsel %vm5853_vm2, %v6791_v58, %v1344_v30  ;;  %vm3439_vm3 = vcmp.lt.s32.totalorder %v3438_v49, 0  ;;  %v5871_v32 = vmul.u32.u64.low %v2295_v56, %v2294_v38  ;;  %v5872_v6 = vmul.u32.u64.high %v2295_v56, %v2294_v38, %v5871_v32  ;;  %v5914_v38 = vpop.f32.mrb[12].mxu0 }
 0x1ea   : > { %v5877_v51 = vshrl.u32 %v6813_v17, %v6812_v20  ;;  %v6815_v21 = vsub.s32 4294967266, %v5644_v2  ;;  %v5886_v19 = vsel %vm2670_vm15, %v5763_v48, 0  ;;  %v1536_v18 = vsel %vm3439_vm3, 0, %v3438_v49  ;;  %6818 = vst [vmem:[#allocation21_spill] sm:$0xff] %v5914_v38 }
 0x1eb   : > { %v5891_v41 = vsel %vm3507_vm0, 0, %v5768_v45  ;;  %v1521_v61 = vadd.s32 %v5724_v13, %v5747_v14  ;;  %v1537_v40 = vsub.s32 32, %v1536_v18  ;;  %v1541_v33 = vsub.s32 4294967266, %v1536_v18 }
 0x1ec   : > { %6814 = vst [vmem:[#allocation18_spill] sm:$0xff] %v5877_v51  ;;  %v5881_v53 = vadd.s32 127, %v6815_v21  ;;  %v1346_v50 = vsel %vm1261_vm10, %v1345_v43, %v5696_v31  ;;  %3757 = vcosq.f32 %v1347_v47  ;;  %v2302_v63 = vmul.u32 %v2295_v56, %v2286_v44  ;;  %v6816_v43 = vld [vmem:[#allocation8_spill] sm:$0xff]  ;;  %v5926_v21 = vpop.f32.mrb[13].mxu0 }
 0x1ed   : > { %v2305_v48 = vadd.s32 1, %v5865_v46  ;;  %v1538_v22 = vshll.u32 %v5815_v62, %v1536_v18  ;;  %v1539_v60 = vshrl.u32 %v1521_v61, %v1537_v40  ;;  %v1542_v25 = vadd.s32 127, %v1541_v33  ;;  %6822 = vst [vmem:[#allocation16_spill] sm:$0xff] %v5926_v21  ;;  %v6823_v18 = vld [vmem:[#allocation20_spill] sm:$0xff] }
 0x1ee   : > { %vm2304_vm7 = vc.u32 %v5872_v6, %v5864_v23  ;;  %v5904_v13 = vshrl.u32 %v5886_v19, 5  ;;  %3759 = vsinq.f32 %v1347_v47  ;;  %v1348_v62 = vsel %vm5853_vm2, 0, %v1346_v50 }
 0x1ef   : > { %v2306_v14 = vsel %vm2304_vm7, %v2305_v48, %v5865_v46  ;;  %v1540_v30 = vor.u32 %v1539_v60, %v1538_v22  ;;  %v1543_v29 = vshll.u32 %v1542_v25, 23  ;;  %v1551_v26 = vsub.s32 4, %v5799_v42 }
 0x1f0   : > { %v2307_v56 = vadd.s32 %v2306_v14, %v2302_v63  ;;  %v6702_v49 = vand.u32 2147483647, %v6816_v43  ;;  %v2480_v44 = vshrl.u32 %v6753_v39, %v6817_v57  ;;  %v6819_v47 = vand.u32 2147483647, %v6795_v15  ;;  %v5936_v63 = vpop.f32.mrb[14].mxu0 }
 0x1f1   : > { %v1544_v32 = vor.u32 4788187, %v1543_v29  ;;  %v2471_v59 = vshrl.u32 %v6756_v24, %v6817_v57  ;;  %v2474_v17 = vshrl.u32 %v6757_v7, %v6817_v57  ;;  %v2470_v61 = vshll.u32 %v6758_v11, %v6823_v18  ;;  %6824 = vst [vmem:[#allocation33_spill] sm:$0xff] %v5936_v63  ;;  %v5942_v14 = vpop.f32.mrb[15].mxu0 }
 0x1f2   : > { %vm5918_vm8 = vcmp.le.f32.partialorder %v6819_v47, 0.7853982  ;;  %v2308_v20 = vadd.s32 536870912, %v2307_v56  ;;  %v2477_v40 = vshrl.u32 %v6755_v55, %v6817_v57  ;;  %v2479_v33 = vshll.u32 %v6755_v55, %v6823_v18  ;;  %6825 = vst [vmem:[#allocation28_spill] sm:$0xff] %v5942_v14 }
 0x1f3   : > { %v2483_v50 = vshrl.u32 %v6754_v34, %v6817_v57  ;;  %v1545_v48 = vand.u32 2147483647, %v1544_v32  ;;  %v1547_v22 = vcvt.s32.f32 %v1540_v30  ;;  %v2473_v25 = vshll.u32 %v6756_v24, %v6823_v18 }
 0x1f4   : > { %v5938_v60 = vshrl.u32 %v2308_v20, 30  ;;  %v2460_v29 = vand.u32 8388607, %v6702_v49  ;;  %v2476_v47 = vshll.u32 %v6757_v7, %v6823_v18  ;;  %v2481_v45 = vor.u32 %v2480_v44, %v2479_v33  ;;  %v6826_v44 = vld [vmem:[#allocation24_spill] sm:$0xff] }
 0x1f5   : > { %v2482_v31 = vshll.u32 %v6753_v39, %v6823_v18  ;;  %v1548_v27 = vmul.f32 %v1547_v22, %v1545_v48  ;;  %v2472_v32 = vor.u32 %v2471_v59, %v2470_v61  ;;  %v2475_v20 = vor.u32 %v2474_v17, %v2473_v25 }
 0x1f6   : > { %v2310_v30 = vshll.u32 %v5938_v60, 30  ;;  %v3758_v21 = vpop.eup %3757  ;;  %v1352_v63 = vand.u32 3, %v1348_v62  ;;  %vm1467_vm9 = vcmp.lt.s32.totalorder %v6795_v15, 0  ;;  %v2478_v14 = vor.u32 %v2477_v40, %v2476_v47 }
 0x1f7   : > { %v2484_v38 = vor.u32 %v2483_v50, %v2482_v31  ;;  %v1549_v51 = vxor.u32 2147483648, %v1548_v27  ;;  %v1552_v49 = vsel %vm1467_vm9, %v1551_v26, %v5799_v42  ;;  %vm2488_vm14 = vcmp.lt.s32.totalorder %v6826_v44, 4 }
 0x1f8   : > { %v5953_v10 = vsub.s32 %v2307_v56, %v2310_v30  ;;  %v3760_v33 = vpop.eup %3759  ;;  %v2461_v18 = vor.u32 8388608, %v2460_v29  ;;  %v2469_v48 = vshrl.u32 %v6758_v11, %v6817_v57  ;;  %vm2485_vm5 = vcmp.lt.s32.totalorder %v6826_v44, 1 }
 0x1f9   : > { %v2494_v62 = vsel %vm2488_vm14, %v2481_v45, 920167782  ;;  %v1550_v59 = vsel %vm1467_vm9, %v1549_v51, %v1548_v27  ;;  %vm2487_vm15 = vcmp.lt.s32.totalorder %v6826_v44, 3  ;;  %v2493_v42 = vsel %vm2485_vm5, %v2472_v32, %v2475_v20 }
 0x1fa   : > { %v2313_v31 = vsub.s32 0, %v5953_v10  ;;  %v1553_v56 = vsel %vm5918_vm8, %v6795_v15, %v1550_v59  ;;  %v2495_v26 = vsel %vm2487_vm15, %v2478_v14, %v2494_v62  ;;  %v2497_v57 = vsel %vm2485_vm5, %v2475_v20, %v2478_v14 }
 0x1fb   : > { %v2498_v27 = vsel %vm2488_vm14, %v2484_v38, 1326507024  ;;  %v1355_v51 = vxor.u32 2147483648, %v3760_v33  ;;  %v1358_v17 = vxor.u32 2147483648, %v3758_v21  ;;  %3761 = vcosq.f32 %v1553_v56 }
 0x1fc   : > { %v3493_v61 = vmin.u32 %v2313_v31, %v5953_v10  ;;  %3763 = vsinq.f32 %v1553_v56  ;;  %vm2486_vm4 = vcmp.lt.s32.totalorder %v6826_v44, 2  ;;  %v2490_v40 = vsel %vm2488_vm14, %v2478_v14, 2102212464 }
 0x1fd   : > { %v2499_v50 = vsel %vm2487_vm15, %v2481_v45, %v2498_v27  ;;  %v2496_v25 = vsel %vm2486_vm4, %v2493_v42, %v2495_v26  ;;  %v2501_v29 = vshll.u32 %v2461_v18, 8  ;;  %v1554_v47 = vsel %vm5918_vm8, 0, %v1552_v49 }
 0x1fe   : > { %v2315_v22 = vclz %v3493_v61  ;;  %v2500_v38 = vsel %vm2486_vm4, %v2497_v57, %v2499_v50  ;;  %v2489_v30 = vsel %vm2485_vm5, %v2469_v48, %v2472_v32  ;;  %v5990_v14 = vpack.c.bf16 %v5669_v16, %v5655_v12 }
 0x1ff   : > { %v5994_v45 = vpack.c.bf16 %v5675_v54, %v5664_v4  ;;  %v2491_v59 = vsel %vm2487_vm15, %v2475_v20, %v2490_v40  ;;  %v5998_v31 = vmul.u32.u64.low %v2501_v29, %v2500_v38  ;;  %v5999_v18 = vmul.u32.u64.high %v2501_v29, %v2500_v38, %v5998_v31 }
 0x200   : > { %v3494_v62 = vadd.s32 4294967294, %v2315_v22  ;;  %vm1354_vm13 = vcmp.eq.s32.totalorder %v1352_v63, 0  ;;  %vm1357_vm12 = vcmp.eq.s32.totalorder %v1352_v63, 2  ;;  %v6827_v12 = vsub.s32 4294967266, %v5891_v41 }
 0x201   : > { %v6001_v49 = vmul.u32.u64.low %v2501_v29, %v2496_v25  ;;  %v6002_v46 = vmul.u32.u64.high %v2501_v29, %v2496_v25, %v6001_v49  ;;  %3591 = vmatprep.subr.bf16.mxu0 %v5994_v45  ;;  %v1356_v4 = vsel %vm1354_vm13, %v3758_v21, %v1355_v51  ;;  %v1359_v54 = vsel %vm1357_vm12, %v1358_v17, %v3760_v33 }
 0x202   : > { %v6008_v16 = vadd.s32 127, %v6827_v12  ;;  %vm3495_vm10 = vcmp.lt.s32.totalorder %v3494_v62, 0  ;;  %3593 = vmatpush1.bf16.msra.mxu0 %v5990_v14  ;;  %vm1351_vm1 = vweird.f32 %v6791_v58  ;;  %v1558_v32 = vand.u32 3, %v1554_v47 }
 0x203   : > { %v2318_v20 = vsel %vm3495_vm10, 0, %v3494_v62  ;;  %v2492_v48 = vsel %vm2486_vm4, %v2489_v30, %v2491_v59  ;;  %vm1353_vm0 = vcmp.lt.s32.totalorder %v1352_v63, 2  ;;  %v2303_v42 = vadd.s32 %v5864_v23, %v5872_v6  ;;  %v6828_v62 = vld [vmem:[#allocation15_spill] sm:$0xff] }
 0x204   : > { %v2319_v56 = vsub.s32 32, %v2318_v20  ;;  %v2323_v26 = vsub.s32 4294967266, %v2318_v20  ;;  %v1360_v57 = vsel %vm1353_vm0, %v1356_v4, %v1359_v54  ;;  %vm2249_vm2 = vcmp.lt.s32.totalorder %v6805_v1, 0 }
 0x205   : > { %vm2510_vm3 = vc.u32 %v5999_v18, %v6001_v49  ;;  %v2511_v21 = vadd.s32 1, %v6002_v46  ;;  %v3762_v33 = vpop.eup %3761  ;;  %v2320_v27 = vshll.u32 %v5953_v10, %v2318_v20  ;;  %v2508_v17 = vmul.u32 %v2501_v29, %v2492_v48 }
 0x206   : > { %v2321_v51 = vshrl.u32 %v2303_v42, %v2319_v56  ;;  %v2324_v44 = vadd.s32 127, %v2323_v26  ;;  %v3764_v63 = vpop.eup %3763  ;;  %vm1563_vm7 = vcmp.eq.s32.totalorder %v1558_v32, 2  ;;  %v1564_v61 = vxor.u32 2147483648, %v3762_v33 }
 0x207   : > { %v2333_v23 = vsub.s32 4, %v5938_v60  ;;  %v2512_v6 = vsel %vm2510_vm3, %v2511_v21, %v6002_v46  ;;  %v1561_v40 = vxor.u32 2147483648, %v3764_v63  ;;  %v1361_v38 = vsel %vm1351_vm1, nan, %v1360_v57 }
 0x208   : > { %v2322_v50 = vor.u32 %v2321_v51, %v2320_v27  ;;  %v2325_v22 = vshll.u32 %v2324_v44, 23  ;;  %v2513_v25 = vadd.s32 %v2512_v6, %v2508_v17  ;;  %vm1559_vm8 = vcmp.lt.s32.totalorder %v1558_v32, 2  ;;  %v6836_v51 = vld [vmem:[#allocation23_spill] sm:$0xff] }
 0x209   : > { %vm1560_vm9 = vcmp.eq.s32.totalorder %v1558_v32, 0  ;;  %v1565_v10 = vsel %vm1563_vm7, %v1564_v61, %v3764_v63  ;;  %v2230_v59 = vsub.s32 4, %v6828_v62  ;;  %v6027_v31 = vand.u32 31, %v5886_v19  ;;  %v6837_v44 = vld [vmem:[#allocation19_spill] sm:$0xff] }
 0x20a   : > { %v1562_v47 = vsel %vm1560_vm9, %v3762_v33, %v1561_v40  ;;  %v2326_v30 = vor.u32 4788187, %v2325_v22  ;;  %v2514_v29 = vadd.s32 536870912, %v2513_v25  ;;  %vm1557_vm14 = vweird.f32 %v6795_v15  ;;  %v6835_v33 = vld [vmem:[#allocation13_spill] sm:$0xff] }
 0x20b   : > { %v1566_v46 = vsel %vm1559_vm8, %v1562_v47, %v1565_v10  ;;  %v2334_v12 = vsel %vm2249_vm2, %v2333_v23, %v5938_v60  ;;  %v2329_v54 = vcvt.s32.f32 %v2322_v50  ;;  %v2612_v20 = vadd.s32 %v4962_v8, %v4970_v9  ;;  %v6052_v8 = vld [vmem:[%s6598_s8] sm:$0xff] }
 0x20c   : > { %v1567_v58 = vsel %vm1557_vm14, nan, %v1566_v46  ;;  %v2327_v4 = vand.u32 2147483647, %v2326_v30  ;;  %v6033_v32 = vshrl.u32 %v2514_v29, 30  ;;  %v2628_v48 = vsub.s32 32, %v5891_v41  ;;  %v6843_v29 = vld [vmem:[#allocation36_spill] sm:$0xff] }
 0x20d   : > { %v2634_v19 = vshll.u32 %v6008_v16, 23  ;;  %v3556_v42 = vpack.c.bf16 %v1567_v58, %v1361_v38  ;;  %v6829_v15 = vand.u32 2147483647, %v6805_v1  ;;  %v2231_v57 = vsel %vm2146_vm11, %v2230_v59, %v6828_v62  ;;  %v6839_v38 = vld [vmem:[#allocation7_spill] sm:$0xff]  ;;  %v6844_v46 = vld [vmem:[#allocation22_spill] sm:$0xff] }
 0x20e   : > { %v2330_v60 = vmul.f32 %v2329_v54, %v2327_v4  ;;  %v2516_v26 = vshll.u32 %v6033_v32, 30  ;;  %vm1671_vm15 = vcmask 261120   ;;  %v6832_v16 = vand.u32 2147483647, %v6801_v3  ;;  %v6104_v54 = vld [vmem:[%s6598_s8 + $0x8] sm:$0xff] }
 0x20f   : > { %vm6041_vm5 = vcmp.le.f32.partialorder %v6829_v15, 0.7853982  ;;  %3557 = vmatpush1.bf16.msra.mxu1 %v3556_v42  ;;  %v2436_v27 = vsub.s32 4, %v6835_v33  ;;  %v6838_v17 = vpack.c.bf16 %v6836_v51, %v6837_v44  ;;  %v6704_v6 = vand.u32 2147483647, %v5002_v35 }
 0x210   : > { %v2336_v9 = vsel %vm6041_vm5, 0, %v2334_v12  ;;  %vm6058_vm4 = vcmp.le.f32.partialorder %v6832_v16, 0.7853982  ;;  %v2331_v63 = vxor.u32 2147483648, %v2330_v60  ;;  %v6066_v61 = vsub.s32 %v2513_v25, %v2516_v26  ;;  %v6845_v12 = vld [vmem:[#allocation17_spill] sm:$0xff]  ;;  %v6245_v25 = vld [vmem:[%s6597_s7 + $0x8] sm:$0xff] }
 0x211   : > { %3559 = vmatprep.subr.bf16.mxu1 %v6838_v17  ;;  %v2232_v23 = vsel %vm6058_vm4, %v6801_v3, %v5759_v52  ;;  %v2674_v50 = vsub.s32 32, %v6027_v31  ;;  %v2233_v22 = vsel %vm6058_vm4, 0, %v2231_v57  ;;  %v6840_v10 = vand.u32 2147483647, %v6839_v38 }
 0x212   : > { %v6084_v47 = vshrl.u32 %v2612_v20, %v2628_v48  ;;  %3444 = vmatmul.mubr.msk.f32.vlgmr.msra.gmra.mrb[0].mxu1 %vm1671_vm15, %v6052_v8  ;;  %v2332_v52 = vsel %vm2249_vm2, %v2331_v63, %v2330_v60  ;;  %v2519_v30 = vsub.s32 0, %v6066_v61  ;;  %v6095_v59 = vor.u32 4788187, %v2634_v19 }
 0x213   : > { %vm6080_vm11 = vcmp.le.f32.partialorder %v6840_v10, 0.7853982  ;;  %v6846_v58 = vpack.c.bf16 %v6844_v46, %v6845_v12  ;;  %v6847_v4 = vmov 0.0   ;;  %v6106_v20 = vand.u32 3, %v2336_v9 }
 0x214   : > { %v2438_v62 = vsel %vm6080_vm11, %v6839_v38, %v6843_v29  ;;  %1754 = vmatprep.mubr.f32.mxu1 %v6847_v4  ;;  %3765 = vcosq.f32 %v2232_v23  ;;  %v6111_v48 = vsel %vm2352_vm6, %v2436_v27, %v6835_v33  ;;  %v6848_v19 = vpack.c.bf16 %v5406_v37, %v5388_v36  ;;  %v6166_v29 = vld [vmem:[%s6598_s8 + $0x18] sm:$0xff] }
 0x215   : > { %3561 = vmatpush1.bf16.msra.mxu1 %v6846_v58  ;;  %v3501_v42 = vmin.u32 %v2519_v30, %v6066_v61  ;;  %3767 = vsinq.f32 %v2232_v23  ;;  %v6117_v15 = vand.u32 3, %v2233_v22  ;;  %v6121_v60 = vand.u32 8388607, %v6704_v6 }
 0x216   : > { %3563 = vmatprep.subr.bf16.mxu1 %v6848_v19  ;;  %v2335_v26 = vsel %vm6041_vm5, %v6805_v1, %v2332_v52  ;;  %v2509_v57 = vadd.s32 %v6001_v49, %v5999_v18  ;;  %3769 = vcosq.f32 %v2438_v62  ;;  %v2677_v36 = vshrl.u32 %v6756_v24, %v2674_v50  ;;  %3445 = vmatmul.mubr.msk.f32.gmra.mrb[2].mxu1 %vm1671_vm15, %v6104_v54  ;;  %v6143_v49 = vld [vmem:[%s6598_s8 + $0x10] sm:$0xff] }
 0x217   : > { %v2521_v37 = vclz %v3501_v42  ;;  %v2439_v9 = vsel %vm6080_vm11, 0, %v6111_v48  ;;  %3771 = vsinq.f32 %v2438_v62  ;;  %v2680_v16 = vshrl.u32 %v6757_v7, %v2674_v50  ;;  %1760 = vmatprep.mubr.f32.mxu1 %v6847_v4 }
 0x218   : > { %v6849_v56 = vpack.c.bf16 %v5398_v28, %v5181_v5  ;;  %v2539_v18 = vsub.s32 4, %v6033_v32  ;;  %v2676_v21 = vshll.u32 %v6758_v11, %v6027_v31  ;;  %v2682_v33 = vshll.u32 %v6757_v7, %v6027_v31 }
 0x219   : > { %v2683_v27 = vshrl.u32 %v6755_v55, %v2674_v50  ;;  %3773 = vcosq.f32 %v2335_v26  ;;  %v3502_v5 = vadd.s32 4294967294, %v2521_v37  ;;  %v2667_v28 = vor.u32 8388608, %v6121_v60 }
 0x21a   : > { %3565 = vmatpush1.bf16.msra.mxu1 %v6849_v56  ;;  %v2679_v51 = vshll.u32 %v6756_v24, %v6027_v31  ;;  %vm2455_vm6 = vcmp.lt.s32.totalorder %v6816_v43, 0  ;;  %v2678_v44 = vor.u32 %v2677_v36, %v2676_v21  ;;  %v2685_v63 = vshll.u32 %v6755_v55, %v6027_v31 }
 0x21b   : > { %v2684_v17 = vor.u32 %v2683_v27, %v2682_v33  ;;  %v2686_v23 = vshrl.u32 %v6753_v39, %v2674_v50  ;;  %vm3503_vm13 = vcmp.lt.s32.totalorder %v3502_v5, 0  ;;  %3446 = vmatmul.mubr.msk.f32.gmra.mrb[4].mxu1 %vm1671_vm15, %v6143_v49  ;;  %v2688_v10 = vshll.u32 %v6753_v39, %v6027_v31 }
 0x21c   : > { %v2681_v22 = vor.u32 %v2680_v16, %v2679_v51  ;;  %v2689_v52 = vshrl.u32 %v6754_v34, %v2674_v50  ;;  %v2524_v30 = vsel %vm3503_vm13, 0, %v3502_v5  ;;  %1766 = vmatprep.mubr.f32.mxu1 %v6847_v4  ;;  %v2675_v62 = vshrl.u32 %v6758_v11, %v2674_v50  ;;  %v6200_v5 = vld [vmem:[%s6597_s7] sm:$0xff] }
 0x21d   : > { %v2687_v46 = vor.u32 %v2686_v23, %v2685_v63  ;;  %vm2691_vm12 = vcmp.lt.s32.totalorder %v5904_v13, 1  ;;  %v6850_v12 = vand.u32 2147483647, %v6816_v43  ;;  %v2525_v31 = vsub.s32 32, %v2524_v30 }
 0x21e   : > { %v2529_v19 = vsub.s32 4294967266, %v2524_v30  ;;  %vm2242_vm1 = vcmp.eq.s32.totalorder %v6117_v15, 2  ;;  %v2690_v42 = vor.u32 %v2689_v52, %v2688_v10  ;;  %vm2694_vm0 = vcmp.lt.s32.totalorder %v5904_v13, 4  ;;  %v6178_v60 = vpop.eup %3765 }
 0x21f   : > { %vm6172_vm10 = vcmp.le.f32.partialorder %v6850_v12, 0.7853982  ;;  %v2526_v50 = vshll.u32 %v6066_v61, %v2524_v30  ;;  %vm2693_vm2 = vcmp.lt.s32.totalorder %v5904_v13, 3  ;;  %v2696_v36 = vsel %vm2694_vm0, %v2684_v17, 2102212464  ;;  %v6186_v16 = vpop.eup %3767  ;;  %3447 = vmatmul.mubr.msk.f32.gmra.mrb[6].mxu1 %vm1671_vm15, %v6166_v29 }
 0x220   : > { %v2700_v37 = vsel %vm2694_vm0, %v2687_v46, 920167782  ;;  %v2527_v56 = vshrl.u32 %v2509_v57, %v2525_v31  ;;  %v2530_v21 = vadd.s32 127, %v2529_v19  ;;  %v2699_v33 = vsel %vm2691_vm12, %v2678_v44, %v2681_v22  ;;  %v6194_v27 = vpop.eup %3769  ;;  %1849 = vmatprep.mubr.f32.mxu1 %v6847_v4 }
 0x221   : > { %v2701_v61 = vsel %vm2693_vm2, %v2684_v17, %v2700_v37  ;;  %3775 = vsinq.f32 %v2335_v26  ;;  %vm2692_vm3 = vcmp.lt.s32.totalorder %v5904_v13, 2  ;;  %v2695_v57 = vsel %vm2691_vm12, %v2675_v62, %v2678_v44  ;;  %v6207_v63 = vpop.eup %3771 }
 0x222   : > { %v2703_v51 = vsel %vm2691_vm12, %v2681_v22, %v2684_v17  ;;  %v2528_v23 = vor.u32 %v2527_v56, %v2526_v50  ;;  %v2531_v10 = vshll.u32 %v2530_v21, 23  ;;  %v2697_v26 = vsel %vm2693_vm2, %v2681_v22, %v2696_v36  ;;  %v6853_v21 = vld [vmem:[#allocation12_spill] sm:$0xff] }
 0x223   : > { %v2704_v52 = vsel %vm2694_vm0, %v2690_v42, 1326507024  ;;  %v2243_v30 = vxor.u32 2147483648, %v6178_v60  ;;  %v2702_v12 = vsel %vm2692_vm3, %v2699_v33, %v2701_v61  ;;  %v2707_v62 = vshll.u32 %v2667_v28, 8  ;;  %v6218_v17 = vpop.eup %3773  ;;  %3448 = vmatmul.mubr.msk.f32.vlgmr.msra.gmra.mrb[0].mxu1 %vm1671_vm15, %v6200_v5 }
 0x224   : > { %v2705_v44 = vsel %vm2693_vm2, %v2687_v46, %v2704_v52  ;;  %v2532_v31 = vor.u32 4788187, %v2531_v10  ;;  %v6223_v19 = vsel %vm2455_vm6, %v2539_v18, %v6033_v32  ;;  %v6231_v22 = vand.u32 3, %v2439_v9  ;;  %1855 = vmatprep.mubr.f32.mxu1 %v6847_v4 }
 0x225   : > { %v2706_v28 = vsel %vm2692_vm3, %v2703_v51, %v2705_v44  ;;  %v2240_v46 = vxor.u32 2147483648, %v6186_v16  ;;  %v2698_v42 = vsel %vm2692_vm3, %v2695_v57, %v2697_v26  ;;  %v2535_v9 = vcvt.s32.f32 %v2528_v23  ;;  %v6854_v57 = vld [vmem:[#allocation34_spill] sm:$0xff]  ;;  %v6855_v23 = vld [vmem:[#allocation39_spill] sm:$0xff] }
 0x226   : > { %v6238_v50 = vmul.u32.u64.low %v2707_v62, %v2706_v28  ;;  %v6239_v32 = vmul.u32.u64.high %v2707_v62, %v2706_v28, %v6238_v50  ;;  %v2533_v48 = vand.u32 2147483647, %v2532_v31  ;;  %v2542_v13 = vsel %vm6172_vm10, 0, %v6223_v19  ;;  %v6278_v44 = vld [vmem:[%s6597_s7 + $0x10] sm:$0xff] }
 0x227   : > { %v6247_v18 = vmul.u32.u64.low %v2707_v62, %v2702_v12  ;;  %v6248_v36 = vmul.u32.u64.high %v2707_v62, %v2702_v12, %v6247_v18  ;;  %v6257_v37 = vsel %vm2242_vm1, %v2243_v30, %v6186_v16  ;;  %v6705_v33 = vand.u32 2147483647, %v6853_v21  ;;  %3449 = vmatmul.mubr.msk.f32.gmra.mrb[2].mxu1 %vm1671_vm15, %v6245_v25 }
 0x228   : > { %v2536_v61 = vmul.f32 %v2535_v9, %v2533_v48  ;;  %v2882_v51 = vshll.u32 %v6758_v11, %v6854_v57  ;;  %v2883_v10 = vshrl.u32 %v6756_v24, %v6855_v23  ;;  %v2886_v26 = vshrl.u32 %v6757_v7, %v6855_v23  ;;  %1861 = vmatprep.mubr.f32.mxu1 %v6847_v4 }
 0x229   : > { %v2346_v52 = vxor.u32 2147483648, %v6218_v17  ;;  %v2714_v30 = vmul.u32 %v2707_v62, %v2698_v42  ;;  %vm2716_vm7 = vc.u32 %v6239_v32, %v6247_v18  ;;  %v2885_v12 = vshll.u32 %v6756_v24, %v6854_v57 }
 0x22a   : > { %v2537_v31 = vxor.u32 2147483648, %v2536_v61  ;;  %v2717_v28 = vadd.s32 1, %v6248_v36  ;;  %v2872_v50 = vand.u32 8388607, %v6705_v33  ;;  %v2884_v62 = vor.u32 %v2883_v10, %v2882_v51 }
 0x22b   : > { %v3776_v42 = vpop.eup %3775  ;;  %v2887_v48 = vor.u32 %v2886_v26, %v2885_v12  ;;  %v2888_v9 = vshll.u32 %v6757_v7, %v6854_v57  ;;  %v2889_v24 = vshrl.u32 %v6755_v55, %v6855_v23  ;;  %v2891_v6 = vshll.u32 %v6755_v55, %v6854_v57  ;;  %3450 = vmatmul.mubr.msk.f32.gmra.mrb[4].mxu1 %vm1671_vm15, %v6278_v44 }
 0x22c   : > { %v2538_v40 = vsel %vm2455_vm6, %v2537_v31, %v2536_v61  ;;  %vm2239_vm8 = vcmp.eq.s32.totalorder %v6117_v15, 0  ;;  %v2718_v56 = vsel %vm2716_vm7, %v2717_v28, %v6248_v36  ;;  %v2892_v51 = vshrl.u32 %v6753_v39, %v6855_v23  ;;  %1867 = vmatprep.mubr.f32.mxu1 %v6847_v4 }
 0x22d   : > { %v2894_v10 = vshll.u32 %v6753_v39, %v6854_v57  ;;  %vm2342_vm9 = vcmp.eq.s32.totalorder %v6106_v20, 0  ;;  %vm2345_vm14 = vcmp.eq.s32.totalorder %v6106_v20, 2  ;;  %v2541_v7 = vsel %vm6172_vm10, %v6816_v43, %v2538_v40  ;;  %v6310_v39 = vld [vmem:[%s6597_s7 + $0x18] sm:$0xff] }
 0x22e   : > { %v2719_v55 = vadd.s32 %v2718_v56, %v2714_v30  ;;  %v2890_v61 = vor.u32 %v2889_v24, %v2888_v9  ;;  %v2895_v36 = vshrl.u32 %v6754_v34, %v6855_v23  ;;  %v2343_v57 = vxor.u32 2147483648, %v3776_v42  ;;  %v6856_v30 = vld [vmem:[#allocation37_spill] sm:$0xff] }
 0x22f   : > { %3777 = vcosq.f32 %v2541_v7  ;;  %vm2445_vm5 = vcmp.eq.s32.totalorder %v6231_v22, 0  ;;  %vm2448_vm4 = vcmp.eq.s32.totalorder %v6231_v22, 2  ;;  %v2873_v26 = vor.u32 8388608, %v2872_v50  ;;  %3451 = vmatmul.mubr.msk.f32.gmra.mrb[6].mxu1 %vm1671_vm15, %v6310_v39 }
 0x230   : > { %v2893_v40 = vor.u32 %v2892_v51, %v2891_v6  ;;  %3779 = vsinq.f32 %v2541_v7  ;;  %vm2238_vm11 = vcmp.lt.s32.totalorder %v6117_v15, 2  ;;  %v2720_v56 = vadd.s32 536870912, %v2719_v55  ;;  %3032 = vmatprep.mubr.f32.mxu1 %v6847_v4 }
 0x231   : > { %v2896_v34 = vor.u32 %v2895_v36, %v2894_v10  ;;  %vm2897_vm6 = vcmp.lt.s32.totalorder %v6856_v30, 1  ;;  %vm2341_vm13 = vcmp.lt.s32.totalorder %v6106_v20, 2  ;;  %v2881_v12 = vshrl.u32 %v6758_v11, %v6855_v23 }
 0x232   : > { %vm2898_vm12 = vcmp.lt.s32.totalorder %v6856_v30, 2  ;;  %vm2900_vm1 = vcmp.lt.s32.totalorder %v6856_v30, 4  ;;  %v2905_v31 = vsel %vm2897_vm6, %v2884_v62, %v2887_v48  ;;  %v6325_v6 = vshrl.u32 %v2720_v56, 30 }
 0x233   : > { %vm2899_vm0 = vcmp.lt.s32.totalorder %v6856_v30, 3  ;;  %v2902_v28 = vsel %vm2900_vm1, %v2890_v61, 2102212464  ;;  %v2906_v50 = vsel %vm2900_vm1, %v2893_v40, 920167782  ;;  %v2909_v11 = vsel %vm2897_vm6, %v2887_v48, %v2890_v61 }
 0x234   : > { %v2907_v9 = vsel %vm2899_vm0, %v2890_v61, %v2906_v50  ;;  %v2910_v23 = vsel %vm2900_vm1, %v2896_v34, 1326507024  ;;  %v2913_v24 = vshll.u32 %v2873_v26, 8  ;;  %vm2339_vm2 = vweird.f32 %v6805_v1 }
 0x235   : > { %v2446_v51 = vxor.u32 2147483648, %v6207_v63  ;;  %v2722_v10 = vshll.u32 %v6325_v6, 30  ;;  %v2901_v7 = vsel %vm2897_vm6, %v2881_v12, %v2884_v62  ;;  %v2908_v36 = vsel %vm2898_vm12, %v2905_v31, %v2907_v9 }
 0x236   : > { %vm2236_vm3 = vweird.f32 %v6801_v3  ;;  %v2903_v56 = vsel %vm2899_vm0, %v2887_v48, %v2902_v28  ;;  %v2911_v50 = vsel %vm2899_vm0, %v2893_v40, %v2910_v23  ;;  %vm2545_vm7 = vweird.f32 %v6816_v43 }
 0x237   : > { %v6339_v33 = vmul.u32.u64.low %v2913_v24, %v2908_v36  ;;  %v6340_v61 = vmul.u32.u64.high %v2913_v24, %v2908_v36, %v6339_v33  ;;  %v2546_v26 = vand.u32 3, %v2542_v13  ;;  %v2241_v62 = vsel %vm2239_vm8, %v6178_v60, %v2240_v46 }
 0x238   : > { %v6353_v34 = vsub.s32 %v2719_v55, %v2722_v10  ;;  %v2912_v48 = vsel %vm2898_vm12, %v2909_v11, %v2911_v50  ;;  %v2344_v40 = vsel %vm2342_vm9, %v6218_v17, %v2343_v57  ;;  %v2347_v58 = vsel %vm2345_vm14, %v2346_v52, %v3776_v42 }
 0x239   : > { %v6364_v19 = vmul.u32.u64.low %v2913_v24, %v2912_v48  ;;  %v6365_v16 = vmul.u32.u64.high %v2913_v24, %v2912_v48, %v6364_v19  ;;  %v2447_v60 = vsel %vm2445_vm5, %v6194_v27, %v2446_v51  ;;  %v6857_v46 = vxor.u32 2147483648, %v6194_v27  ;;  %v3778_v57 = vpop.eup %3777 }
 0x23a   : > { %v2725_v55 = vsub.s32 0, %v6353_v34  ;;  %v2904_v17 = vsel %vm2898_vm12, %v2901_v7, %v2903_v56  ;;  %v2245_v52 = vsel %vm2238_vm11, %v2241_v62, %v6257_v37  ;;  %vm2442_vm10 = vweird.f32 %v6839_v38  ;;  %v3780_v27 = vpop.eup %3779  ;;  %v6860_v62 = vld [vmem:[#allocation41_spill] sm:$0xff]  ;;  %v6861_v19 = vld [vmem:[#allocation18_spill] sm:$0xff] }
 0x23b   : > { %v2450_v13 = vsel %vm2448_vm4, %v6857_v46, %v6207_v63  ;;  %vm2444_vm8 = vcmp.lt.s32.totalorder %v6231_v22, 2  ;;  %v2923_v42 = vadd.s32 1, %v6340_v61  ;;  %v2348_v63 = vsel %vm2341_vm13, %v2344_v40, %v2347_v58 }
 0x23c   : > { %vm2551_vm9 = vcmp.eq.s32.totalorder %v2546_v26, 2  ;;  %v2552_v12 = vxor.u32 2147483648, %v3778_v57  ;;  %v3509_v30 = vmin.u32 %v2725_v55, %v6353_v34  ;;  %v2549_v31 = vxor.u32 2147483648, %v3780_v27 }
 0x23d   : > { %v2451_v28 = vsel %vm2444_vm8, %v2447_v60, %v2450_v13  ;;  %v2920_v9 = vmul.u32 %v2913_v24, %v2904_v17  ;;  %vm2922_vm14 = vc.u32 %v6365_v16, %v6339_v33  ;;  %vm2548_vm5 = vcmp.eq.s32.totalorder %v2546_v26, 0  ;;  %v6862_v17 = vld [vmem:[#allocation21_spill] sm:$0xff] }
 0x23e   : > { %v2553_v15 = vsel %vm2551_vm9, %v2552_v12, %v3780_v27  ;;  %v2727_v37 = vclz %v3509_v30  ;;  %v2924_v22 = vsel %vm2922_vm14, %v2923_v42, %v6340_v61  ;;  %v2349_v11 = vsel %vm2339_vm2, nan, %v2348_v63  ;;  %v6864_v30 = vld [vmem:[#allocation16_spill] sm:$0xff] }
 0x23f   : > { %vm2547_vm4 = vcmp.lt.s32.totalorder %v2546_v26, 2  ;;  %v2550_v20 = vsel %vm2548_vm5, %v3778_v57, %v2549_v31  ;;  %v2925_v23 = vadd.s32 %v2924_v22, %v2920_v9  ;;  %v2246_v10 = vsel %vm2236_vm3, nan, %v2245_v52  ;;  %v6863_v57 = vld [vmem:[#allocation33_spill] sm:$0xff]  ;;  %v6865_v31 = vld [vmem:[#allocation28_spill] sm:$0xff] }
 0x240   : > { %v2554_v51 = vsel %vm2547_vm4, %v2550_v20, %v2553_v15  ;;  %v2452_v24 = vsel %vm2442_vm10, nan, %v2451_v28  ;;  %v3510_v7 = vadd.s32 4294967294, %v2727_v37  ;;  %v6858_v36 = vshll.u32 %v5881_v53, 23 }
 0x241   : > { %v6859_v50 = vshll.u32 %v5342_v0, %v5891_v41  ;;  %v2555_v61 = vsel %vm2545_vm7, nan, %v2554_v51  ;;  %v2926_v26 = vadd.s32 536870912, %v2925_v23  ;;  %v2835_v3 = vshll.u32 %v6860_v62, %v5644_v2  ;;  %v6866_v51 = vld [vmem:[#allocation27_spill] sm:$0xff] }
 0x242   : > { %v2841_v56 = vor.u32 4788187, %v6858_v36  ;;  %v3582_v48 = vpack.c.bf16 %v2555_v61, %v2349_v11  ;;  %vm3511_vm11 = vcmp.lt.s32.totalorder %v3510_v7, 0  ;;  %v2636_v38 = vand.u32 2147483647, %v6095_v59 }
 0x243   : > { %v2631_v1 = vor.u32 %v6084_v47, %v6859_v50  ;;  %v3584_v40 = vpack.c.bf16 %v2452_v24, %v2246_v10  ;;  %v2730_v58 = vsel %vm3511_vm11, 0, %v3510_v7  ;;  %v6407_v53 = vshrl.u32 %v2926_v26, 30 }
 0x244   : > { %v2837_v60 = vor.u32 %v6861_v19, %v2835_v3  ;;  %3583 = vmatprep.subr.bf16.mxu1 %v3582_v48  ;;  %v2715_v0 = vadd.s32 %v6247_v18, %v6239_v32  ;;  %v2731_v41 = vsub.s32 32, %v2730_v58  ;;  %v2735_v43 = vsub.s32 4294967266, %v2730_v58 }
 0x245   : > { %v2842_v47 = vand.u32 2147483647, %v2841_v56  ;;  %v2638_v46 = vcvt.s32.f32 %v2631_v1  ;;  %3585 = vmatpush1.bf16.msra.mxu1 %v3584_v40  ;;  %v2928_v2 = vshll.u32 %v6407_v53, 30  ;;  %v2732_v13 = vshll.u32 %v6353_v34, %v2730_v58  ;;  %v6867_v56 = vld [vmem:[#allocation11_spill] sm:$0xff] }
 0x246   : > { %v2733_v59 = vshrl.u32 %v2715_v0, %v2731_v41  ;;  %v2736_v55 = vadd.s32 127, %v2735_v43  ;;  %v6416_v52 = vpack.c.bf16 %v6863_v57, %v6862_v17  ;;  %v2844_v63 = vcvt.s32.f32 %v2837_v60  ;;  %v6878_v57 = vld [vmem:[#allocation40_spill] sm:$0xff] }
 0x247   : > { %v2639_v42 = vmul.f32 %v2638_v46, %v2636_v38  ;;  %v2929_v27 = vsub.s32 %v2925_v23, %v2928_v2  ;;  %v6420_v28 = vpack.c.bf16 %v6865_v31, %v6864_v30  ;;  %vm2558_vm6 = vcmp.lt.s32.totalorder %v6866_v51, 0 }
 0x248   : > { %v2734_v12 = vor.u32 %v2733_v59, %v2732_v13  ;;  %v2737_v32 = vshll.u32 %v2736_v55, 23  ;;  %v2845_v9 = vmul.f32 %v2844_v63, %v2842_v47  ;;  %vm2764_vm13 = vcmp.lt.s32.totalorder %v6867_v56, 0  ;;  %v6877_v55 = vld [vmem:[#allocation42_spill] sm:$0xff] }
 0x249   : > { %v2931_v18 = vsub.s32 0, %v2929_v27  ;;  %v2640_v37 = vxor.u32 2147483648, %v2639_v42  ;;  %3595 = vmatprep.subr.bf16.mxu0 %v6420_v28  ;;  %v6868_v50 = vand.u32 2147483647, %v6866_v51  ;;  %vm2661_vm0 = vcmp.lt.s32.totalorder %v5002_v35, 0 }
 0x24a   : > { %v2738_v15 = vor.u32 4788187, %v2737_v32  ;;  %v2741_v11 = vcvt.s32.f32 %v2734_v12  ;;  %3597 = vmatpush1.bf16.msra.mxu0 %v6416_v52  ;;  %v2846_v23 = vxor.u32 2147483648, %v2845_v9  ;;  %v2921_v3 = vadd.s32 %v6339_v33, %v6365_v16 }
 0x24b   : > { %v3517_v34 = vmin.u32 %v2931_v18, %v2929_v27  ;;  %v2641_v24 = vsel %vm2558_vm6, %v2640_v37, %v2639_v42  ;;  %vm6433_vm1 = vcmp.le.f32.partialorder %v6868_v50, 0.7853982  ;;  %v6871_v40 = vand.u32 2147483647, %v5002_v35 }
 0x24c   : > { %v2739_v22 = vand.u32 2147483647, %v2738_v15  ;;  %v2847_v61 = vsel %vm2764_vm13, %v2846_v23, %v2845_v9  ;;  %v6874_v19 = vand.u32 2147483647, %v6867_v56  ;;  %v2745_v2 = vsub.s32 4, %v6325_v6 }
 0x24d   : > { %v2933_v20 = vclz %v3517_v34  ;;  %3524 = vmatmul.mubr.msk.f32.vlgmr.msra.gmra.mrb[16].mxu0 %vm1671_vm15, %v6200_v5  ;;  %v2644_v5 = vsel %vm6433_vm1, %v6866_v51, %v2641_v24  ;;  %vm6451_vm2 = vcmp.le.f32.partialorder %v6871_v40, 0.7853982  ;;  %v2642_v17 = vsub.s32 4, %v6877_v55 }
 0x24e   : > { %v2742_v10 = vmul.f32 %v2741_v11, %v2739_v22  ;;  %3127 = vmatprep.mubr.f32.mxu0 %v6847_v4  ;;  %vm6457_vm3 = vcmp.le.f32.partialorder %v6874_v19, 0.7853982  ;;  %3781 = vcosq.f32 %v2644_v5  ;;  %v2848_v42 = vsub.s32 4, %v6878_v57 }
 0x24f   : > { %v3518_v7 = vadd.s32 4294967294, %v2933_v20  ;;  %3783 = vsinq.f32 %v2644_v5  ;;  %v2746_v63 = vsel %vm2661_vm0, %v2745_v2, %v6325_v6  ;;  %vm2867_vm7 = vcmp.lt.s32.totalorder %v6853_v21, 0 }
 0x250   : > { %v2743_v36 = vxor.u32 2147483648, %v2742_v10  ;;  %v2643_v32 = vsel %vm2558_vm6, %v2642_v17, %v6877_v55  ;;  %v2849_v18 = vsel %vm2764_vm13, %v2848_v42, %v6878_v57  ;;  %v6879_v31 = vand.u32 2147483647, %v6853_v21 }
 0x251   : > { %vm3519_vm12 = vcmp.lt.s32.totalorder %v3518_v7, 0  ;;  %3525 = vmatmul.mubr.msk.f32.gmra.mrb[18].mxu0 %vm1671_vm15, %v6245_v25  ;;  %v2850_v25 = vsel %vm6457_vm3, %v6867_v56, %v2847_v61  ;;  %v2951_v15 = vsub.s32 4, %v6407_v53  ;;  %v2748_v34 = vsel %vm6451_vm2, 0, %v2746_v63 }
 0x252   : > { %v2936_v26 = vsel %vm3519_vm12, 0, %v3518_v7  ;;  %v2744_v62 = vsel %vm2661_vm0, %v2743_v36, %v2742_v10  ;;  %3133 = vmatprep.mubr.f32.mxu0 %v6847_v4  ;;  %3785 = vcosq.f32 %v2850_v25  ;;  %vm6485_vm10 = vcmp.le.f32.partialorder %v6879_v31, 0.7853982 }
 0x253   : > { %v2937_v48 = vsub.s32 32, %v2936_v26  ;;  %v2941_v38 = vsub.s32 4294967266, %v2936_v26  ;;  %v2938_v33 = vshll.u32 %v2929_v27, %v2936_v26  ;;  %v2747_v41 = vsel %vm6451_vm2, %v5002_v35, %v2744_v62 }
 0x254   : > { %3787 = vcosq.f32 %v2747_v41  ;;  %v2645_v20 = vsel %vm6433_vm1, 0, %v2643_v32  ;;  %v2851_v23 = vsel %vm6457_vm3, 0, %v2849_v18  ;;  %v2752_v7 = vand.u32 3, %v2748_v34  ;;  %v1882_v18 = vpop.permute.xlu1 %1881 }
 0x255   : > { %v2939_v16 = vshrl.u32 %v2921_v3, %v2937_v48  ;;  %v2942_v0 = vadd.s32 127, %v2941_v38  ;;  %3526 = vmatmul.mubr.msk.f32.gmra.mrb[20].mxu0 %vm1671_vm15, %v6278_v44  ;;  %3789 = vsinq.f32 %v2747_v41  ;;  %v2952_v36 = vsel %vm2867_vm7, %v2951_v15, %v6407_v53 }
 0x256   : > { %3791 = vsinq.f32 %v2850_v25  ;;  %v2649_v50 = vand.u32 3, %v2645_v20  ;;  %v2855_v61 = vand.u32 3, %v2851_v23  ;;  %v2954_v1 = vsel %vm6485_vm10, 0, %v2952_v36 }
 0x257   : > { %v2940_v43 = vor.u32 %v2939_v16, %v2938_v33  ;;  %v2943_v47 = vshll.u32 %v2942_v0, 23  ;;  %vm2754_vm8 = vcmp.eq.s32.totalorder %v2752_v7, 0  ;;  %vm2757_vm9 = vcmp.eq.s32.totalorder %v2752_v7, 2 }
 0x258   : > { %v3782_v44 = vpop.eup %3781  ;;  %vm2651_vm14 = vcmp.eq.s32.totalorder %v2649_v50, 0  ;;  %vm2654_vm5 = vcmp.eq.s32.totalorder %v2649_v50, 2  ;;  %vm2857_vm4 = vcmp.eq.s32.totalorder %v2855_v61, 0  ;;  %v2958_v19 = vand.u32 3, %v2954_v1 }
 0x259   : > { %v2944_v46 = vor.u32 4788187, %v2943_v47  ;;  %v2947_v59 = vcvt.s32.f32 %v2940_v43  ;;  %v3784_v30 = vpop.eup %3783  ;;  %v2655_v62 = vxor.u32 2147483648, %v3782_v44  ;;  %vm2860_vm11 = vcmp.eq.s32.totalorder %v2855_v61, 2 }
 0x25a   : > { %v2652_v3 = vxor.u32 2147483648, %v3784_v30  ;;  %vm2753_vm6 = vcmp.lt.s32.totalorder %v2752_v7, 2  ;;  %vm2650_vm13 = vcmp.lt.s32.totalorder %v2649_v50, 2  ;;  %vm2856_vm12 = vcmp.lt.s32.totalorder %v2855_v61, 2 }
 0x25b   : > { %v2945_v13 = vand.u32 2147483647, %v2944_v46  ;;  %v2656_v60 = vsel %vm2654_vm5, %v2655_v62, %v3784_v30  ;;  %vm2963_vm1 = vcmp.eq.s32.totalorder %v2958_v19, 2  ;;  %vm2751_vm0 = vweird.f32 %v5002_v35 }
 0x25c   : > { %v3786_v37 = vpop.eup %3785  ;;  %v2653_v53 = vsel %vm2651_vm14, %v3782_v44, %v2652_v3  ;;  %vm2960_vm2 = vcmp.eq.s32.totalorder %v2958_v19, 0  ;;  %vm2648_vm3 = vweird.f32 %v6866_v51 }
 0x25d   : > { %v2948_v27 = vmul.f32 %v2947_v59, %v2945_v13  ;;  %v2861_v38 = vxor.u32 2147483648, %v3786_v37  ;;  %v2657_v46 = vsel %vm2650_vm13, %v2653_v53, %v2656_v60 }
 0x25e   : > { %v3788_v11 = vpop.eup %3787  ;;  %v2658_v57 = vsel %vm2648_vm3, nan, %v2657_v46 }
 0x25f   : > { %v2949_v12 = vxor.u32 2147483648, %v2948_v27  ;;  %v3790_v10 = vpop.eup %3789  ;;  %v2758_v5 = vxor.u32 2147483648, %v3788_v11 }
 0x260   : > { %v3792_v24 = vpop.eup %3791  ;;  %v2755_v26 = vxor.u32 2147483648, %v3790_v10 }
 0x261   : > { %v2950_v6 = vsel %vm2867_vm7, %v2949_v12, %v2948_v27  ;;  %v2858_v48 = vxor.u32 2147483648, %v3792_v24  ;;  %v2759_v58 = vsel %vm2757_vm9, %v2758_v5, %v3790_v10  ;;  %v2862_v16 = vsel %vm2860_vm11, %v2861_v38, %v3792_v24 }
 0x262   : > { %v2953_v22 = vsel %vm6485_vm10, %v6853_v21, %v2950_v6  ;;  %v2756_v40 = vsel %vm2754_vm8, %v3788_v11, %v2755_v26  ;;  %vm2959_vm7 = vcmp.lt.s32.totalorder %v2958_v19, 2  ;;  %vm2854_vm10 = vweird.f32 %v6867_v56 }
 0x263   : > { %3793 = vcosq.f32 %v2953_v22  ;;  %v2859_v33 = vsel %vm2857_vm4, %v3786_v37, %v2858_v48  ;;  %v2760_v41 = vsel %vm2753_vm6, %v2756_v40, %v2759_v58  ;;  %vm2957_vm8 = vweird.f32 %v6853_v21 }
 0x264   : > { %3795 = vsinq.f32 %v2953_v22  ;;  %v2863_v2 = vsel %vm2856_vm12, %v2859_v33, %v2862_v16  ;;  %v2761_v59 = vsel %vm2751_vm0, nan, %v2760_v41 }
 0x265   : > { %v2864_v42 = vsel %vm2854_vm10, nan, %v2863_v2 }
 0x266   : > { %v3588_v12 = vpack.c.bf16 %v2864_v42, %v2658_v57 }
 0x26d   : > { %v3794_v0 = vpop.eup %3793 }
 0x26e   : > { %v3796_v25 = vpop.eup %3795  ;;  %v2964_v43 = vxor.u32 2147483648, %v3794_v0 }
 0x26f   : > { %v2961_v47 = vxor.u32 2147483648, %v3796_v25 }
 0x270   : > { %v2965_v13 = vsel %vm2963_vm1, %v2964_v43, %v3796_v25 }
 0x271   : > { %v2962_v55 = vsel %vm2960_vm2, %v3794_v0, %v2961_v47 }
 0x272   : > { %v2966_v17 = vsel %vm2959_vm7, %v2962_v55, %v2965_v13 }
 0x273   : > { %v2967_v27 = vsel %vm2957_vm8, nan, %v2966_v17 }
 0x274   : > { %v3586_v63 = vpack.c.bf16 %v2967_v27, %v2761_v59 }
 0x276   : > { %3587 = vmatprep.subr.bf16.mxu1 %v3586_v63 }
 0x277   : > { %3589 = vmatpush1.bf16.msra.mxu1 %v3588_v12 }
 0x278   : > { %3598 = vmatprep.subr.bf16.mxu1 %v5994_v45 }
 0x27a   : > { %3520 = vmatmul.mubr.msk.f32.vlgmr.msra.gmra.mrb[8].mxu1 %vm1671_vm15, %v6052_v8 }
 0x27b   : > { %3600 = vmatpush1.bf16.msra.mxu1 %v5990_v14  ;;  %3038 = vmatprep.mubr.f32.mxu1 %v6847_v4 }
 0x27c   : > { %3599 = vmatprep.subr.bf16.mxu1 %v6420_v28 }
 0x27e   : > { %3521 = vmatmul.mubr.msk.f32.gmra.mrb[10].mxu1 %vm1671_vm15, %v6104_v54 }
 0x27f   : > { %3601 = vmatpush1.bf16.msra.mxu1 %v6416_v52  ;;  %3044 = vmatprep.mubr.f32.mxu1 %v6847_v4 }
 0x282   : > { %3522 = vmatmul.mubr.msk.f32.gmra.mrb[12].mxu1 %vm1671_vm15, %v6143_v49 }
 0x283   : > { %3050 = vmatprep.mubr.f32.mxu1 %v6847_v4 }
 0x286   : > { %3523 = vmatmul.mubr.msk.f32.gmra.mrb[14].mxu1 %vm1671_vm15, %v6166_v29 }
 0x287   : > { %3139 = vmatprep.mubr.f32.mxu1 %v6847_v4  ;;  %v1877_v4 = vpop.permute.xlu0 %1876 }
 0x28b   : > { %v1887_v30 = vpop.permute.xlu0 %1886 }
 0x28e   : > { %3527 = vmatmul.mubr.msk.f32.vlgmr.msra.gmra.mrb[14].mxu1 %vm1671_vm15, %v6310_v39  ;;  %v6532_v39 = vpop.permute.xlu1 %1891 }
 0x28f   : > { %v3169_v6 = vpop.permute.xlu0 %3168 }
 0x292   : > { %v3174_v22 = vpop.permute.xlu1 %3173 }
 0x293   : > { %v3201_v62 = vpop.permute.xlu0 %3200 }
 0x296   : > { %v3206_v60 = vpop.permute.xlu1 %3205 }
 0x2f6   : > { %v1851_v35 = vpop.f32.mrb[0].mxu1 }
 0x2f7   : > { %v1853_v14 = vpop.f32.mrb[1].mxu1  ;;  %v1894_v31 = vadd.f32 %v1877_v4, %v1851_v35 }
 0x2f8   : > { %v1895_v9 = vadd.f32 %v1877_v4, %v1853_v14 }
 0x2f9   : > { %v1902_v11 = vmax.f32 %v1894_v31, 0.0 }
 0x2fa   : > { %v1857_v45 = vpop.f32.mrb[2].mxu1  ;;  %v1903_v20 = vmax.f32 %v1895_v9, 0.0 }
 0x2fb   : > { %v1859_v8 = vpop.f32.mrb[3].mxu1  ;;  %v1896_v10 = vadd.f32 %v1882_v18, %v1857_v45  ;;  %v3186_v1 = vmul.f32 %v3169_v6, %v1902_v11 }
 0x2fc   : > { %v1897_v7 = vadd.f32 %v1882_v18, %v1859_v8  ;;  %v3187_v3 = vmul.f32 %v3169_v6, %v1903_v20 }
 0x2fd   : > { %v1904_v40 = vmax.f32 %v1896_v10, 0.0 }
 0x2fe   : > { %v1863_v54 = vpop.f32.mrb[4].mxu1  ;;  %v1905_v33 = vmax.f32 %v1897_v7, 0.0 }
 0x2ff   : > { %v1865_v21 = vpop.f32.mrb[5].mxu1  ;;  %v1898_v58 = vadd.f32 %v1887_v30, %v1863_v54  ;;  %v3188_v17 = vmul.f32 %v3174_v22, %v1904_v40  ;;  %v3211_v54 = vpop.permute.xlu1 %3210 }
 0x300   : > { %v1899_v16 = vadd.f32 %v1887_v30, %v1865_v21  ;;  %v3189_v63 = vmul.f32 %v3174_v22, %v1905_v33  ;;  %v3179_v21 = vpop.permute.xlu0 %3178 }
 0x301   : > { %v1906_v57 = vmax.f32 %v1898_v58, 0.0 }
 0x302   : > { %v6528_v52 = vpop.f32.mrb[6].mxu1  ;;  %v1907_v12 = vmax.f32 %v1899_v16, 0.0 }
 0x303   : > { %v6530_v28 = vpop.f32.mrb[7].mxu1  ;;  %v1900_v31 = vadd.f32 %v6532_v39, %v6528_v52  ;;  %v3216_v7 = vpop.permute.xlu1 %3215 }
 0x304   : > { %v1901_v6 = vadd.f32 %v6532_v39, %v6530_v28 }
 0x305   : > { %v1908_v22 = vmax.f32 %v1900_v31, 0.0 }
 0x320   : > { %v3123_v49 = vpop.f32.mrb[16].mxu0 }
 0x321   : > { %v3125_v51 = vpop.f32.mrb[17].mxu0 }
 0x324   : > { %v3129_v56 = vpop.f32.mrb[18].mxu0 }
 0x325   : > { %v3131_v44 = vpop.f32.mrb[19].mxu0 }
 0x328   : > { %v3135_v29 = vpop.f32.mrb[20].mxu0 }
 0x329   : > { %v3137_v32 = vpop.f32.mrb[21].mxu0 }
 0x34d   : > { %v3034_v15 = vpop.f32.mrb[8].mxu1 }
 0x34e   : > { %v3124_v37 = vadd.f32 %v3123_v49, %v3034_v15  ;;  %v3036_v34 = vpop.f32.mrb[9].mxu1 }
 0x34f   : > { %v3126_v23 = vadd.f32 %v3125_v51, %v3036_v34 }
 0x350   : > { %v3146_v24 = vadd.f32 %v3124_v37, %v1877_v4 }
 0x351   : > { %v3147_v36 = vadd.f32 %v3126_v23, %v1877_v4  ;;  %v3040_v50 = vpop.f32.mrb[10].mxu1  ;;  %v3191_v4 = vmul.f32 %v3179_v21, %v1907_v12  ;;  %v1909_v23 = vmax.f32 %v1901_v6, 0.0 }
 0x352   : > { %v3154_v61 = vmax.f32 %v3146_v24, 0.0  ;;  %v3130_v26 = vadd.f32 %v3129_v56, %v3040_v50  ;;  %v3042_v5 = vpop.f32.mrb[11].mxu1  ;;  %v3190_v56 = vmul.f32 %v3179_v21, %v1906_v57 }
 0x353   : > { %v3155_v48 = vmax.f32 %v3147_v36, 0.0  ;;  %v3132_v38 = vadd.f32 %v3131_v44, %v3042_v5  ;;  %v3184_v36 = vpop.permute.xlu0 %3183 }
 0x354   : > { %v3218_v19 = vmul.f32 %v3201_v62, %v3154_v61  ;;  %v3148_v53 = vadd.f32 %v3130_v26, %v1882_v18  ;;  %v3192_v52 = vmul.f32 %v3184_v36, %v1908_v22  ;;  %v3193_v26 = vmul.f32 %v3184_v36, %v1909_v23 }
 0x355   : > { %v3219_v0 = vmul.f32 %v3201_v62, %v3155_v48  ;;  %v3149_v25 = vadd.f32 %v3132_v38, %v1882_v18  ;;  %v3046_v41 = vpop.f32.mrb[12].mxu1 }
 0x356   : > { %v3226_v43 = vadd.f32 %v3218_v19, %v3186_v1  ;;  %v3156_v47 = vmax.f32 %v3148_v53, 0.0  ;;  %v3136_v46 = vadd.f32 %v3135_v29, %v3046_v41  ;;  %v3048_v2 = vpop.f32.mrb[13].mxu1 }
 0x357   : > { %v3227_v13 = vadd.f32 %v3219_v0, %v3187_v3  ;;  %v3157_v59 = vmax.f32 %v3149_v25, 0.0  ;;  %v3138_v55 = vadd.f32 %v3137_v32, %v3048_v2  ;;  %v3253_v0 = vstv %s3252_s17  ;;  %v6882_v2 = vld [vmem:[#allocation6_spill] sm:$0xff]  ;;  %s3797_s17 = scalar_lea.vmem %s6550_s24, 32 }
 0x358   : > { %v3220_v42 = vmul.f32 %v3206_v60, %v3156_v47  ;;  %v3150_v27 = vadd.f32 %v3136_v46, %v1887_v30  ;;  %p3798_p11 = scmp.ne.s32.totalorder %s6550_s24, %s3797_s17  ;;  %p3805_p1 = scmp.lt.s32.totalorder %s3803_s1, %s3797_s17 }
 0x359   : > { %v3221_v35 = vmul.f32 %v3206_v60, %v3157_v59  ;;  %v3151_v14 = vadd.f32 %v3138_v55, %v1887_v30  ;;  %v6883_v59 = vlaneseq }
 0x35a   : > { %v3228_v45 = vadd.f32 %v3220_v42, %v3188_v17  ;;  %v3158_v8 = vmax.f32 %v3150_v27, 0.0  ;;  %p3799_p12 = pnand %p3798_p11, %p3983_p5  ;;  %p3806_p2 = por %p3805_p1, %p3804_p0 }
 0x35b   : > { %v3229_v49 = vadd.f32 %v3221_v35, %v3189_v63  ;;  %v3159_v51 = vmax.f32 %v3151_v14, 0.0  ;;  %vm3276_vm15 = vcmp.lt.s32.totalorder %v6883_v59, 256 }
 0x35c   : > { %v3234_v44 = vadd.f32 %v3228_v45, %v3226_v43  ;;  %v3222_v29 = vmul.f32 %v3211_v54, %v3158_v8  ;;  %p3800_p13 = pneg %p3799_p12 }
 0x35d   : > { %v3243_v18 = vadd.f32 %v3229_v49, %v3227_v13  ;;  %v3223_v32 = vmul.f32 %v3211_v54, %v3159_v51 }
 0x35e   : > { %v3230_v9 = vadd.f32 %v3222_v29, %v3190_v56  ;;  %p3807_p3 = pnand %p3806_p2, %p3800_p13 }
 0x35f   : > { %v3231_v30 = vadd.f32 %v3223_v32, %v3191_v4 }
 0x360   : > { %v3235_v15 = vadd.f32 %v3234_v44, %v3230_v9 }
 0x361   : > { %v3141_v37 = vpop.f32.mrb[14].mxu1  ;;  %v3244_v34 = vadd.f32 %v3243_v18, %v3231_v30 }
 0x362   : > { %v3152_v11 = vadd.f32 %v3141_v37, %v6532_v39  ;;  %v3143_v20 = vpop.f32.mrb[15].mxu1 }
 0x363   : > { %v3153_v10 = vadd.f32 %v3143_v20, %v6532_v39 }
 0x364   : > { %v3160_v24 = vmax.f32 %v3152_v11, 0.0 }
 0x365   : > { %v3161_v50 = vmax.f32 %v3153_v10, 0.0 }
 0x366   : > { %v3224_v61 = vmul.f32 %v3216_v7, %v3160_v24 }
 0x367   : > { %v3225_v28 = vmul.f32 %v3216_v7, %v3161_v50 }
 0x368   : > { %v3232_v5 = vadd.f32 %v3224_v61, %v3192_v52 }
 0x369   : > { %v3233_v62 = vadd.f32 %v3225_v28, %v3193_v26 }
 0x36a   : > { %v3236_v1 = vadd.f32 %v3235_v15, %v3232_v5 }
 0x36b   : > { %v3245_v3 = vadd.f32 %v3244_v34, %v3233_v62 }
 0x36c   : > { %v3237_v48 = vrot.slane %v3236_v1, 4 }
 0x36d   : > { %v3246_v38 = vrot.slane %v3245_v3, 4 }
 0x36e   : > { %v3238_v40 = vadd.f32 %v3237_v48, %v3236_v1 }
 0x36f   : > { %v3247_v58 = vadd.f32 %v3246_v38, %v3245_v3 }
 0x370   : > { %v3239_v39 = vrot.slane %v3238_v40, 2 }
 0x371   : > { %v3248_v19 = vrot.slane %v3247_v58, 2 }
 0x372   : > { %v3240_v53 = vadd.f32 %v3239_v39, %v3238_v40 }
 0x373   : > { %v3249_v60 = vadd.f32 %v3248_v19, %v3247_v58 }
 0x374   : > { %v3241_v33 = vrot.slane %v3240_v53, 1 }
 0x375   : > { %v3250_v16 = vrot.slane %v3249_v60, 1 }
 0x376   : > { %v3242_v25 = vadd.f32 %v3241_v33, %v3240_v53 }
 0x377   : > { %v3251_v41 = vadd.f32 %v3250_v16, %v3249_v60 }
 0x378   : > { %v3254_v43 = vadd.f32 %v3253_v0, %v3242_v25 }
 0x379   : > { %v3255_v47 = vadd.f32 %v3253_v0, %v3251_v41 }
 0x37b   : > { %v3258_v46 = vcombine.low %v3254_v43, %v3255_v47 }
 0x37d   : > { %v3265_v13 = vrot.slane %v3258_v46, %v6882_v2 }
 0x37f   : > { %v3272_v55 = vrot.slane %v3265_v13, %v6882_v2 }
 0x381   : > { %3278 = vst.msk [vmem:[%s461_s23] sm:$0x3] %vm3276_vm15, %v3272_v55 }
 0x382   : > { %3810 = shalt.err (!%p3807_p3)
}
 0x383   : > { %s3811_s21 = scalar_lea.hbm %s6548_s16, 32  ;;  %s3815_s26 = scalar_lea.hbm %s6603_s13, 64 }
 0x384   : > { %p3812_p4 = scmp.ne.s32.totalorder %s6548_s16, %s3811_s21  ;;  %p3816_p9 = scmp.lt.u32.totalorder %s6548_s16, %s6603_s13 }
 0x385   : > { %p3817_p10 = scmp.lt.u32.totalorder %s3815_s26, %s3811_s21  ;;  %p3819_p12 = scmp.lt.u32.totalorder %s3811_s21, %s6548_s16 }
 0x386   : > { %p3813_p7 = pnand %p3812_p4, %p3983_p5 }
 0x387   : > { %p3818_p11 = por %p3817_p10, %p3816_p9 }
 0x388   : > { %p3814_p8 = pneg %p3813_p7 }
 0x389   : > { %p3820_p13 = por %p3819_p12, %p3818_p11 }
 0x38b   : > { %p3821_p0 = pnand %p3820_p13, %p3814_p8 }
 0x38d   : > { %3824 = shalt.err (!%p3821_p0)
}
 0x38e   : > { %3682 = dma.vmem_to_hbm [thread:$0]  (%p3983_p5), %s6550_s24, 32, %s6548_s16, %s3280_s12  }
 0x38f PF: > { %p3688_p1 = scmp.ge.s32.totalorder %s3859_s30, 2  ;;  %s3306_s1 = sand.u32 1, %s3847_s27  }
 0x390   : > { %s3307_s17 = scalar_lea.sflag [#allocation4], %s3306_s1 }
 0x391   : > { %p3685_p2 = pnand %p3688_p1, %p3987_p6 }
 0x393   : > { %3842 = dma.done.wait (!%p3685_p2), %s3307_s17, 32  }
 0x394   : > { %3844 = vsyncadd (!%p3685_p2), %s3307_s17, 4294967264  ;;  %p24_p3 = scmp.ge.s32.totalorder %s3970_s15, 4   ;;  %s6884_s27 = smov %s3851_s28 }
 0x395   : > { %s6885_s28 = smov %s3855_s29  ;;  %s6886_s29 = smov %s3981_s18 }
 0x396   : > { %s6887_s30 = smov %s3970_s15  ;;  %26 = sbr.rel (!%p24_p3) target bundleno = 7 (0x7), region = 113 }
 0x39d   :  { %3312 = vsyncpa [#allocation4], 1 }
 0x39e   :  { %3314 = vsyncpa [#allocation4 + $0x1], 1 }

</bundles_post_ra>
